<compile_context>
chip_gen: v6e
topology: v6e:2x2x1
jax: 0.10.0
libtpu: 0.0.40
codegen_flags: <defaults>
</compile_context>

<pallas_src>
import functools
import numpy as np
import jax
import jax.numpy as jnp
from jax import lax
from jax.experimental import pallas as pl
from jax.experimental.pallas import tpu as pltpu

EPS = float(np.finfo(np.float32).eps)  # ResRNN passes torch.finfo(float32).eps to GroupNorm


def _resrnn_kernel(T, Bt, N, H,
                   x_ref, gamma_ref, beta_ref,
                   win_ref, bin_ref, whh_ref, wout_ref, bout_ref,
                   out_ref, gin_sc, h_sc):
    """Fused bidirectional ResRNN on one lane-dense batch tile.

    Lane layouts: x/out lane = t*N + n ; gate-input lane = u*8H + c ;
    hidden-state lane = u*2H + j, where u is the recurrence step.

    x_ref:    (Bt, T*N)    f32  lane-dense input tile
    gamma/beta: (1, T*N)   f32  GroupNorm affine, tiled over time
    win_ref:  (T*N, T*8H)  bf16 block input->gate weight; encodes BOTH directions
                                and the backward time reversal; g-gate columns
                                pre-scaled x2 (tanh-via-sigmoid identity)
    bin_ref:  (1, T*8H)    f32  (b_ih + b_hh) tiled over time (g columns x2)
    whh_ref:  (2H, 8H)     bf16 block-diagonal hidden->gate weights (g cols x2)
    wout_ref: (T*2H, T*N)  bf16 block projection weight; encodes the fwd/bwd
                                selection and the bwd time re-alignment
    bout_ref: (1, T*N)     f32  projection bias tiled over time
    gin_sc:   (Bt, T*8H)   f32  hoisted input gate contributions (+ bias)
    h_sc:     (Bt, T*2H)   bf16 per-step hidden states [h_f(u) | h_b(T-1-u)]
    """
    G = 2 * H           # per-gate width (fwd half | bwd half)
    GH = 4 * G          # all four gates for one step (= 8H)
    L = T * N

    # --- GroupNorm(1, N): stats over all T*N elements per sample (full lanes) ---
    x = x_ref[...]                                            # (Bt, L) f32
    inv = 1.0 / float(L)
    mean = jnp.sum(x, axis=1, keepdims=True) * inv
    d = x - mean
    var = jnp.sum(d * d, axis=1, keepdims=True) * inv
    xn = d * lax.rsqrt(var + EPS) * gamma_ref[...] + beta_ref[...]

    # --- hoisted input->gates matmul: both directions, time-merged, + bias ---
    gin_sc[...] = jnp.dot(xn.astype(jnp.bfloat16), win_ref[...],
                          preferred_element_type=jnp.float32) + bin_ref[...]

    # --- fused fwd+bwd recurrence, fully unrolled (static lane offsets) ---
    whh = whh_ref[...]                                        # (2H, 8H) bf16
    hb = jnp.zeros((Bt, G), jnp.bfloat16)                     # [h_fwd | h_bwd]
    c = jnp.zeros((Bt, G), jnp.float32)                       # [c_fwd | c_bwd]
    for u in range(T):                    # full unroll; one gin load / MXU op / EUP pass per step
        gates = gin_sc[:, u * GH:(u + 1) * GH] + jnp.dot(
            hb, whh, preferred_element_type=jnp.float32)
        act = jax.nn.sigmoid(gates)       # single full-width (Bt, 8H) sigmoid
        i = act[:, 0:G]
        f = act[:, G:2 * G]
        g = act[:, 2 * G:3 * G] * 2.0 - 1.0   # tanh(x) = 2*sigmoid(2x) - 1 (x2 folded into weights)
        o = act[:, 3 * G:4 * G]
        c = f * c + i * g
        hb = (o * jnp.tanh(c)).astype(jnp.bfloat16)
        h_sc[:, u * G:(u + 1) * G] = hb   # one bf16 store per step (its only consumer is the MXU)

    # --- hoisted projection (time re-alignment baked into wout) + bias + residual ---
    proj = jnp.dot(h_sc[...], wout_ref[...], preferred_element_type=jnp.float32)
    out_ref[...] = proj + bout_ref[...] + x_ref[...]          # x re-read: not held live across the loop


def _num_tensorcores():
    """Grid steps run sequentially on one TensorCore, so only shard the batch
    when the chip actually has two cores sharing a 'parallel' grid axis
    (v7x / megacore parts). On v5e / v6e a single full-batch tile avoids
    running the serial recurrence twice."""
    try:
        kind = jax.devices()[0].device_kind.lower()
    except Exception:
        return 1
    if "v7" in kind or "v4" in kind or "v5p" in kind:
        return 2
    return 1


def _pick_tiling(Bb, T, N, H):
    """(n_tiles, tile): one batch tile per TensorCore; split further only if a
    tile's VMEM working set would overflow the default scoped-VMEM budget."""
    n_tiles = _num_tensorcores()
    budget = 24 << 20                      # headroom under the 32 MiB scoped-VMEM default

    def per_tile_bytes(tile):
        gin = tile * T * 8 * H * 4         # f32 gate-input scratch (dominant term)
        hid = tile * T * 2 * H * 2         # bf16 hidden scratch
        io = 4 * tile * T * N * 4          # double-buffered in / out blocks
        return gin + hid + io

    while True:
        tile = -(-Bb // n_tiles)
        if n_tiles > 1:
            tile = -(-tile // 8) * 8       # sublane multiple once the batch is actually tiled
        if per_tile_bytes(tile) <= budget or tile <= 8:
            return n_tiles, tile
        n_tiles += 1


@functools.lru_cache(maxsize=None)
def _make_resrnn_call(T, Bp, tile, N, H):
    kernel = functools.partial(_resrnn_kernel, T, tile, N, H)
    L = T * N
    io_spec = pl.BlockSpec((tile, L), lambda b: (b, 0))

    def full(shape):
        return pl.BlockSpec(shape, lambda b: (0,) * len(shape))

    return pl.pallas_call(
        kernel,
        out_shape=jax.ShapeDtypeStruct((Bp, L), jnp.float32),
        grid=(Bp // tile,),
        in_specs=[io_spec,
                  full((1, L)), full((1, L)),
                  full((L, T * 8 * H)), full((1, T * 8 * H)),
                  full((2 * H, 8 * H)),
                  full((T * 2 * H, L)), full((1, L))],
        out_specs=io_spec,
        scratch_shapes=[pltpu.VMEM((tile, T * 8 * H), jnp.float32),
                        pltpu.VMEM((tile, T * 2 * H), jnp.bfloat16)],
        compiler_params=pltpu.CompilerParams(
            dimension_semantics=("parallel",)),
    )


def resrnn_apply(x_bnt, params):
    """x_bnt: (Bb, N, T) like PyTorch ResRNN input; returns (Bb, N, T) float32."""
    gamma, beta, wih_all, b_all, whh_bd, wpf, wpr, bp = params
    Bb, N, T = x_bnt.shape
    H = 2 * N      # hidden_size = input_size * 2 (BSNet)
    G = 2 * H
    GH = 8 * H

    # Time-tiled affine / bias vectors for the lane-dense (b, t*N + n) layout.
    gamma_t = jnp.tile(gamma, (1, T))          # (1, T*N)
    beta_t = jnp.tile(beta, (1, T))
    bin_big = jnp.tile(b_all, (1, T))          # (1, T*8H)
    bout_big = jnp.tile(bp, (1, T))            # (1, T*N)

    # Block input->gate weight: kron(I, W_fwd_cols) + kron(rev, W_bwd_cols).
    # It folds both LSTM directions AND the backward time reversal into one
    # lane-dense matmul, so the kernel needs no per-step selects / flips.
    # TODO(synk): these kron'd weights scale O(T^2); fall back to a time-tiled
    # layout for long sequences.
    col = jnp.arange(GH)
    fwd_cols = (col % G) < H
    w_f = jnp.where(fwd_cols[None, :], wih_all, 0.0)
    w_b = jnp.where(fwd_cols[None, :], 0.0, wih_all)
    eye_t = jnp.eye(T, dtype=jnp.float32)
    rev_t = eye_t[::-1]
    win_big = (jnp.kron(eye_t, w_f) + jnp.kron(rev_t, w_b)).astype(jnp.bfloat16)   # (T*N, T*8H)

    # Block projection weight: fwd hidden of step u -> output time u,
    # bwd hidden of step u -> output time T-1-u.
    zpf = jnp.zeros_like(wpf)
    wpf_pad = jnp.concatenate([wpf, zpf], axis=0)     # (2H, N): rows [Wp_fwd ; 0]
    wpr_pad = jnp.concatenate([zpf, wpr], axis=0)     # (2H, N): rows [0 ; Wp_bwd]
    wout_big = (jnp.kron(eye_t, wpf_pad)
                + jnp.kron(rev_t, wpr_pad)).astype(jnp.bfloat16)                   # (T*2H, T*N)

    n_tiles, tile = _pick_tiling(Bb, T, N, H)
    Bp = n_tiles * tile

    xk = jnp.transpose(x_bnt, (0, 2, 1)).reshape(Bb, T * N).astype(jnp.float32)
    if Bp != Bb:
        xk = jnp.pad(xk, ((0, Bp - Bb), (0, 0)))      # zero rows -> finite, sliced off below

    yk = _make_resrnn_call(T, Bp, tile, N, H)(
        xk, gamma_t, beta_t, win_big, bin_big, whh_bd, wout_big, bout_big)
    yk = yk[:Bb].reshape(Bb, T, N)
    return jnp.transpose(yk, (0, 2, 1))               # back to (Bb, N, T)


def init_resrnn_params(key, N):
    """Deterministic synthetic parameters for one ResRNN(N, 2N, causal=False),
    in PyTorch-equivalent (per-direction, gate order i,f,g,o) layout."""
    H = 2 * N
    ks = jax.random.split(key, 10)
    s = 0.1
    gamma = 1.0 + s * jax.random.normal(ks[0], (1, N), jnp.float32)
    beta = s * jax.random.normal(ks[1], (1, N), jnp.float32)
    wif = s * jax.random.normal(ks[2], (N, 4 * H), jnp.float32)   # W_ih_fwd^T
    whf = s * jax.random.normal(ks[3], (H, 4 * H), jnp.float32)   # W_hh_fwd^T
    bf = s * jax.random.normal(ks[4], (1, 4 * H), jnp.float32)    # b_ih + b_hh (fwd)
    wir = s * jax.random.normal(ks[5], (N, 4 * H), jnp.float32)   # W_ih_rev^T
    whr = s * jax.random.normal(ks[6], (H, 4 * H), jnp.float32)   # W_hh_rev^T
    br = s * jax.random.normal(ks[7], (1, 4 * H), jnp.float32)    # b_ih + b_hh (rev)
    wp = s * jax.random.normal(ks[8], (2 * H, N), jnp.float32)    # proj.weight^T
    wpf, wpr = wp[:H], wp[H:]
    bp = s * jax.random.normal(ks[9], (1, N), jnp.float32)        # proj.bias
    return (gamma, beta, wif, whf, bf, wir, whr, br, wpf, wpr, bp)


def prepare_resrnn_params(raw):
    """Fuse PyTorch-layout per-direction weights into the kernel's gate-interleaved
    layout (columns [i_f,i_b | f_f,f_b | g_f,g_b | o_f,o_b]). The x2 input scale of
    the tanh-via-sigmoid identity is folded into the g-gate columns; bf16 is used
    only where an MXU consumes the tensor."""
    gamma, beta, wif, whf, bf, wir, whr, br, wpf, wpr, bp = raw
    H = whf.shape[0]
    G = 2 * H

    def interleave(a_f, a_b):
        parts = []
        for k in range(4):
            parts.append(a_f[..., k * H:(k + 1) * H])
            parts.append(a_b[..., k * H:(k + 1) * H])
        return jnp.concatenate(parts, axis=-1)

    wih_all = interleave(wif, wir)                                   # (N, 8H)
    b_all = interleave(bf, br)                                       # (1, 8H)
    zh = jnp.zeros_like(whf)
    whh_bd = jnp.concatenate([interleave(whf, zh),
                              interleave(zh, whr)], axis=0)          # (2H, 8H) block-diagonal

    col = jnp.arange(8 * H)
    g_scale = jnp.where((col >= 2 * G) & (col < 3 * G), 2.0, 1.0).astype(jnp.float32)
    wih_all = wih_all * g_scale
    b_all = b_all * g_scale
    whh_bd = (whh_bd * g_scale).astype(jnp.bfloat16)

    return (gamma.astype(jnp.float32), beta.astype(jnp.float32),
            wih_all.astype(jnp.float32), b_all.astype(jnp.float32),
            whh_bd,
            wpf.astype(jnp.float32), wpr.astype(jnp.float32),
            bp.astype(jnp.float32))


def bsnet_forward(x, band_rnn_params, band_comm_params, nband):
    """x: (B, N, T) with N = nband * feature_dim. Mirrors BSNet.forward."""
    B, N, T = x.shape
    fd = N // nband
    # band_rnn over each band's time axis
    y = x.reshape(B * nband, fd, T)
    # TODO(synk): fuse multi-layer band_rnn + the band permute/reshape glue and
    # band_comm into one pallas_call (samples packed along lanes) for large
    # configs; with num_layer=1 the glue is left to XLA/jit.
    for p in band_rnn_params:
        y = resrnn_apply(y, p)
    band_output = y.reshape(B, nband, fd, T)
    # permute(0,3,2,1).view(B*T, fd, nband) and run band_comm across bands
    z = jnp.transpose(band_output, (0, 3, 2, 1)).reshape(B * T, fd, nband)
    w = resrnn_apply(z, band_comm_params)
    out = jnp.transpose(w.reshape(B, T, fd, nband), (0, 3, 2, 1))  # (B, nband, fd, T)
    return out.reshape(B, N, T)


if __name__ == "__main__":
    # Small shapes consistent with BSNet(in_channel=56, nband=7): feature_dim=8.
    B, nband, fd, T = 2, 7, 8, 16
    N = nband * fd
    num_layer = 1

    key = jax.random.PRNGKey(0)
    kx, kb, kc = jax.random.split(key, 3)
    x = jax.random.normal(kx, (B, N, T), jnp.float32)

    band_rnn_params = [prepare_resrnn_params(
        init_resrnn_params(jax.random.fold_in(kb, i), fd)) for i in range(num_layer)]
    band_comm_params = prepare_resrnn_params(init_resrnn_params(kc, fd))

    fwd = jax.jit(bsnet_forward, static_argnums=(3,))
    out = fwd(x, band_rnn_params, band_comm_params, nband)
    out = jax.block_until_ready(out)

    assert out.shape == (B, N, T), out.shape
    assert bool(jnp.all(jnp.isfinite(out)))
    print("KERNEL_OK")
</pallas_src>

<mosaic_0001>
module attributes {stable_mosaic.version = 11 : i64} {
  func.func @_resrnn_kernel(%arg0: i32, %arg1: memref<32x56xf32, #tpu.memory_space<vmem>>, %arg2: memref<1x56xf32, #tpu.memory_space<vmem>>, %arg3: memref<1x56xf32, #tpu.memory_space<vmem>>, %arg4: memref<56x896xbf16, #tpu.memory_space<vmem>>, %arg5: memref<1x896xf32, #tpu.memory_space<vmem>>, %arg6: memref<32x128xbf16, #tpu.memory_space<vmem>>, %arg7: memref<224x56xbf16, #tpu.memory_space<vmem>>, %arg8: memref<1x56xf32, #tpu.memory_space<vmem>>, %arg9: memref<32x56xf32, #tpu.memory_space<vmem>>, %arg10: memref<32x896xf32, #tpu.memory_space<vmem>>, %arg11: memref<32x224xbf16, #tpu.memory_space<vmem>>) attributes {dimension_semantics = [#tpu.dimension_semantics<parallel>], iteration_bounds = array<i64: 1>, scalar_prefetch = 0 : i64, scratch_operands = 2 : i64, tpu.core_type = #tpu.core_type<tc>, window_params = [{transform_indices = @transform_0, window_bounds = array<i64: 32, 56>}, {pipeline_mode = #tpu.pipeline_mode<synchronous>, transform_indices = @transform_1, window_bounds = array<i64: 1, 56>}, {pipeline_mode = #tpu.pipeline_mode<synchronous>, transform_indices = @transform_2, window_bounds = array<i64: 1, 56>}, {pipeline_mode = #tpu.pipeline_mode<synchronous>, transform_indices = @transform_3, window_bounds = array<i64: 56, 896>}, {pipeline_mode = #tpu.pipeline_mode<synchronous>, transform_indices = @transform_4, window_bounds = array<i64: 1, 896>}, {pipeline_mode = #tpu.pipeline_mode<synchronous>, transform_indices = @transform_5, window_bounds = array<i64: 32, 128>}, {pipeline_mode = #tpu.pipeline_mode<synchronous>, transform_indices = @transform_6, window_bounds = array<i64: 224, 56>}, {pipeline_mode = #tpu.pipeline_mode<synchronous>, transform_indices = @transform_7, window_bounds = array<i64: 1, 56>}, {transform_indices = @transform_8, window_bounds = array<i64: 32, 56>}]} {
    %c0 = arith.constant 0 : index
    %c0_0 = arith.constant 0 : index
    %0 = vector.load %arg1[%c0, %c0_0] : memref<32x56xf32, #tpu.memory_space<vmem>>, vector<32x56xf32>
    %cst = arith.constant dense<0.000000e+00> : vector<32xf32>
    %1 = vector.multi_reduction <add>, %0, %cst [1] : vector<32x56xf32> to vector<32xf32>
    %2 = vector.shape_cast %1 : vector<32xf32> to vector<32x1xf32>
    %cst_1 = arith.constant 0.0178571437 : f32
    %3 = vector.broadcast %cst_1 : f32 to vector<32x1xf32>
    %4 = arith.mulf %2, %3 : vector<32x1xf32>
    %5 = vector.broadcast %4 : vector<32x1xf32> to vector<32x56xf32>
    %6 = arith.subf %0, %5 : vector<32x56xf32>
    %7 = arith.mulf %6, %6 : vector<32x56xf32>
    %cst_2 = arith.constant dense<0.000000e+00> : vector<32xf32>
    %8 = vector.multi_reduction <add>, %7, %cst_2 [1] : vector<32x56xf32> to vector<32xf32>
    %9 = vector.shape_cast %8 : vector<32xf32> to vector<32x1xf32>
    %cst_3 = arith.constant 0.0178571437 : f32
    %10 = vector.broadcast %cst_3 : f32 to vector<32x1xf32>
    %11 = arith.mulf %9, %10 : vector<32x1xf32>
    %cst_4 = arith.constant 1.1920929E-7 : f32
    %12 = vector.broadcast %cst_4 : f32 to vector<32x1xf32>
    %13 = arith.addf %11, %12 : vector<32x1xf32>
    %14 = math.rsqrt %13 : vector<32x1xf32>
    %15 = vector.broadcast %14 : vector<32x1xf32> to vector<32x56xf32>
    %16 = arith.mulf %6, %15 : vector<32x56xf32>
    %c0_5 = arith.constant 0 : index
    %c0_6 = arith.constant 0 : index
    %17 = vector.load %arg2[%c0_5, %c0_6] : memref<1x56xf32, #tpu.memory_space<vmem>>, vector<1x56xf32>
    %18 = vector.broadcast %17 : vector<1x56xf32> to vector<32x56xf32>
    %19 = arith.mulf %16, %18 : vector<32x56xf32>
    %c0_7 = arith.constant 0 : index
    %c0_8 = arith.constant 0 : index
    %20 = vector.load %arg3[%c0_7, %c0_8] : memref<1x56xf32, #tpu.memory_space<vmem>>, vector<1x56xf32>
    %21 = vector.broadcast %20 : vector<1x56xf32> to vector<32x56xf32>
    %22 = arith.addf %19, %21 : vector<32x56xf32>
    %23 = arith.truncf %22 : vector<32x56xf32> to vector<32x56xbf16>
    %c0_9 = arith.constant 0 : index
    %c0_10 = arith.constant 0 : index
    %24 = vector.load %arg4[%c0_9, %c0_10] : memref<56x896xbf16, #tpu.memory_space<vmem>>, vector<56x896xbf16>
    %cst_11 = arith.constant dense<0.000000e+00> : vector<32x896xf32>
    %25 = tpu.matmul %23, %24, %cst_11 {dimension_numbers = #tpu.dot_dimension_numbers<[1], [0], [0], [1], [0, 0, 1, 1], [], []>} : vector<32x56xbf16>, vector<56x896xbf16>, vector<32x896xf32> -> vector<32x896xf32>
    %c0_12 = arith.constant 0 : index
    %c0_13 = arith.constant 0 : index
    %26 = vector.load %arg5[%c0_12, %c0_13] : memref<1x896xf32, #tpu.memory_space<vmem>>, vector<1x896xf32>
    %27 = vector.broadcast %26 : vector<1x896xf32> to vector<32x896xf32>
    %28 = arith.addf %25, %27 : vector<32x896xf32>
    %c0_14 = arith.constant 0 : index
    %c0_15 = arith.constant 0 : index
    %29 = vector.load %arg10[%c0_14, %c0_15] : memref<32x896xf32, #tpu.memory_space<vmem>>, vector<32x896xf32>
    tpu.vector_store %arg10[%c0_14, %c0_15], %28 {strides = array<i32>} : memref<32x896xf32, #tpu.memory_space<vmem>>, vector<32x896xf32>,
    %c0_16 = arith.constant 0 : index
    %c0_17 = arith.constant 0 : index
    %30 = vector.load %arg6[%c0_16, %c0_17] : memref<32x128xbf16, #tpu.memory_space<vmem>>, vector<32x128xbf16>
    %cst_18 = arith.constant 0.000000e+00 : bf16
    %31 = vector.broadcast %cst_18 : bf16 to vector<32x32xbf16>
    %cst_19 = arith.constant 0.000000e+00 : f32
    %32 = vector.broadcast %cst_19 : f32 to vector<32x32xf32>
    %c0_20 = arith.constant 0 : index
    %c0_21 = arith.constant 0 : index
    %33 = vector.load %arg10[%c0_20, %c0_21] : memref<32x896xf32, #tpu.memory_space<vmem>>, vector<32x128xf32>
    %cst_22 = arith.constant dense<0.000000e+00> : vector<32x128xf32>
    %34 = tpu.matmul %31, %30, %cst_22 {dimension_numbers = #tpu.dot_dimension_numbers<[1], [0], [0], [1], [0, 0, 1, 1], [], []>} : vector<32x32xbf16>, vector<32x128xbf16>, vector<32x128xf32> -> vector<32x128xf32>
    %35 = arith.addf %33, %34 : vector<32x128xf32>
    %36 = arith.negf %35 : vector<32x128xf32>
    %37 = math.exp %36 : vector<32x128xf32>
    %cst_23 = arith.constant 1.000000e+00 : f32
    %38 = vector.broadcast %cst_23 : f32 to vector<32x128xf32>
    %39 = arith.addf %38, %37 : vector<32x128xf32>
    %40 = arith.divf %38, %39 : vector<32x128xf32>
    %41 = vector.extract_strided_slice %40 {offsets = [0, 0], sizes = [32, 32], strides = [1, 1]} : vector<32x128xf32> to vector<32x32xf32>
    %42 = vector.extract_strided_slice %40 {offsets = [0, 32], sizes = [32, 32], strides = [1, 1]} : vector<32x128xf32> to vector<32x32xf32>
    %43 = vector.extract_strided_slice %40 {offsets = [0, 64], sizes = [32, 32], strides = [1, 1]} : vector<32x128xf32> to vector<32x32xf32>
    %cst_24 = arith.constant 2.000000e+00 : f32
    %44 = vector.broadcast %cst_24 : f32 to vector<32x32xf32>
    %45 = arith.mulf %43, %44 : vector<32x32xf32>
    %cst_25 = arith.constant 1.000000e+00 : f32
    %46 = vector.broadcast %cst_25 : f32 to vector<32x32xf32>
    %47 = arith.subf %45, %46 : vector<32x32xf32>
    %48 = vector.extract_strided_slice %40 {offsets = [0, 96], sizes = [32, 32], strides = [1, 1]} : vector<32x128xf32> to vector<32x32xf32>
    %49 = arith.mulf %42, %32 : vector<32x32xf32>
    %50 = arith.mulf %41, %47 : vector<32x32xf32>
    %51 = arith.addf %49, %50 : vector<32x32xf32>
    %52 = math.tanh %51 : vector<32x32xf32>
    %53 = arith.mulf %48, %52 : vector<32x32xf32>
    %54 = arith.truncf %53 : vector<32x32xf32> to vector<32x32xbf16>
    %c0_26 = arith.constant 0 : index
    %c0_27 = arith.constant 0 : index
    %55 = vector.load %arg11[%c0_26, %c0_27] : memref<32x224xbf16, #tpu.memory_space<vmem>>, vector<32x32xbf16>
    tpu.vector_store %arg11[%c0_26, %c0_27], %54 {strides = array<i32>} : memref<32x224xbf16, #tpu.memory_space<vmem>>, vector<32x32xbf16>,
    %c0_28 = arith.constant 0 : index
    %c128 = arith.constant 128 : index
    %56 = vector.load %arg10[%c0_28, %c128] : memref<32x896xf32, #tpu.memory_space<vmem>>, vector<32x128xf32>
    %cst_29 = arith.constant dense<0.000000e+00> : vector<32x128xf32>
    %57 = tpu.matmul %54, %30, %cst_29 {dimension_numbers = #tpu.dot_dimension_numbers<[1], [0], [0], [1], [0, 0, 1, 1], [], []>} : vector<32x32xbf16>, vector<32x128xbf16>, vector<32x128xf32> -> vector<32x128xf32>
    %58 = arith.addf %56, %57 : vector<32x128xf32>
    %59 = arith.negf %58 : vector<32x128xf32>
    %60 = math.exp %59 : vector<32x128xf32>
    %cst_30 = arith.constant 1.000000e+00 : f32
    %61 = vector.broadcast %cst_30 : f32 to vector<32x128xf32>
    %62 = arith.addf %61, %60 : vector<32x128xf32>
    %63 = arith.divf %61, %62 : vector<32x128xf32>
    %64 = vector.extract_strided_slice %63 {offsets = [0, 0], sizes = [32, 32], strides = [1, 1]} : vector<32x128xf32> to vector<32x32xf32>
    %65 = vector.extract_strided_slice %63 {offsets = [0, 32], sizes = [32, 32], strides = [1, 1]} : vector<32x128xf32> to vector<32x32xf32>
    %66 = vector.extract_strided_slice %63 {offsets = [0, 64], sizes = [32, 32], strides = [1, 1]} : vector<32x128xf32> to vector<32x32xf32>
    %cst_31 = arith.constant 2.000000e+00 : f32
    %67 = vector.broadcast %cst_31 : f32 to vector<32x32xf32>
    %68 = arith.mulf %66, %67 : vector<32x32xf32>
    %cst_32 = arith.constant 1.000000e+00 : f32
    %69 = vector.broadcast %cst_32 : f32 to vector<32x32xf32>
    %70 = arith.subf %68, %69 : vector<32x32xf32>
    %71 = vector.extract_strided_slice %63 {offsets = [0, 96], sizes = [32, 32], strides = [1, 1]} : vector<32x128xf32> to vector<32x32xf32>
    %72 = arith.mulf %65, %51 : vector<32x32xf32>
    %73 = arith.mulf %64, %70 : vector<32x32xf32>
    %74 = arith.addf %72, %73 : vector<32x32xf32>
    %75 = math.tanh %74 : vector<32x32xf32>
    %76 = arith.mulf %71, %75 : vector<32x32xf32>
    %77 = arith.truncf %76 : vector<32x32xf32> to vector<32x32xbf16>
    %c0_33 = arith.constant 0 : index
    %c32 = arith.constant 32 : index
    %78 = vector.load %arg11[%c0_33, %c32] : memref<32x224xbf16, #tpu.memory_space<vmem>>, vector<32x32xbf16>
    tpu.vector_store %arg11[%c0_33, %c32], %77 {strides = array<i32>} : memref<32x224xbf16, #tpu.memory_space<vmem>>, vector<32x32xbf16>,
    %c0_34 = arith.constant 0 : index
    %c256 = arith.constant 256 : index
    %79 = vector.load %arg10[%c0_34, %c256] : memref<32x896xf32, #tpu.memory_space<vmem>>, vector<32x128xf32>
    %cst_35 = arith.constant dense<0.000000e+00> : vector<32x128xf32>
    %80 = tpu.matmul %77, %30, %cst_35 {dimension_numbers = #tpu.dot_dimension_numbers<[1], [0], [0], [1], [0, 0, 1, 1], [], []>} : vector<32x32xbf16>, vector<32x128xbf16>, vector<32x128xf32> -> vector<32x128xf32>
    %81 = arith.addf %79, %80 : vector<32x128xf32>
    %82 = arith.negf %81 : vector<32x128xf32>
    %83 = math.exp %82 : vector<32x128xf32>
    %cst_36 = arith.constant 1.000000e+00 : f32
    %84 = vector.broadcast %cst_36 : f32 to vector<32x128xf32>
    %85 = arith.addf %84, %83 : vector<32x128xf32>
    %86 = arith.divf %84, %85 : vector<32x128xf32>
    %87 = vector.extract_strided_slice %86 {offsets = [0, 0], sizes = [32, 32], strides = [1, 1]} : vector<32x128xf32> to vector<32x32xf32>
    %88 = vector.extract_strided_slice %86 {offsets = [0, 32], sizes = [32, 32], strides = [1, 1]} : vector<32x128xf32> to vector<32x32xf32>
    %89 = vector.extract_strided_slice %86 {offsets = [0, 64], sizes = [32, 32], strides = [1, 1]} : vector<32x128xf32> to vector<32x32xf32>
    %cst_37 = arith.constant 2.000000e+00 : f32
    %90 = vector.broadcast %cst_37 : f32 to vector<32x32xf32>
    %91 = arith.mulf %89, %90 : vector<32x32xf32>
    %cst_38 = arith.constant 1.000000e+00 : f32
    %92 = vector.broadcast %cst_38 : f32 to vector<32x32xf32>
    %93 = arith.subf %91, %92 : vector<32x32xf32>
    %94 = vector.extract_strided_slice %86 {offsets = [0, 96], sizes = [32, 32], strides = [1, 1]} : vector<32x128xf32> to vector<32x32xf32>
    %95 = arith.mulf %88, %74 : vector<32x32xf32>
    %96 = arith.mulf %87, %93 : vector<32x32xf32>
    %97 = arith.addf %95, %96 : vector<32x32xf32>
    %98 = math.tanh %97 : vector<32x32xf32>
    %99 = arith.mulf %94, %98 : vector<32x32xf32>
    %100 = arith.truncf %99 : vector<32x32xf32> to vector<32x32xbf16>
    %c0_39 = arith.constant 0 : index
    %c64 = arith.constant 64 : index
    %101 = vector.load %arg11[%c0_39, %c64] : memref<32x224xbf16, #tpu.memory_space<vmem>>, vector<32x32xbf16>
    tpu.vector_store %arg11[%c0_39, %c64], %100 {strides = array<i32>} : memref<32x224xbf16, #tpu.memory_space<vmem>>, vector<32x32xbf16>,
    %c0_40 = arith.constant 0 : index
    %c384 = arith.constant 384 : index
    %102 = vector.load %arg10[%c0_40, %c384] : memref<32x896xf32, #tpu.memory_space<vmem>>, vector<32x128xf32>
    %cst_41 = arith.constant dense<0.000000e+00> : vector<32x128xf32>
    %103 = tpu.matmul %100, %30, %cst_41 {dimension_numbers = #tpu.dot_dimension_numbers<[1], [0], [0], [1], [0, 0, 1, 1], [], []>} : vector<32x32xbf16>, vector<32x128xbf16>, vector<32x128xf32> -> vector<32x128xf32>
    %104 = arith.addf %102, %103 : vector<32x128xf32>
    %105 = arith.negf %104 : vector<32x128xf32>
    %106 = math.exp %105 : vector<32x128xf32>
    %cst_42 = arith.constant 1.000000e+00 : f32
    %107 = vector.broadcast %cst_42 : f32 to vector<32x128xf32>
    %108 = arith.addf %107, %106 : vector<32x128xf32>
    %109 = arith.divf %107, %108 : vector<32x128xf32>
    %110 = vector.extract_strided_slice %109 {offsets = [0, 0], sizes = [32, 32], strides = [1, 1]} : vector<32x128xf32> to vector<32x32xf32>
    %111 = vector.extract_strided_slice %109 {offsets = [0, 32], sizes = [32, 32], strides = [1, 1]} : vector<32x128xf32> to vector<32x32xf32>
    %112 = vector.extract_strided_slice %109 {offsets = [0, 64], sizes = [32, 32], strides = [1, 1]} : vector<32x128xf32> to vector<32x32xf32>
    %cst_43 = arith.constant 2.000000e+00 : f32
    %113 = vector.broadcast %cst_43 : f32 to vector<32x32xf32>
    %114 = arith.mulf %112, %113 : vector<32x32xf32>
    %cst_44 = arith.constant 1.000000e+00 : f32
    %115 = vector.broadcast %cst_44 : f32 to vector<32x32xf32>
    %116 = arith.subf %114, %115 : vector<32x32xf32>
    %117 = vector.extract_strided_slice %109 {offsets = [0, 96], sizes = [32, 32], strides = [1, 1]} : vector<32x128xf32> to vector<32x32xf32>
    %118 = arith.mulf %111, %97 : vector<32x32xf32>
    %119 = arith.mulf %110, %116 : vector<32x32xf32>
    %120 = arith.addf %118, %119 : vector<32x32xf32>
    %121 = math.tanh %120 : vector<32x32xf32>
    %122 = arith.mulf %117, %121 : vector<32x32xf32>
    %123 = arith.truncf %122 : vector<32x32xf32> to vector<32x32xbf16>
    %c0_45 = arith.constant 0 : index
    %c96 = arith.constant 96 : index
    %124 = vector.load %arg11[%c0_45, %c96] : memref<32x224xbf16, #tpu.memory_space<vmem>>, vector<32x32xbf16>
    tpu.vector_store %arg11[%c0_45, %c96], %123 {strides = array<i32>} : memref<32x224xbf16, #tpu.memory_space<vmem>>, vector<32x32xbf16>,
    %c0_46 = arith.constant 0 : index
    %c512 = arith.constant 512 : index
    %125 = vector.load %arg10[%c0_46, %c512] : memref<32x896xf32, #tpu.memory_space<vmem>>, vector<32x128xf32>
    %cst_47 = arith.constant dense<0.000000e+00> : vector<32x128xf32>
    %126 = tpu.matmul %123, %30, %cst_47 {dimension_numbers = #tpu.dot_dimension_numbers<[1], [0], [0], [1], [0, 0, 1, 1], [], []>} : vector<32x32xbf16>, vector<32x128xbf16>, vector<32x128xf32> -> vector<32x128xf32>
    %127 = arith.addf %125, %126 : vector<32x128xf32>
    %128 = arith.negf %127 : vector<32x128xf32>
    %129 = math.exp %128 : vector<32x128xf32>
    %cst_48 = arith.constant 1.000000e+00 : f32
    %130 = vector.broadcast %cst_48 : f32 to vector<32x128xf32>
    %131 = arith.addf %130, %129 : vector<32x128xf32>
    %132 = arith.divf %130, %131 : vector<32x128xf32>
    %133 = vector.extract_strided_slice %132 {offsets = [0, 0], sizes = [32, 32], strides = [1, 1]} : vector<32x128xf32> to vector<32x32xf32>
    %134 = vector.extract_strided_slice %132 {offsets = [0, 32], sizes = [32, 32], strides = [1, 1]} : vector<32x128xf32> to vector<32x32xf32>
    %135 = vector.extract_strided_slice %132 {offsets = [0, 64], sizes = [32, 32], strides = [1, 1]} : vector<32x128xf32> to vector<32x32xf32>
    %cst_49 = arith.constant 2.000000e+00 : f32
    %136 = vector.broadcast %cst_49 : f32 to vector<32x32xf32>
    %137 = arith.mulf %135, %136 : vector<32x32xf32>
    %cst_50 = arith.constant 1.000000e+00 : f32
    %138 = vector.broadcast %cst_50 : f32 to vector<32x32xf32>
    %139 = arith.subf %137, %138 : vector<32x32xf32>
    %140 = vector.extract_strided_slice %132 {offsets = [0, 96], sizes = [32, 32], strides = [1, 1]} : vector<32x128xf32> to vector<32x32xf32>
    %141 = arith.mulf %134, %120 : vector<32x32xf32>
    %142 = arith.mulf %133, %139 : vector<32x32xf32>
    %143 = arith.addf %141, %142 : vector<32x32xf32>
    %144 = math.tanh %143 : vector<32x32xf32>
    %145 = arith.mulf %140, %144 : vector<32x32xf32>
    %146 = arith.truncf %145 : vector<32x32xf32> to vector<32x32xbf16>
    %c0_51 = arith.constant 0 : index
    %c128_52 = arith.constant 128 : index
    %147 = vector.load %arg11[%c0_51, %c128_52] : memref<32x224xbf16, #tpu.memory_space<vmem>>, vector<32x32xbf16>
    tpu.vector_store %arg11[%c0_51, %c128_52], %146 {strides = array<i32>} : memref<32x224xbf16, #tpu.memory_space<vmem>>, vector<32x32xbf16>,
    %c0_53 = arith.constant 0 : index
    %c640 = arith.constant 640 : index
    %148 = vector.load %arg10[%c0_53, %c640] : memref<32x896xf32, #tpu.memory_space<vmem>>, vector<32x128xf32>
    %cst_54 = arith.constant dense<0.000000e+00> : vector<32x128xf32>
    %149 = tpu.matmul %146, %30, %cst_54 {dimension_numbers = #tpu.dot_dimension_numbers<[1], [0], [0], [1], [0, 0, 1, 1], [], []>} : vector<32x32xbf16>, vector<32x128xbf16>, vector<32x128xf32> -> vector<32x128xf32>
    %150 = arith.addf %148, %149 : vector<32x128xf32>
    %151 = arith.negf %150 : vector<32x128xf32>
    %152 = math.exp %151 : vector<32x128xf32>
    %cst_55 = arith.constant 1.000000e+00 : f32
    %153 = vector.broadcast %cst_55 : f32 to vector<32x128xf32>
    %154 = arith.addf %153, %152 : vector<32x128xf32>
    %155 = arith.divf %153, %154 : vector<32x128xf32>
    %156 = vector.extract_strided_slice %155 {offsets = [0, 0], sizes = [32, 32], strides = [1, 1]} : vector<32x128xf32> to vector<32x32xf32>
    %157 = vector.extract_strided_slice %155 {offsets = [0, 32], sizes = [32, 32], strides = [1, 1]} : vector<32x128xf32> to vector<32x32xf32>
    %158 = vector.extract_strided_slice %155 {offsets = [0, 64], sizes = [32, 32], strides = [1, 1]} : vector<32x128xf32> to vector<32x32xf32>
    %cst_56 = arith.constant 2.000000e+00 : f32
    %159 = vector.broadcast %cst_56 : f32 to vector<32x32xf32>
    %160 = arith.mulf %158, %159 : vector<32x32xf32>
    %cst_57 = arith.constant 1.000000e+00 : f32
    %161 = vector.broadcast %cst_57 : f32 to vector<32x32xf32>
    %162 = arith.subf %160, %161 : vector<32x32xf32>
    %163 = vector.extract_strided_slice %155 {offsets = [0, 96], sizes = [32, 32], strides = [1, 1]} : vector<32x128xf32> to vector<32x32xf32>
    %164 = arith.mulf %157, %143 : vector<32x32xf32>
    %165 = arith.mulf %156, %162 : vector<32x32xf32>
    %166 = arith.addf %164, %165 : vector<32x32xf32>
    %167 = math.tanh %166 : vector<32x32xf32>
    %168 = arith.mulf %163, %167 : vector<32x32xf32>
    %169 = arith.truncf %168 : vector<32x32xf32> to vector<32x32xbf16>
    %c0_58 = arith.constant 0 : index
    %c160 = arith.constant 160 : index
    %170 = vector.load %arg11[%c0_58, %c160] : memref<32x224xbf16, #tpu.memory_space<vmem>>, vector<32x32xbf16>
    tpu.vector_store %arg11[%c0_58, %c160], %169 {strides = array<i32>} : memref<32x224xbf16, #tpu.memory_space<vmem>>, vector<32x32xbf16>,
    %c0_59 = arith.constant 0 : index
    %c768 = arith.constant 768 : index
    %171 = vector.load %arg10[%c0_59, %c768] : memref<32x896xf32, #tpu.memory_space<vmem>>, vector<32x128xf32>
    %cst_60 = arith.constant dense<0.000000e+00> : vector<32x128xf32>
    %172 = tpu.matmul %169, %30, %cst_60 {dimension_numbers = #tpu.dot_dimension_numbers<[1], [0], [0], [1], [0, 0, 1, 1], [], []>} : vector<32x32xbf16>, vector<32x128xbf16>, vector<32x128xf32> -> vector<32x128xf32>
    %173 = arith.addf %171, %172 : vector<32x128xf32>
    %174 = arith.negf %173 : vector<32x128xf32>
    %175 = math.exp %174 : vector<32x128xf32>
    %cst_61 = arith.constant 1.000000e+00 : f32
    %176 = vector.broadcast %cst_61 : f32 to vector<32x128xf32>
    %177 = arith.addf %176, %175 : vector<32x128xf32>
    %178 = arith.divf %176, %177 : vector<32x128xf32>
    %179 = vector.extract_strided_slice %178 {offsets = [0, 0], sizes = [32, 32], strides = [1, 1]} : vector<32x128xf32> to vector<32x32xf32>
    %180 = vector.extract_strided_slice %178 {offsets = [0, 32], sizes = [32, 32], strides = [1, 1]} : vector<32x128xf32> to vector<32x32xf32>
    %181 = vector.extract_strided_slice %178 {offsets = [0, 64], sizes = [32, 32], strides = [1, 1]} : vector<32x128xf32> to vector<32x32xf32>
    %cst_62 = arith.constant 2.000000e+00 : f32
    %182 = vector.broadcast %cst_62 : f32 to vector<32x32xf32>
    %183 = arith.mulf %181, %182 : vector<32x32xf32>
    %cst_63 = arith.constant 1.000000e+00 : f32
    %184 = vector.broadcast %cst_63 : f32 to vector<32x32xf32>
    %185 = arith.subf %183, %184 : vector<32x32xf32>
    %186 = vector.extract_strided_slice %178 {offsets = [0, 96], sizes = [32, 32], strides = [1, 1]} : vector<32x128xf32> to vector<32x32xf32>
    %187 = arith.mulf %180, %166 : vector<32x32xf32>
    %188 = arith.mulf %179, %185 : vector<32x32xf32>
    %189 = arith.addf %187, %188 : vector<32x32xf32>
    %190 = math.tanh %189 : vector<32x32xf32>
    %191 = arith.mulf %186, %190 : vector<32x32xf32>
    %192 = arith.truncf %191 : vector<32x32xf32> to vector<32x32xbf16>
    %c0_64 = arith.constant 0 : index
    %c192 = arith.constant 192 : index
    %193 = vector.load %arg11[%c0_64, %c192] : memref<32x224xbf16, #tpu.memory_space<vmem>>, vector<32x32xbf16>
    tpu.vector_store %arg11[%c0_64, %c192], %192 {strides = array<i32>} : memref<32x224xbf16, #tpu.memory_space<vmem>>, vector<32x32xbf16>,
    %c0_65 = arith.constant 0 : index
    %c0_66 = arith.constant 0 : index
    %194 = vector.load %arg11[%c0_65, %c0_66] : memref<32x224xbf16, #tpu.memory_space<vmem>>, vector<32x224xbf16>
    %c0_67 = arith.constant 0 : index
    %c0_68 = arith.constant 0 : index
    %195 = vector.load %arg7[%c0_67, %c0_68] : memref<224x56xbf16, #tpu.memory_space<vmem>>, vector<224x56xbf16>
    %cst_69 = arith.constant dense<0.000000e+00> : vector<32x56xf32>
    %196 = tpu.matmul %194, %195, %cst_69 {dimension_numbers = #tpu.dot_dimension_numbers<[1], [0], [0], [1], [0, 0, 1, 1], [], []>} : vector<32x224xbf16>, vector<224x56xbf16>, vector<32x56xf32> -> vector<32x56xf32>
    %c0_70 = arith.constant 0 : index
    %c0_71 = arith.constant 0 : index
    %197 = vector.load %arg8[%c0_70, %c0_71] : memref<1x56xf32, #tpu.memory_space<vmem>>, vector<1x56xf32>
    %198 = vector.broadcast %197 : vector<1x56xf32> to vector<32x56xf32>
    %199 = arith.addf %196, %198 : vector<32x56xf32>
    %c0_72 = arith.constant 0 : index
    %c0_73 = arith.constant 0 : index
    %200 = vector.load %arg1[%c0_72, %c0_73] : memref<32x56xf32, #tpu.memory_space<vmem>>, vector<32x56xf32>
    %201 = arith.addf %199, %200 : vector<32x56xf32>
    %c0_74 = arith.constant 0 : index
    %c0_75 = arith.constant 0 : index
    %202 = vector.load %arg9[%c0_74, %c0_75] : memref<32x56xf32, #tpu.memory_space<vmem>>, vector<32x56xf32>
    tpu.vector_store %arg9[%c0_74, %c0_75], %201 {strides = array<i32>} : memref<32x56xf32, #tpu.memory_space<vmem>>, vector<32x56xf32>,
    return
  }
  func.func @transform_0(%arg0: i32) -> (i32, i32) {
    %c0_i32 = arith.constant 0 : i32
    %c0_i32_0 = arith.constant 0 : i32
    return %arg0, %c0_i32 : i32, i32
  }
  func.func @transform_1(%arg0: i32) -> (i32, i32) {
    %c0_i32 = arith.constant 0 : i32
    %c0_i32_0 = arith.constant 0 : i32
    %c0_i32_1 = arith.constant 0 : i32
    return %c0_i32, %c0_i32_0 : i32, i32
  }
  func.func @transform_2(%arg0: i32) -> (i32, i32) {
    %c0_i32 = arith.constant 0 : i32
    %c0_i32_0 = arith.constant 0 : i32
    %c0_i32_1 = arith.constant 0 : i32
    return %c0_i32, %c0_i32_0 : i32, i32
  }
  func.func @transform_3(%arg0: i32) -> (i32, i32) {
    %c0_i32 = arith.constant 0 : i32
    %c0_i32_0 = arith.constant 0 : i32
    %c0_i32_1 = arith.constant 0 : i32
    return %c0_i32, %c0_i32_0 : i32, i32
  }
  func.func @transform_4(%arg0: i32) -> (i32, i32) {
    %c0_i32 = arith.constant 0 : i32
    %c0_i32_0 = arith.constant 0 : i32
    %c0_i32_1 = arith.constant 0 : i32
    return %c0_i32, %c0_i32_0 : i32, i32
  }
  func.func @transform_5(%arg0: i32) -> (i32, i32) {
    %c0_i32 = arith.constant 0 : i32
    %c0_i32_0 = arith.constant 0 : i32
    %c0_i32_1 = arith.constant 0 : i32
    return %c0_i32, %c0_i32_0 : i32, i32
  }
  func.func @transform_6(%arg0: i32) -> (i32, i32) {
    %c0_i32 = arith.constant 0 : i32
    %c0_i32_0 = arith.constant 0 : i32
    %c0_i32_1 = arith.constant 0 : i32
    return %c0_i32, %c0_i32_0 : i32, i32
  }
  func.func @transform_7(%arg0: i32) -> (i32, i32) {
    %c0_i32 = arith.constant 0 : i32
    %c0_i32_0 = arith.constant 0 : i32
    %c0_i32_1 = arith.constant 0 : i32
    return %c0_i32, %c0_i32_0 : i32, i32
  }
  func.func @transform_8(%arg0: i32) -> (i32, i32) {
    %c0_i32 = arith.constant 0 : i32
    %c0_i32_0 = arith.constant 0 : i32
    return %arg0, %c0_i32 : i32, i32
  }
}

module attributes {stable_mosaic.version = 11 : i64} {
  func.func @_resrnn_kernel(%arg0: i32, %arg1: memref<14x128xf32, #tpu.memory_space<vmem>>, %arg2: memref<1x128xf32, #tpu.memory_space<vmem>>, %arg3: memref<1x128xf32, #tpu.memory_space<vmem>>, %arg4: memref<128x2048xbf16, #tpu.memory_space<vmem>>, %arg5: memref<1x2048xf32, #tpu.memory_space<vmem>>, %arg6: memref<32x128xbf16, #tpu.memory_space<vmem>>, %arg7: memref<512x128xbf16, #tpu.memory_space<vmem>>, %arg8: memref<1x128xf32, #tpu.memory_space<vmem>>, %arg9: memref<14x128xf32, #tpu.memory_space<vmem>>, %arg10: memref<14x2048xf32, #tpu.memory_space<vmem>>, %arg11: memref<14x512xbf16, #tpu.memory_space<vmem>>) attributes {dimension_semantics = [#tpu.dimension_semantics<parallel>], iteration_bounds = array<i64: 1>, scalar_prefetch = 0 : i64, scratch_operands = 2 : i64, tpu.core_type = #tpu.core_type<tc>, window_params = [{transform_indices = @transform_0, window_bounds = array<i64: 14, 128>}, {pipeline_mode = #tpu.pipeline_mode<synchronous>, transform_indices = @transform_1, window_bounds = array<i64: 1, 128>}, {pipeline_mode = #tpu.pipeline_mode<synchronous>, transform_indices = @transform_2, window_bounds = array<i64: 1, 128>}, {pipeline_mode = #tpu.pipeline_mode<synchronous>, transform_indices = @transform_3, window_bounds = array<i64: 128, 2048>}, {pipeline_mode = #tpu.pipeline_mode<synchronous>, transform_indices = @transform_4, window_bounds = array<i64: 1, 2048>}, {pipeline_mode = #tpu.pipeline_mode<synchronous>, transform_indices = @transform_5, window_bounds = array<i64: 32, 128>}, {pipeline_mode = #tpu.pipeline_mode<synchronous>, transform_indices = @transform_6, window_bounds = array<i64: 512, 128>}, {pipeline_mode = #tpu.pipeline_mode<synchronous>, transform_indices = @transform_7, window_bounds = array<i64: 1, 128>}, {transform_indices = @transform_8, window_bounds = array<i64: 14, 128>}]} {
    %c0 = arith.constant 0 : index
    %c0_0 = arith.constant 0 : index
    %0 = vector.load %arg1[%c0, %c0_0] : memref<14x128xf32, #tpu.memory_space<vmem>>, vector<14x128xf32>
    %cst = arith.constant dense<0.000000e+00> : vector<14xf32>
    %1 = vector.multi_reduction <add>, %0, %cst [1] : vector<14x128xf32> to vector<14xf32>
    %2 = vector.shape_cast %1 : vector<14xf32> to vector<14x1xf32>
    %cst_1 = arith.constant 7.812500e-03 : f32
    %3 = vector.broadcast %cst_1 : f32 to vector<14x1xf32>
    %4 = arith.mulf %2, %3 : vector<14x1xf32>
    %5 = vector.broadcast %4 : vector<14x1xf32> to vector<14x128xf32>
    %6 = arith.subf %0, %5 : vector<14x128xf32>
    %7 = arith.mulf %6, %6 : vector<14x128xf32>
    %cst_2 = arith.constant dense<0.000000e+00> : vector<14xf32>
    %8 = vector.multi_reduction <add>, %7, %cst_2 [1] : vector<14x128xf32> to vector<14xf32>
    %9 = vector.shape_cast %8 : vector<14xf32> to vector<14x1xf32>
    %cst_3 = arith.constant 7.812500e-03 : f32
    %10 = vector.broadcast %cst_3 : f32 to vector<14x1xf32>
    %11 = arith.mulf %9, %10 : vector<14x1xf32>
    %cst_4 = arith.constant 1.1920929E-7 : f32
    %12 = vector.broadcast %cst_4 : f32 to vector<14x1xf32>
    %13 = arith.addf %11, %12 : vector<14x1xf32>
    %14 = math.rsqrt %13 : vector<14x1xf32>
    %15 = vector.broadcast %14 : vector<14x1xf32> to vector<14x128xf32>
    %16 = arith.mulf %6, %15 : vector<14x128xf32>
    %c0_5 = arith.constant 0 : index
    %c0_6 = arith.constant 0 : index
    %17 = vector.load %arg2[%c0_5, %c0_6] : memref<1x128xf32, #tpu.memory_space<vmem>>, vector<1x128xf32>
    %18 = vector.broadcast %17 : vector<1x128xf32> to vector<14x128xf32>
    %19 = arith.mulf %16, %18 : vector<14x128xf32>
    %c0_7 = arith.constant 0 : index
    %c0_8 = arith.constant 0 : index
    %20 = vector.load %arg3[%c0_7, %c0_8] : memref<1x128xf32, #tpu.memory_space<vmem>>, vector<1x128xf32>
    %21 = vector.broadcast %20 : vector<1x128xf32> to vector<14x128xf32>
    %22 = arith.addf %19, %21 : vector<14x128xf32>
    %23 = arith.truncf %22 : vector<14x128xf32> to vector<14x128xbf16>
    %c0_9 = arith.constant 0 : index
    %c0_10 = arith.constant 0 : index
    %24 = vector.load %arg4[%c0_9, %c0_10] : memref<128x2048xbf16, #tpu.memory_space<vmem>>, vector<128x2048xbf16>
    %cst_11 = arith.constant dense<0.000000e+00> : vector<14x2048xf32>
    %25 = tpu.matmul %23, %24, %cst_11 {dimension_numbers = #tpu.dot_dimension_numbers<[1], [0], [0], [1], [0, 0, 1, 1], [], []>} : vector<14x128xbf16>, vector<128x2048xbf16>, vector<14x2048xf32> -> vector<14x2048xf32>
    %c0_12 = arith.constant 0 : index
    %c0_13 = arith.constant 0 : index
    %26 = vector.load %arg5[%c0_12, %c0_13] : memref<1x2048xf32, #tpu.memory_space<vmem>>, vector<1x2048xf32>
    %27 = vector.broadcast %26 : vector<1x2048xf32> to vector<14x2048xf32>
    %28 = arith.addf %25, %27 : vector<14x2048xf32>
    %c0_14 = arith.constant 0 : index
    %c0_15 = arith.constant 0 : index
    %29 = vector.load %arg10[%c0_14, %c0_15] : memref<14x2048xf32, #tpu.memory_space<vmem>>, vector<14x2048xf32>
    tpu.vector_store %arg10[%c0_14, %c0_15], %28 {strides = array<i32>} : memref<14x2048xf32, #tpu.memory_space<vmem>>, vector<14x2048xf32>,
    %c0_16 = arith.constant 0 : index
    %c0_17 = arith.constant 0 : index
    %30 = vector.load %arg6[%c0_16, %c0_17] : memref<32x128xbf16, #tpu.memory_space<vmem>>, vector<32x128xbf16>
    %cst_18 = arith.constant 0.000000e+00 : bf16
    %31 = vector.broadcast %cst_18 : bf16 to vector<14x32xbf16>
    %cst_19 = arith.constant 0.000000e+00 : f32
    %32 = vector.broadcast %cst_19 : f32 to vector<14x32xf32>
    %c0_20 = arith.constant 0 : index
    %c0_21 = arith.constant 0 : index
    %33 = vector.load %arg10[%c0_20, %c0_21] : memref<14x2048xf32, #tpu.memory_space<vmem>>, vector<14x128xf32>
    %cst_22 = arith.constant dense<0.000000e+00> : vector<14x128xf32>
    %34 = tpu.matmul %31, %30, %cst_22 {dimension_numbers = #tpu.dot_dimension_numbers<[1], [0], [0], [1], [0, 0, 1, 1], [], []>} : vector<14x32xbf16>, vector<32x128xbf16>, vector<14x128xf32> -> vector<14x128xf32>
    %35 = arith.addf %33, %34 : vector<14x128xf32>
    %36 = arith.negf %35 : vector<14x128xf32>
    %37 = math.exp %36 : vector<14x128xf32>
    %cst_23 = arith.constant 1.000000e+00 : f32
    %38 = vector.broadcast %cst_23 : f32 to vector<14x128xf32>
    %39 = arith.addf %38, %37 : vector<14x128xf32>
    %40 = arith.divf %38, %39 : vector<14x128xf32>
    %41 = vector.extract_strided_slice %40 {offsets = [0, 0], sizes = [14, 32], strides = [1, 1]} : vector<14x128xf32> to vector<14x32xf32>
    %42 = vector.extract_strided_slice %40 {offsets = [0, 32], sizes = [14, 32], strides = [1, 1]} : vector<14x128xf32> to vector<14x32xf32>
    %43 = vector.extract_strided_slice %40 {offsets = [0, 64], sizes = [14, 32], strides = [1, 1]} : vector<14x128xf32> to vector<14x32xf32>
    %cst_24 = arith.constant 2.000000e+00 : f32
    %44 = vector.broadcast %cst_24 : f32 to vector<14x32xf32>
    %45 = arith.mulf %43, %44 : vector<14x32xf32>
    %cst_25 = arith.constant 1.000000e+00 : f32
    %46 = vector.broadcast %cst_25 : f32 to vector<14x32xf32>
    %47 = arith.subf %45, %46 : vector<14x32xf32>
    %48 = vector.extract_strided_slice %40 {offsets = [0, 96], sizes = [14, 32], strides = [1, 1]} : vector<14x128xf32> to vector<14x32xf32>
    %49 = arith.mulf %42, %32 : vector<14x32xf32>
    %50 = arith.mulf %41, %47 : vector<14x32xf32>
    %51 = arith.addf %49, %50 : vector<14x32xf32>
    %52 = math.tanh %51 : vector<14x32xf32>
    %53 = arith.mulf %48, %52 : vector<14x32xf32>
    %54 = arith.truncf %53 : vector<14x32xf32> to vector<14x32xbf16>
    %c0_26 = arith.constant 0 : index
    %c0_27 = arith.constant 0 : index
    %55 = vector.load %arg11[%c0_26, %c0_27] : memref<14x512xbf16, #tpu.memory_space<vmem>>, vector<14x32xbf16>
    tpu.vector_store %arg11[%c0_26, %c0_27], %54 {strides = array<i32>} : memref<14x512xbf16, #tpu.memory_space<vmem>>, vector<14x32xbf16>,
    %c0_28 = arith.constant 0 : index
    %c128 = arith.constant 128 : index
    %56 = vector.load %arg10[%c0_28, %c128] : memref<14x2048xf32, #tpu.memory_space<vmem>>, vector<14x128xf32>
    %cst_29 = arith.constant dense<0.000000e+00> : vector<14x128xf32>
    %57 = tpu.matmul %54, %30, %cst_29 {dimension_numbers = #tpu.dot_dimension_numbers<[1], [0], [0], [1], [0, 0, 1, 1], [], []>} : vector<14x32xbf16>, vector<32x128xbf16>, vector<14x128xf32> -> vector<14x128xf32>
    %58 = arith.addf %56, %57 : vector<14x128xf32>
    %59 = arith.negf %58 : vector<14x128xf32>
    %60 = math.exp %59 : vector<14x128xf32>
    %cst_30 = arith.constant 1.000000e+00 : f32
    %61 = vector.broadcast %cst_30 : f32 to vector<14x128xf32>
    %62 = arith.addf %61, %60 : vector<14x128xf32>
    %63 = arith.divf %61, %62 : vector<14x128xf32>
    %64 = vector.extract_strided_slice %63 {offsets = [0, 0], sizes = [14, 32], strides = [1, 1]} : vector<14x128xf32> to vector<14x32xf32>
    %65 = vector.extract_strided_slice %63 {offsets = [0, 32], sizes = [14, 32], strides = [1, 1]} : vector<14x128xf32> to vector<14x32xf32>
    %66 = vector.extract_strided_slice %63 {offsets = [0, 64], sizes = [14, 32], strides = [1, 1]} : vector<14x128xf32> to vector<14x32xf32>
    %cst_31 = arith.constant 2.000000e+00 : f32
    %67 = vector.broadcast %cst_31 : f32 to vector<14x32xf32>
    %68 = arith.mulf %66, %67 : vector<14x32xf32>
    %cst_32 = arith.constant 1.000000e+00 : f32
    %69 = vector.broadcast %cst_32 : f32 to vector<14x32xf32>
    %70 = arith.subf %68, %69 : vector<14x32xf32>
    %71 = vector.extract_strided_slice %63 {offsets = [0, 96], sizes = [14, 32], strides = [1, 1]} : vector<14x128xf32> to vector<14x32xf32>
    %72 = arith.mulf %65, %51 : vector<14x32xf32>
    %73 = arith.mulf %64, %70 : vector<14x32xf32>
    %74 = arith.addf %72, %73 : vector<14x32xf32>
    %75 = math.tanh %74 : vector<14x32xf32>
    %76 = arith.mulf %71, %75 : vector<14x32xf32>
    %77 = arith.truncf %76 : vector<14x32xf32> to vector<14x32xbf16>
    %c0_33 = arith.constant 0 : index
    %c32 = arith.constant 32 : index
    %78 = vector.load %arg11[%c0_33, %c32] : memref<14x512xbf16, #tpu.memory_space<vmem>>, vector<14x32xbf16>
    tpu.vector_store %arg11[%c0_33, %c32], %77 {strides = array<i32>} : memref<14x512xbf16, #tpu.memory_space<vmem>>, vector<14x32xbf16>,
    %c0_34 = arith.constant 0 : index
    %c256 = arith.constant 256 : index
    %79 = vector.load %arg10[%c0_34, %c256] : memref<14x2048xf32, #tpu.memory_space<vmem>>, vector<14x128xf32>
    %cst_35 = arith.constant dense<0.000000e+00> : vector<14x128xf32>
    %80 = tpu.matmul %77, %30, %cst_35 {dimension_numbers = #tpu.dot_dimension_numbers<[1], [0], [0], [1], [0, 0, 1, 1], [], []>} : vector<14x32xbf16>, vector<32x128xbf16>, vector<14x128xf32> -> vector<14x128xf32>
    %81 = arith.addf %79, %80 : vector<14x128xf32>
    %82 = arith.negf %81 : vector<14x128xf32>
    %83 = math.exp %82 : vector<14x128xf32>
    %cst_36 = arith.constant 1.000000e+00 : f32
    %84 = vector.broadcast %cst_36 : f32 to vector<14x128xf32>
    %85 = arith.addf %84, %83 : vector<14x128xf32>
    %86 = arith.divf %84, %85 : vector<14x128xf32>
    %87 = vector.extract_strided_slice %86 {offsets = [0, 0], sizes = [14, 32], strides = [1, 1]} : vector<14x128xf32> to vector<14x32xf32>
    %88 = vector.extract_strided_slice %86 {offsets = [0, 32], sizes = [14, 32], strides = [1, 1]} : vector<14x128xf32> to vector<14x32xf32>
    %89 = vector.extract_strided_slice %86 {offsets = [0, 64], sizes = [14, 32], strides = [1, 1]} : vector<14x128xf32> to vector<14x32xf32>
    %cst_37 = arith.constant 2.000000e+00 : f32
    %90 = vector.broadcast %cst_37 : f32 to vector<14x32xf32>
    %91 = arith.mulf %89, %90 : vector<14x32xf32>
    %cst_38 = arith.constant 1.000000e+00 : f32
    %92 = vector.broadcast %cst_38 : f32 to vector<14x32xf32>
    %93 = arith.subf %91, %92 : vector<14x32xf32>
    %94 = vector.extract_strided_slice %86 {offsets = [0, 96], sizes = [14, 32], strides = [1, 1]} : vector<14x128xf32> to vector<14x32xf32>
    %95 = arith.mulf %88, %74 : vector<14x32xf32>
    %96 = arith.mulf %87, %93 : vector<14x32xf32>
    %97 = arith.addf %95, %96 : vector<14x32xf32>
    %98 = math.tanh %97 : vector<14x32xf32>
    %99 = arith.mulf %94, %98 : vector<14x32xf32>
    %100 = arith.truncf %99 : vector<14x32xf32> to vector<14x32xbf16>
    %c0_39 = arith.constant 0 : index
    %c64 = arith.constant 64 : index
    %101 = vector.load %arg11[%c0_39, %c64] : memref<14x512xbf16, #tpu.memory_space<vmem>>, vector<14x32xbf16>
    tpu.vector_store %arg11[%c0_39, %c64], %100 {strides = array<i32>} : memref<14x512xbf16, #tpu.memory_space<vmem>>, vector<14x32xbf16>,
    %c0_40 = arith.constant 0 : index
    %c384 = arith.constant 384 : index
    %102 = vector.load %arg10[%c0_40, %c384] : memref<14x2048xf32, #tpu.memory_space<vmem>>, vector<14x128xf32>
    %cst_41 = arith.constant dense<0.000000e+00> : vector<14x128xf32>
    %103 = tpu.matmul %100, %30, %cst_41 {dimension_numbers = #tpu.dot_dimension_numbers<[1], [0], [0], [1], [0, 0, 1, 1], [], []>} : vector<14x32xbf16>, vector<32x128xbf16>, vector<14x128xf32> -> vector<14x128xf32>
    %104 = arith.addf %102, %103 : vector<14x128xf32>
    %105 = arith.negf %104 : vector<14x128xf32>
    %106 = math.exp %105 : vector<14x128xf32>
    %cst_42 = arith.constant 1.000000e+00 : f32
    %107 = vector.broadcast %cst_42 : f32 to vector<14x128xf32>
    %108 = arith.addf %107, %106 : vector<14x128xf32>
    %109 = arith.divf %107, %108 : vector<14x128xf32>
    %110 = vector.extract_strided_slice %109 {offsets = [0, 0], sizes = [14, 32], strides = [1, 1]} : vector<14x128xf32> to vector<14x32xf32>
    %111 = vector.extract_strided_slice %109 {offsets = [0, 32], sizes = [14, 32], strides = [1, 1]} : vector<14x128xf32> to vector<14x32xf32>
    %112 = vector.extract_strided_slice %109 {offsets = [0, 64], sizes = [14, 32], strides = [1, 1]} : vector<14x128xf32> to vector<14x32xf32>
    %cst_43 = arith.constant 2.000000e+00 : f32
    %113 = vector.broadcast %cst_43 : f32 to vector<14x32xf32>
    %114 = arith.mulf %112, %113 : vector<14x32xf32>
    %cst_44 = arith.constant 1.000000e+00 : f32
    %115 = vector.broadcast %cst_44 : f32 to vector<14x32xf32>
    %116 = arith.subf %114, %115 : vector<14x32xf32>
    %117 = vector.extract_strided_slice %109 {offsets = [0, 96], sizes = [14, 32], strides = [1, 1]} : vector<14x128xf32> to vector<14x32xf32>
    %118 = arith.mulf %111, %97 : vector<14x32xf32>
    %119 = arith.mulf %110, %116 : vector<14x32xf32>
    %120 = arith.addf %118, %119 : vector<14x32xf32>
    %121 = math.tanh %120 : vector<14x32xf32>
    %122 = arith.mulf %117, %121 : vector<14x32xf32>
    %123 = arith.truncf %122 : vector<14x32xf32> to vector<14x32xbf16>
    %c0_45 = arith.constant 0 : index
    %c96 = arith.constant 96 : index
    %124 = vector.load %arg11[%c0_45, %c96] : memref<14x512xbf16, #tpu.memory_space<vmem>>, vector<14x32xbf16>
    tpu.vector_store %arg11[%c0_45, %c96], %123 {strides = array<i32>} : memref<14x512xbf16, #tpu.memory_space<vmem>>, vector<14x32xbf16>,
    %c0_46 = arith.constant 0 : index
    %c512 = arith.constant 512 : index
    %125 = vector.load %arg10[%c0_46, %c512] : memref<14x2048xf32, #tpu.memory_space<vmem>>, vector<14x128xf32>
    %cst_47 = arith.constant dense<0.000000e+00> : vector<14x128xf32>
    %126 = tpu.matmul %123, %30, %cst_47 {dimension_numbers = #tpu.dot_dimension_numbers<[1], [0], [0], [1], [0, 0, 1, 1], [], []>} : vector<14x32xbf16>, vector<32x128xbf16>, vector<14x128xf32> -> vector<14x128xf32>
    %127 = arith.addf %125, %126 : vector<14x128xf32>
    %128 = arith.negf %127 : vector<14x128xf32>
    %129 = math.exp %128 : vector<14x128xf32>
    %cst_48 = arith.constant 1.000000e+00 : f32
    %130 = vector.broadcast %cst_48 : f32 to vector<14x128xf32>
    %131 = arith.addf %130, %129 : vector<14x128xf32>
    %132 = arith.divf %130, %131 : vector<14x128xf32>
    %133 = vector.extract_strided_slice %132 {offsets = [0, 0], sizes = [14, 32], strides = [1, 1]} : vector<14x128xf32> to vector<14x32xf32>
    %134 = vector.extract_strided_slice %132 {offsets = [0, 32], sizes = [14, 32], strides = [1, 1]} : vector<14x128xf32> to vector<14x32xf32>
    %135 = vector.extract_strided_slice %132 {offsets = [0, 64], sizes = [14, 32], strides = [1, 1]} : vector<14x128xf32> to vector<14x32xf32>
    %cst_49 = arith.constant 2.000000e+00 : f32
    %136 = vector.broadcast %cst_49 : f32 to vector<14x32xf32>
    %137 = arith.mulf %135, %136 : vector<14x32xf32>
    %cst_50 = arith.constant 1.000000e+00 : f32
    %138 = vector.broadcast %cst_50 : f32 to vector<14x32xf32>
    %139 = arith.subf %137, %138 : vector<14x32xf32>
    %140 = vector.extract_strided_slice %132 {offsets = [0, 96], sizes = [14, 32], strides = [1, 1]} : vector<14x128xf32> to vector<14x32xf32>
    %141 = arith.mulf %134, %120 : vector<14x32xf32>
    %142 = arith.mulf %133, %139 : vector<14x32xf32>
    %143 = arith.addf %141, %142 : vector<14x32xf32>
    %144 = math.tanh %143 : vector<14x32xf32>
    %145 = arith.mulf %140, %144 : vector<14x32xf32>
    %146 = arith.truncf %145 : vector<14x32xf32> to vector<14x32xbf16>
    %c0_51 = arith.constant 0 : index
    %c128_52 = arith.constant 128 : index
    %147 = vector.load %arg11[%c0_51, %c128_52] : memref<14x512xbf16, #tpu.memory_space<vmem>>, vector<14x32xbf16>
    tpu.vector_store %arg11[%c0_51, %c128_52], %146 {strides = array<i32>} : memref<14x512xbf16, #tpu.memory_space<vmem>>, vector<14x32xbf16>,
    %c0_53 = arith.constant 0 : index
    %c640 = arith.constant 640 : index
    %148 = vector.load %arg10[%c0_53, %c640] : memref<14x2048xf32, #tpu.memory_space<vmem>>, vector<14x128xf32>
    %cst_54 = arith.constant dense<0.000000e+00> : vector<14x128xf32>
    %149 = tpu.matmul %146, %30, %cst_54 {dimension_numbers = #tpu.dot_dimension_numbers<[1], [0], [0], [1], [0, 0, 1, 1], [], []>} : vector<14x32xbf16>, vector<32x128xbf16>, vector<14x128xf32> -> vector<14x128xf32>
    %150 = arith.addf %148, %149 : vector<14x128xf32>
    %151 = arith.negf %150 : vector<14x128xf32>
    %152 = math.exp %151 : vector<14x128xf32>
    %cst_55 = arith.constant 1.000000e+00 : f32
    %153 = vector.broadcast %cst_55 : f32 to vector<14x128xf32>
    %154 = arith.addf %153, %152 : vector<14x128xf32>
    %155 = arith.divf %153, %154 : vector<14x128xf32>
    %156 = vector.extract_strided_slice %155 {offsets = [0, 0], sizes = [14, 32], strides = [1, 1]} : vector<14x128xf32> to vector<14x32xf32>
    %157 = vector.extract_strided_slice %155 {offsets = [0, 32], sizes = [14, 32], strides = [1, 1]} : vector<14x128xf32> to vector<14x32xf32>
    %158 = vector.extract_strided_slice %155 {offsets = [0, 64], sizes = [14, 32], strides = [1, 1]} : vector<14x128xf32> to vector<14x32xf32>
    %cst_56 = arith.constant 2.000000e+00 : f32
    %159 = vector.broadcast %cst_56 : f32 to vector<14x32xf32>
    %160 = arith.mulf %158, %159 : vector<14x32xf32>
    %cst_57 = arith.constant 1.000000e+00 : f32
    %161 = vector.broadcast %cst_57 : f32 to vector<14x32xf32>
    %162 = arith.subf %160, %161 : vector<14x32xf32>
    %163 = vector.extract_strided_slice %155 {offsets = [0, 96], sizes = [14, 32], strides = [1, 1]} : vector<14x128xf32> to vector<14x32xf32>
    %164 = arith.mulf %157, %143 : vector<14x32xf32>
    %165 = arith.mulf %156, %162 : vector<14x32xf32>
    %166 = arith.addf %164, %165 : vector<14x32xf32>
    %167 = math.tanh %166 : vector<14x32xf32>
    %168 = arith.mulf %163, %167 : vector<14x32xf32>
    %169 = arith.truncf %168 : vector<14x32xf32> to vector<14x32xbf16>
    %c0_58 = arith.constant 0 : index
    %c160 = arith.constant 160 : index
    %170 = vector.load %arg11[%c0_58, %c160] : memref<14x512xbf16, #tpu.memory_space<vmem>>, vector<14x32xbf16>
    tpu.vector_store %arg11[%c0_58, %c160], %169 {strides = array<i32>} : memref<14x512xbf16, #tpu.memory_space<vmem>>, vector<14x32xbf16>,
    %c0_59 = arith.constant 0 : index
    %c768 = arith.constant 768 : index
    %171 = vector.load %arg10[%c0_59, %c768] : memref<14x2048xf32, #tpu.memory_space<vmem>>, vector<14x128xf32>
    %cst_60 = arith.constant dense<0.000000e+00> : vector<14x128xf32>
    %172 = tpu.matmul %169, %30, %cst_60 {dimension_numbers = #tpu.dot_dimension_numbers<[1], [0], [0], [1], [0, 0, 1, 1], [], []>} : vector<14x32xbf16>, vector<32x128xbf16>, vector<14x128xf32> -> vector<14x128xf32>
    %173 = arith.addf %171, %172 : vector<14x128xf32>
    %174 = arith.negf %173 : vector<14x128xf32>
    %175 = math.exp %174 : vector<14x128xf32>
    %cst_61 = arith.constant 1.000000e+00 : f32
    %176 = vector.broadcast %cst_61 : f32 to vector<14x128xf32>
    %177 = arith.addf %176, %175 : vector<14x128xf32>
    %178 = arith.divf %176, %177 : vector<14x128xf32>
    %179 = vector.extract_strided_slice %178 {offsets = [0, 0], sizes = [14, 32], strides = [1, 1]} : vector<14x128xf32> to vector<14x32xf32>
    %180 = vector.extract_strided_slice %178 {offsets = [0, 32], sizes = [14, 32], strides = [1, 1]} : vector<14x128xf32> to vector<14x32xf32>
    %181 = vector.extract_strided_slice %178 {offsets = [0, 64], sizes = [14, 32], strides = [1, 1]} : vector<14x128xf32> to vector<14x32xf32>
    %cst_62 = arith.constant 2.000000e+00 : f32
    %182 = vector.broadcast %cst_62 : f32 to vector<14x32xf32>
    %183 = arith.mulf %181, %182 : vector<14x32xf32>
    %cst_63 = arith.constant 1.000000e+00 : f32
    %184 = vector.broadcast %cst_63 : f32 to vector<14x32xf32>
    %185 = arith.subf %183, %184 : vector<14x32xf32>
    %186 = vector.extract_strided_slice %178 {offsets = [0, 96], sizes = [14, 32], strides = [1, 1]} : vector<14x128xf32> to vector<14x32xf32>
    %187 = arith.mulf %180, %166 : vector<14x32xf32>
    %188 = arith.mulf %179, %185 : vector<14x32xf32>
    %189 = arith.addf %187, %188 : vector<14x32xf32>
    %190 = math.tanh %189 : vector<14x32xf32>
    %191 = arith.mulf %186, %190 : vector<14x32xf32>
    %192 = arith.truncf %191 : vector<14x32xf32> to vector<14x32xbf16>
    %c0_64 = arith.constant 0 : index
    %c192 = arith.constant 192 : index
    %193 = vector.load %arg11[%c0_64, %c192] : memref<14x512xbf16, #tpu.memory_space<vmem>>, vector<14x32xbf16>
    tpu.vector_store %arg11[%c0_64, %c192], %192 {strides = array<i32>} : memref<14x512xbf16, #tpu.memory_space<vmem>>, vector<14x32xbf16>,
    %c0_65 = arith.constant 0 : index
    %c896 = arith.constant 896 : index
    %194 = vector.load %arg10[%c0_65, %c896] : memref<14x2048xf32, #tpu.memory_space<vmem>>, vector<14x128xf32>
    %cst_66 = arith.constant dense<0.000000e+00> : vector<14x128xf32>
    %195 = tpu.matmul %192, %30, %cst_66 {dimension_numbers = #tpu.dot_dimension_numbers<[1], [0], [0], [1], [0, 0, 1, 1], [], []>} : vector<14x32xbf16>, vector<32x128xbf16>, vector<14x128xf32> -> vector<14x128xf32>
    %196 = arith.addf %194, %195 : vector<14x128xf32>
    %197 = arith.negf %196 : vector<14x128xf32>
    %198 = math.exp %197 : vector<14x128xf32>
    %cst_67 = arith.constant 1.000000e+00 : f32
    %199 = vector.broadcast %cst_67 : f32 to vector<14x128xf32>
    %200 = arith.addf %199, %198 : vector<14x128xf32>
    %201 = arith.divf %199, %200 : vector<14x128xf32>
    %202 = vector.extract_strided_slice %201 {offsets = [0, 0], sizes = [14, 32], strides = [1, 1]} : vector<14x128xf32> to vector<14x32xf32>
    %203 = vector.extract_strided_slice %201 {offsets = [0, 32], sizes = [14, 32], strides = [1, 1]} : vector<14x128xf32> to vector<14x32xf32>
    %204 = vector.extract_strided_slice %201 {offsets = [0, 64], sizes = [14, 32], strides = [1, 1]} : vector<14x128xf32> to vector<14x32xf32>
    %cst_68 = arith.constant 2.000000e+00 : f32
    %205 = vector.broadcast %cst_68 : f32 to vector<14x32xf32>
    %206 = arith.mulf %204, %205 : vector<14x32xf32>
    %cst_69 = arith.constant 1.000000e+00 : f32
    %207 = vector.broadcast %cst_69 : f32 to vector<14x32xf32>
    %208 = arith.subf %206, %207 : vector<14x32xf32>
    %209 = vector.extract_strided_slice %201 {offsets = [0, 96], sizes = [14, 32], strides = [1, 1]} : vector<14x128xf32> to vector<14x32xf32>
    %210 = arith.mulf %203, %189 : vector<14x32xf32>
    %211 = arith.mulf %202, %208 : vector<14x32xf32>
    %212 = arith.addf %210, %211 : vector<14x32xf32>
    %213 = math.tanh %212 : vector<14x32xf32>
    %214 = arith.mulf %209, %213 : vector<14x32xf32>
    %215 = arith.truncf %214 : vector<14x32xf32> to vector<14x32xbf16>
    %c0_70 = arith.constant 0 : index
    %c224 = arith.constant 224 : index
    %216 = vector.load %arg11[%c0_70, %c224] : memref<14x512xbf16, #tpu.memory_space<vmem>>, vector<14x32xbf16>
    tpu.vector_store %arg11[%c0_70, %c224], %215 {strides = array<i32>} : memref<14x512xbf16, #tpu.memory_space<vmem>>, vector<14x32xbf16>,
    %c0_71 = arith.constant 0 : index
    %c1024 = arith.constant 1024 : index
    %217 = vector.load %arg10[%c0_71, %c1024] : memref<14x2048xf32, #tpu.memory_space<vmem>>, vector<14x128xf32>
    %cst_72 = arith.constant dense<0.000000e+00> : vector<14x128xf32>
    %218 = tpu.matmul %215, %30, %cst_72 {dimension_numbers = #tpu.dot_dimension_numbers<[1], [0], [0], [1], [0, 0, 1, 1], [], []>} : vector<14x32xbf16>, vector<32x128xbf16>, vector<14x128xf32> -> vector<14x128xf32>
    %219 = arith.addf %217, %218 : vector<14x128xf32>
    %220 = arith.negf %219 : vector<14x128xf32>
    %221 = math.exp %220 : vector<14x128xf32>
    %cst_73 = arith.constant 1.000000e+00 : f32
    %222 = vector.broadcast %cst_73 : f32 to vector<14x128xf32>
    %223 = arith.addf %222, %221 : vector<14x128xf32>
    %224 = arith.divf %222, %223 : vector<14x128xf32>
    %225 = vector.extract_strided_slice %224 {offsets = [0, 0], sizes = [14, 32], strides = [1, 1]} : vector<14x128xf32> to vector<14x32xf32>
    %226 = vector.extract_strided_slice %224 {offsets = [0, 32], sizes = [14, 32], strides = [1, 1]} : vector<14x128xf32> to vector<14x32xf32>
    %227 = vector.extract_strided_slice %224 {offsets = [0, 64], sizes = [14, 32], strides = [1, 1]} : vector<14x128xf32> to vector<14x32xf32>
    %cst_74 = arith.constant 2.000000e+00 : f32
    %228 = vector.broadcast %cst_74 : f32 to vector<14x32xf32>
    %229 = arith.mulf %227, %228 : vector<14x32xf32>
    %cst_75 = arith.constant 1.000000e+00 : f32
    %230 = vector.broadcast %cst_75 : f32 to vector<14x32xf32>
    %231 = arith.subf %229, %230 : vector<14x32xf32>
    %232 = vector.extract_strided_slice %224 {offsets = [0, 96], sizes = [14, 32], strides = [1, 1]} : vector<14x128xf32> to vector<14x32xf32>
    %233 = arith.mulf %226, %212 : vector<14x32xf32>
    %234 = arith.mulf %225, %231 : vector<14x32xf32>
    %235 = arith.addf %233, %234 : vector<14x32xf32>
    %236 = math.tanh %235 : vector<14x32xf32>
    %237 = arith.mulf %232, %236 : vector<14x32xf32>
    %238 = arith.truncf %237 : vector<14x32xf32> to vector<14x32xbf16>
    %c0_76 = arith.constant 0 : index
    %c256_77 = arith.constant 256 : index
    %239 = vector.load %arg11[%c0_76, %c256_77] : memref<14x512xbf16, #tpu.memory_space<vmem>>, vector<14x32xbf16>
    tpu.vector_store %arg11[%c0_76, %c256_77], %238 {strides = array<i32>} : memref<14x512xbf16, #tpu.memory_space<vmem>>, vector<14x32xbf16>,
    %c0_78 = arith.constant 0 : index
    %c1152 = arith.constant 1152 : index
    %240 = vector.load %arg10[%c0_78, %c1152] : memref<14x2048xf32, #tpu.memory_space<vmem>>, vector<14x128xf32>
    %cst_79 = arith.constant dense<0.000000e+00> : vector<14x128xf32>
    %241 = tpu.matmul %238, %30, %cst_79 {dimension_numbers = #tpu.dot_dimension_numbers<[1], [0], [0], [1], [0, 0, 1, 1], [], []>} : vector<14x32xbf16>, vector<32x128xbf16>, vector<14x128xf32> -> vector<14x128xf32>
    %242 = arith.addf %240, %241 : vector<14x128xf32>
    %243 = arith.negf %242 : vector<14x128xf32>
    %244 = math.exp %243 : vector<14x128xf32>
    %cst_80 = arith.constant 1.000000e+00 : f32
    %245 = vector.broadcast %cst_80 : f32 to vector<14x128xf32>
    %246 = arith.addf %245, %244 : vector<14x128xf32>
    %247 = arith.divf %245, %246 : vector<14x128xf32>
    %248 = vector.extract_strided_slice %247 {offsets = [0, 0], sizes = [14, 32], strides = [1, 1]} : vector<14x128xf32> to vector<14x32xf32>
    %249 = vector.extract_strided_slice %247 {offsets = [0, 32], sizes = [14, 32], strides = [1, 1]} : vector<14x128xf32> to vector<14x32xf32>
    %250 = vector.extract_strided_slice %247 {offsets = [0, 64], sizes = [14, 32], strides = [1, 1]} : vector<14x128xf32> to vector<14x32xf32>
    %cst_81 = arith.constant 2.000000e+00 : f32
    %251 = vector.broadcast %cst_81 : f32 to vector<14x32xf32>
    %252 = arith.mulf %250, %251 : vector<14x32xf32>
    %cst_82 = arith.constant 1.000000e+00 : f32
    %253 = vector.broadcast %cst_82 : f32 to vector<14x32xf32>
    %254 = arith.subf %252, %253 : vector<14x32xf32>
    %255 = vector.extract_strided_slice %247 {offsets = [0, 96], sizes = [14, 32], strides = [1, 1]} : vector<14x128xf32> to vector<14x32xf32>
    %256 = arith.mulf %249, %235 : vector<14x32xf32>
    %257 = arith.mulf %248, %254 : vector<14x32xf32>
    %258 = arith.addf %256, %257 : vector<14x32xf32>
    %259 = math.tanh %258 : vector<14x32xf32>
    %260 = arith.mulf %255, %259 : vector<14x32xf32>
    %261 = arith.truncf %260 : vector<14x32xf32> to vector<14x32xbf16>
    %c0_83 = arith.constant 0 : index
    %c288 = arith.constant 288 : index
    %262 = vector.load %arg11[%c0_83, %c288] : memref<14x512xbf16, #tpu.memory_space<vmem>>, vector<14x32xbf16>
    tpu.vector_store %arg11[%c0_83, %c288], %261 {strides = array<i32>} : memref<14x512xbf16, #tpu.memory_space<vmem>>, vector<14x32xbf16>,
    %c0_84 = arith.constant 0 : index
    %c1280 = arith.constant 1280 : index
    %263 = vector.load %arg10[%c0_84, %c1280] : memref<14x2048xf32, #tpu.memory_space<vmem>>, vector<14x128xf32>
    %cst_85 = arith.constant dense<0.000000e+00> : vector<14x128xf32>
    %264 = tpu.matmul %261, %30, %cst_85 {dimension_numbers = #tpu.dot_dimension_numbers<[1], [0], [0], [1], [0, 0, 1, 1], [], []>} : vector<14x32xbf16>, vector<32x128xbf16>, vector<14x128xf32> -> vector<14x128xf32>
    %265 = arith.addf %263, %264 : vector<14x128xf32>
    %266 = arith.negf %265 : vector<14x128xf32>
    %267 = math.exp %266 : vector<14x128xf32>
    %cst_86 = arith.constant 1.000000e+00 : f32
    %268 = vector.broadcast %cst_86 : f32 to vector<14x128xf32>
    %269 = arith.addf %268, %267 : vector<14x128xf32>
    %270 = arith.divf %268, %269 : vector<14x128xf32>
    %271 = vector.extract_strided_slice %270 {offsets = [0, 0], sizes = [14, 32], strides = [1, 1]} : vector<14x128xf32> to vector<14x32xf32>
    %272 = vector.extract_strided_slice %270 {offsets = [0, 32], sizes = [14, 32], strides = [1, 1]} : vector<14x128xf32> to vector<14x32xf32>
    %273 = vector.extract_strided_slice %270 {offsets = [0, 64], sizes = [14, 32], strides = [1, 1]} : vector<14x128xf32> to vector<14x32xf32>
    %cst_87 = arith.constant 2.000000e+00 : f32
    %274 = vector.broadcast %cst_87 : f32 to vector<14x32xf32>
    %275 = arith.mulf %273, %274 : vector<14x32xf32>
    %cst_88 = arith.constant 1.000000e+00 : f32
    %276 = vector.broadcast %cst_88 : f32 to vector<14x32xf32>
    %277 = arith.subf %275, %276 : vector<14x32xf32>
    %278 = vector.extract_strided_slice %270 {offsets = [0, 96], sizes = [14, 32], strides = [1, 1]} : vector<14x128xf32> to vector<14x32xf32>
    %279 = arith.mulf %272, %258 : vector<14x32xf32>
    %280 = arith.mulf %271, %277 : vector<14x32xf32>
    %281 = arith.addf %279, %280 : vector<14x32xf32>
    %282 = math.tanh %281 : vector<14x32xf32>
    %283 = arith.mulf %278, %282 : vector<14x32xf32>
    %284 = arith.truncf %283 : vector<14x32xf32> to vector<14x32xbf16>
    %c0_89 = arith.constant 0 : index
    %c320 = arith.constant 320 : index
    %285 = vector.load %arg11[%c0_89, %c320] : memref<14x512xbf16, #tpu.memory_space<vmem>>, vector<14x32xbf16>
    tpu.vector_store %arg11[%c0_89, %c320], %284 {strides = array<i32>} : memref<14x512xbf16, #tpu.memory_space<vmem>>, vector<14x32xbf16>,
    %c0_90 = arith.constant 0 : index
    %c1408 = arith.constant 1408 : index
    %286 = vector.load %arg10[%c0_90, %c1408] : memref<14x2048xf32, #tpu.memory_space<vmem>>, vector<14x128xf32>
    %cst_91 = arith.constant dense<0.000000e+00> : vector<14x128xf32>
    %287 = tpu.matmul %284, %30, %cst_91 {dimension_numbers = #tpu.dot_dimension_numbers<[1], [0], [0], [1], [0, 0, 1, 1], [], []>} : vector<14x32xbf16>, vector<32x128xbf16>, vector<14x128xf32> -> vector<14x128xf32>
    %288 = arith.addf %286, %287 : vector<14x128xf32>
    %289 = arith.negf %288 : vector<14x128xf32>
    %290 = math.exp %289 : vector<14x128xf32>
    %cst_92 = arith.constant 1.000000e+00 : f32
    %291 = vector.broadcast %cst_92 : f32 to vector<14x128xf32>
    %292 = arith.addf %291, %290 : vector<14x128xf32>
    %293 = arith.divf %291, %292 : vector<14x128xf32>
    %294 = vector.extract_strided_slice %293 {offsets = [0, 0], sizes = [14, 32], strides = [1, 1]} : vector<14x128xf32> to vector<14x32xf32>
    %295 = vector.extract_strided_slice %293 {offsets = [0, 32], sizes = [14, 32], strides = [1, 1]} : vector<14x128xf32> to vector<14x32xf32>
    %296 = vector.extract_strided_slice %293 {offsets = [0, 64], sizes = [14, 32], strides = [1, 1]} : vector<14x128xf32> to vector<14x32xf32>
    %cst_93 = arith.constant 2.000000e+00 : f32
    %297 = vector.broadcast %cst_93 : f32 to vector<14x32xf32>
    %298 = arith.mulf %296, %297 : vector<14x32xf32>
    %cst_94 = arith.constant 1.000000e+00 : f32
    %299 = vector.broadcast %cst_94 : f32 to vector<14x32xf32>
    %300 = arith.subf %298, %299 : vector<14x32xf32>
    %301 = vector.extract_strided_slice %293 {offsets = [0, 96], sizes = [14, 32], strides = [1, 1]} : vector<14x128xf32> to vector<14x32xf32>
    %302 = arith.mulf %295, %281 : vector<14x32xf32>
    %303 = arith.mulf %294, %300 : vector<14x32xf32>
    %304 = arith.addf %302, %303 : vector<14x32xf32>
    %305 = math.tanh %304 : vector<14x32xf32>
    %306 = arith.mulf %301, %305 : vector<14x32xf32>
    %307 = arith.truncf %306 : vector<14x32xf32> to vector<14x32xbf16>
    %c0_95 = arith.constant 0 : index
    %c352 = arith.constant 352 : index
    %308 = vector.load %arg11[%c0_95, %c352] : memref<14x512xbf16, #tpu.memory_space<vmem>>, vector<14x32xbf16>
    tpu.vector_store %arg11[%c0_95, %c352], %307 {strides = array<i32>} : memref<14x512xbf16, #tpu.memory_space<vmem>>, vector<14x32xbf16>,
    %c0_96 = arith.constant 0 : index
    %c1536 = arith.constant 1536 : index
    %309 = vector.load %arg10[%c0_96, %c1536] : memref<14x2048xf32, #tpu.memory_space<vmem>>, vector<14x128xf32>
    %cst_97 = arith.constant dense<0.000000e+00> : vector<14x128xf32>
    %310 = tpu.matmul %307, %30, %cst_97 {dimension_numbers = #tpu.dot_dimension_numbers<[1], [0], [0], [1], [0, 0, 1, 1], [], []>} : vector<14x32xbf16>, vector<32x128xbf16>, vector<14x128xf32> -> vector<14x128xf32>
    %311 = arith.addf %309, %310 : vector<14x128xf32>
    %312 = arith.negf %311 : vector<14x128xf32>
    %313 = math.exp %312 : vector<14x128xf32>
    %cst_98 = arith.constant 1.000000e+00 : f32
    %314 = vector.broadcast %cst_98 : f32 to vector<14x128xf32>
    %315 = arith.addf %314, %313 : vector<14x128xf32>
    %316 = arith.divf %314, %315 : vector<14x128xf32>
    %317 = vector.extract_strided_slice %316 {offsets = [0, 0], sizes = [14, 32], strides = [1, 1]} : vector<14x128xf32> to vector<14x32xf32>
    %318 = vector.extract_strided_slice %316 {offsets = [0, 32], sizes = [14, 32], strides = [1, 1]} : vector<14x128xf32> to vector<14x32xf32>
    %319 = vector.extract_strided_slice %316 {offsets = [0, 64], sizes = [14, 32], strides = [1, 1]} : vector<14x128xf32> to vector<14x32xf32>
    %cst_99 = arith.constant 2.000000e+00 : f32
    %320 = vector.broadcast %cst_99 : f32 to vector<14x32xf32>
    %321 = arith.mulf %319, %320 : vector<14x32xf32>
    %cst_100 = arith.constant 1.000000e+00 : f32
    %322 = vector.broadcast %cst_100 : f32 to vector<14x32xf32>
    %323 = arith.subf %321, %322 : vector<14x32xf32>
    %324 = vector.extract_strided_slice %316 {offsets = [0, 96], sizes = [14, 32], strides = [1, 1]} : vector<14x128xf32> to vector<14x32xf32>
    %325 = arith.mulf %318, %304 : vector<14x32xf32>
    %326 = arith.mulf %317, %323 : vector<14x32xf32>
    %327 = arith.addf %325, %326 : vector<14x32xf32>
    %328 = math.tanh %327 : vector<14x32xf32>
    %329 = arith.mulf %324, %328 : vector<14x32xf32>
    %330 = arith.truncf %329 : vector<14x32xf32> to vector<14x32xbf16>
    %c0_101 = arith.constant 0 : index
    %c384_102 = arith.constant 384 : index
    %331 = vector.load %arg11[%c0_101, %c384_102] : memref<14x512xbf16, #tpu.memory_space<vmem>>, vector<14x32xbf16>
    tpu.vector_store %arg11[%c0_101, %c384_102], %330 {strides = array<i32>} : memref<14x512xbf16, #tpu.memory_space<vmem>>, vector<14x32xbf16>,
    %c0_103 = arith.constant 0 : index
    %c1664 = arith.constant 1664 : index
    %332 = vector.load %arg10[%c0_103, %c1664] : memref<14x2048xf32, #tpu.memory_space<vmem>>, vector<14x128xf32>
    %cst_104 = arith.constant dense<0.000000e+00> : vector<14x128xf32>
    %333 = tpu.matmul %330, %30, %cst_104 {dimension_numbers = #tpu.dot_dimension_numbers<[1], [0], [0], [1], [0, 0, 1, 1], [], []>} : vector<14x32xbf16>, vector<32x128xbf16>, vector<14x128xf32> -> vector<14x128xf32>
    %334 = arith.addf %332, %333 : vector<14x128xf32>
    %335 = arith.negf %334 : vector<14x128xf32>
    %336 = math.exp %335 : vector<14x128xf32>
    %cst_105 = arith.constant 1.000000e+00 : f32
    %337 = vector.broadcast %cst_105 : f32 to vector<14x128xf32>
    %338 = arith.addf %337, %336 : vector<14x128xf32>
    %339 = arith.divf %337, %338 : vector<14x128xf32>
    %340 = vector.extract_strided_slice %339 {offsets = [0, 0], sizes = [14, 32], strides = [1, 1]} : vector<14x128xf32> to vector<14x32xf32>
    %341 = vector.extract_strided_slice %339 {offsets = [0, 32], sizes = [14, 32], strides = [1, 1]} : vector<14x128xf32> to vector<14x32xf32>
    %342 = vector.extract_strided_slice %339 {offsets = [0, 64], sizes = [14, 32], strides = [1, 1]} : vector<14x128xf32> to vector<14x32xf32>
    %cst_106 = arith.constant 2.000000e+00 : f32
    %343 = vector.broadcast %cst_106 : f32 to vector<14x32xf32>
    %344 = arith.mulf %342, %343 : vector<14x32xf32>
    %cst_107 = arith.constant 1.000000e+00 : f32
    %345 = vector.broadcast %cst_107 : f32 to vector<14x32xf32>
    %346 = arith.subf %344, %345 : vector<14x32xf32>
    %347 = vector.extract_strided_slice %339 {offsets = [0, 96], sizes = [14, 32], strides = [1, 1]} : vector<14x128xf32> to vector<14x32xf32>
    %348 = arith.mulf %341, %327 : vector<14x32xf32>
    %349 = arith.mulf %340, %346 : vector<14x32xf32>
    %350 = arith.addf %348, %349 : vector<14x32xf32>
    %351 = math.tanh %350 : vector<14x32xf32>
    %352 = arith.mulf %347, %351 : vector<14x32xf32>
    %353 = arith.truncf %352 : vector<14x32xf32> to vector<14x32xbf16>
    %c0_108 = arith.constant 0 : index
    %c416 = arith.constant 416 : index
    %354 = vector.load %arg11[%c0_108, %c416] : memref<14x512xbf16, #tpu.memory_space<vmem>>, vector<14x32xbf16>
    tpu.vector_store %arg11[%c0_108, %c416], %353 {strides = array<i32>} : memref<14x512xbf16, #tpu.memory_space<vmem>>, vector<14x32xbf16>,
    %c0_109 = arith.constant 0 : index
    %c1792 = arith.constant 1792 : index
    %355 = vector.load %arg10[%c0_109, %c1792] : memref<14x2048xf32, #tpu.memory_space<vmem>>, vector<14x128xf32>
    %cst_110 = arith.constant dense<0.000000e+00> : vector<14x128xf32>
    %356 = tpu.matmul %353, %30, %cst_110 {dimension_numbers = #tpu.dot_dimension_numbers<[1], [0], [0], [1], [0, 0, 1, 1], [], []>} : vector<14x32xbf16>, vector<32x128xbf16>, vector<14x128xf32> -> vector<14x128xf32>
    %357 = arith.addf %355, %356 : vector<14x128xf32>
    %358 = arith.negf %357 : vector<14x128xf32>
    %359 = math.exp %358 : vector<14x128xf32>
    %cst_111 = arith.constant 1.000000e+00 : f32
    %360 = vector.broadcast %cst_111 : f32 to vector<14x128xf32>
    %361 = arith.addf %360, %359 : vector<14x128xf32>
    %362 = arith.divf %360, %361 : vector<14x128xf32>
    %363 = vector.extract_strided_slice %362 {offsets = [0, 0], sizes = [14, 32], strides = [1, 1]} : vector<14x128xf32> to vector<14x32xf32>
    %364 = vector.extract_strided_slice %362 {offsets = [0, 32], sizes = [14, 32], strides = [1, 1]} : vector<14x128xf32> to vector<14x32xf32>
    %365 = vector.extract_strided_slice %362 {offsets = [0, 64], sizes = [14, 32], strides = [1, 1]} : vector<14x128xf32> to vector<14x32xf32>
    %cst_112 = arith.constant 2.000000e+00 : f32
    %366 = vector.broadcast %cst_112 : f32 to vector<14x32xf32>
    %367 = arith.mulf %365, %366 : vector<14x32xf32>
    %cst_113 = arith.constant 1.000000e+00 : f32
    %368 = vector.broadcast %cst_113 : f32 to vector<14x32xf32>
    %369 = arith.subf %367, %368 : vector<14x32xf32>
    %370 = vector.extract_strided_slice %362 {offsets = [0, 96], sizes = [14, 32], strides = [1, 1]} : vector<14x128xf32> to vector<14x32xf32>
    %371 = arith.mulf %364, %350 : vector<14x32xf32>
    %372 = arith.mulf %363, %369 : vector<14x32xf32>
    %373 = arith.addf %371, %372 : vector<14x32xf32>
    %374 = math.tanh %373 : vector<14x32xf32>
    %375 = arith.mulf %370, %374 : vector<14x32xf32>
    %376 = arith.truncf %375 : vector<14x32xf32> to vector<14x32xbf16>
    %c0_114 = arith.constant 0 : index
    %c448 = arith.constant 448 : index
    %377 = vector.load %arg11[%c0_114, %c448] : memref<14x512xbf16, #tpu.memory_space<vmem>>, vector<14x32xbf16>
    tpu.vector_store %arg11[%c0_114, %c448], %376 {strides = array<i32>} : memref<14x512xbf16, #tpu.memory_space<vmem>>, vector<14x32xbf16>,
    %c0_115 = arith.constant 0 : index
    %c1920 = arith.constant 1920 : index
    %378 = vector.load %arg10[%c0_115, %c1920] : memref<14x2048xf32, #tpu.memory_space<vmem>>, vector<14x128xf32>
    %cst_116 = arith.constant dense<0.000000e+00> : vector<14x128xf32>
    %379 = tpu.matmul %376, %30, %cst_116 {dimension_numbers = #tpu.dot_dimension_numbers<[1], [0], [0], [1], [0, 0, 1, 1], [], []>} : vector<14x32xbf16>, vector<32x128xbf16>, vector<14x128xf32> -> vector<14x128xf32>
    %380 = arith.addf %378, %379 : vector<14x128xf32>
    %381 = arith.negf %380 : vector<14x128xf32>
    %382 = math.exp %381 : vector<14x128xf32>
    %cst_117 = arith.constant 1.000000e+00 : f32
    %383 = vector.broadcast %cst_117 : f32 to vector<14x128xf32>
    %384 = arith.addf %383, %382 : vector<14x128xf32>
    %385 = arith.divf %383, %384 : vector<14x128xf32>
    %386 = vector.extract_strided_slice %385 {offsets = [0, 0], sizes = [14, 32], strides = [1, 1]} : vector<14x128xf32> to vector<14x32xf32>
    %387 = vector.extract_strided_slice %385 {offsets = [0, 32], sizes = [14, 32], strides = [1, 1]} : vector<14x128xf32> to vector<14x32xf32>
    %388 = vector.extract_strided_slice %385 {offsets = [0, 64], sizes = [14, 32], strides = [1, 1]} : vector<14x128xf32> to vector<14x32xf32>
    %cst_118 = arith.constant 2.000000e+00 : f32
    %389 = vector.broadcast %cst_118 : f32 to vector<14x32xf32>
    %390 = arith.mulf %388, %389 : vector<14x32xf32>
    %cst_119 = arith.constant 1.000000e+00 : f32
    %391 = vector.broadcast %cst_119 : f32 to vector<14x32xf32>
    %392 = arith.subf %390, %391 : vector<14x32xf32>
    %393 = vector.extract_strided_slice %385 {offsets = [0, 96], sizes = [14, 32], strides = [1, 1]} : vector<14x128xf32> to vector<14x32xf32>
    %394 = arith.mulf %387, %373 : vector<14x32xf32>
    %395 = arith.mulf %386, %392 : vector<14x32xf32>
    %396 = arith.addf %394, %395 : vector<14x32xf32>
    %397 = math.tanh %396 : vector<14x32xf32>
    %398 = arith.mulf %393, %397 : vector<14x32xf32>
    %399 = arith.truncf %398 : vector<14x32xf32> to vector<14x32xbf16>
    %c0_120 = arith.constant 0 : index
    %c480 = arith.constant 480 : index
    %400 = vector.load %arg11[%c0_120, %c480] : memref<14x512xbf16, #tpu.memory_space<vmem>>, vector<14x32xbf16>
    tpu.vector_store %arg11[%c0_120, %c480], %399 {strides = array<i32>} : memref<14x512xbf16, #tpu.memory_space<vmem>>, vector<14x32xbf16>,
    %c0_121 = arith.constant 0 : index
    %c0_122 = arith.constant 0 : index
    %401 = vector.load %arg11[%c0_121, %c0_122] : memref<14x512xbf16, #tpu.memory_space<vmem>>, vector<14x512xbf16>
    %c0_123 = arith.constant 0 : index
    %c0_124 = arith.constant 0 : index
    %402 = vector.load %arg7[%c0_123, %c0_124] : memref<512x128xbf16, #tpu.memory_space<vmem>>, vector<512x128xbf16>
    %cst_125 = arith.constant dense<0.000000e+00> : vector<14x128xf32>
    %403 = tpu.matmul %401, %402, %cst_125 {dimension_numbers = #tpu.dot_dimension_numbers<[1], [0], [0], [1], [0, 0, 1, 1], [], []>} : vector<14x512xbf16>, vector<512x128xbf16>, vector<14x128xf32> -> vector<14x128xf32>
    %c0_126 = arith.constant 0 : index
    %c0_127 = arith.constant 0 : index
    %404 = vector.load %arg8[%c0_126, %c0_127] : memref<1x128xf32, #tpu.memory_space<vmem>>, vector<1x128xf32>
    %405 = vector.broadcast %404 : vector<1x128xf32> to vector<14x128xf32>
    %406 = arith.addf %403, %405 : vector<14x128xf32>
    %c0_128 = arith.constant 0 : index
    %c0_129 = arith.constant 0 : index
    %407 = vector.load %arg1[%c0_128, %c0_129] : memref<14x128xf32, #tpu.memory_space<vmem>>, vector<14x128xf32>
    %408 = arith.addf %406, %407 : vector<14x128xf32>
    %c0_130 = arith.constant 0 : index
    %c0_131 = arith.constant 0 : index
    %409 = vector.load %arg9[%c0_130, %c0_131] : memref<14x128xf32, #tpu.memory_space<vmem>>, vector<14x128xf32>
    tpu.vector_store %arg9[%c0_130, %c0_131], %408 {strides = array<i32>} : memref<14x128xf32, #tpu.memory_space<vmem>>, vector<14x128xf32>,
    return
  }
  func.func @transform_0(%arg0: i32) -> (i32, i32) {
    %c0_i32 = arith.constant 0 : i32
    %c0_i32_0 = arith.constant 0 : i32
    return %arg0, %c0_i32 : i32, i32
  }
  func.func @transform_1(%arg0: i32) -> (i32, i32) {
    %c0_i32 = arith.constant 0 : i32
    %c0_i32_0 = arith.constant 0 : i32
    %c0_i32_1 = arith.constant 0 : i32
    return %c0_i32, %c0_i32_0 : i32, i32
  }
  func.func @transform_2(%arg0: i32) -> (i32, i32) {
    %c0_i32 = arith.constant 0 : i32
    %c0_i32_0 = arith.constant 0 : i32
    %c0_i32_1 = arith.constant 0 : i32
    return %c0_i32, %c0_i32_0 : i32, i32
  }
  func.func @transform_3(%arg0: i32) -> (i32, i32) {
    %c0_i32 = arith.constant 0 : i32
    %c0_i32_0 = arith.constant 0 : i32
    %c0_i32_1 = arith.constant 0 : i32
    return %c0_i32, %c0_i32_0 : i32, i32
  }
  func.func @transform_4(%arg0: i32) -> (i32, i32) {
    %c0_i32 = arith.constant 0 : i32
    %c0_i32_0 = arith.constant 0 : i32
    %c0_i32_1 = arith.constant 0 : i32
    return %c0_i32, %c0_i32_0 : i32, i32
  }
  func.func @transform_5(%arg0: i32) -> (i32, i32) {
    %c0_i32 = arith.constant 0 : i32
    %c0_i32_0 = arith.constant 0 : i32
    %c0_i32_1 = arith.constant 0 : i32
    return %c0_i32, %c0_i32_0 : i32, i32
  }
  func.func @transform_6(%arg0: i32) -> (i32, i32) {
    %c0_i32 = arith.constant 0 : i32
    %c0_i32_0 = arith.constant 0 : i32
    %c0_i32_1 = arith.constant 0 : i32
    return %c0_i32, %c0_i32_0 : i32, i32
  }
  func.func @transform_7(%arg0: i32) -> (i32, i32) {
    %c0_i32 = arith.constant 0 : i32
    %c0_i32_0 = arith.constant 0 : i32
    %c0_i32_1 = arith.constant 0 : i32
    return %c0_i32, %c0_i32_0 : i32, i32
  }
  func.func @transform_8(%arg0: i32) -> (i32, i32) {
    %c0_i32 = arith.constant 0 : i32
    %c0_i32_0 = arith.constant 0 : i32
    return %arg0, %c0_i32 : i32, i32
  }
}

</mosaic_0001>

<bundles_post_ra>
// kernel: bsnet_forward.3
= control target key start
LH: loop header
LB: loop body
LE: loop exit
PB: predicated region body
PF: predicated region fallthrough
CT: control target
= control target key end

     0   :  { %vm34_vm0 = vcmask 457728   ;;  %vm308_vm1 = vcmask 1043456   ;;  %v2683_v32 = vmov 0   ;;  %s2684_s24 = smov 64   ;;  %s2685_s25 = smov 32   ;;  %vm586_vm2 = vcmask 261120   ;;  %s3503_s0 = inlined_call_operand.vmem [shape: f32[32,56], index: 0, kind: input, shape index: {}]   ;;  %s3504_s3 = inlined_call_operand.vmem [shape: bf16[56,896], index: 3, kind: input, shape index: {}]   ;;  %s3505_s5 = inlined_call_operand.vmem [shape: bf16[32,128], index: 5, kind: input, shape index: {}]   ;;  %s3506_s1 = inlined_call_operand.vmem [shape: f32[1,56], index: 1, kind: input, shape index: {}]   ;;  %s3507_s2 = inlined_call_operand.vmem [shape: f32[1,56], index: 2, kind: input, shape index: {}]   ;;  %s3508_s4 = inlined_call_operand.vmem [shape: f32[1,896], index: 4, kind: input, shape index: {}]   ;;  %s3509_s6 = inlined_call_operand.vmem [shape: bf16[224,56], index: 6, kind: input, shape index: {}]   ;;  %s3510_s7 = inlined_call_operand.vmem [shape: f32[1,56], index: 7, kind: input, shape index: {}]   ;;  %s3511_s8 = inlined_call_operand.vmem [shape: f32[32,56], index: 8, kind: output, shape index: {}]  }
   0x1   :  { %v30_v0 = vld [vmem:[%s3503_s0] sm:$0xff]  ;;  %v32_v1 = vld [vmem:[%s3503_s0 + $0x10] sm:$0xff]  ;;  %v31_v2 = vld [vmem:[%s3503_s0 + $0x8] sm:$0xff]  ;;  %362 = vmatprep.mubr.bf16.mxu1 %v2683_v32  ;;  %vm767_vm3 = vcmask 257024   ;;  %vm963_vm4 = vcmask 519424   ;;  %vm1159_vm5 = vcmask 781824  }
   0x2   :  { %v35_v3 = vsel %vm34_vm0, %v30_v0, 0.0  ;;  %v41_v4 = vsel %vm34_vm0, %v32_v1, 0.0  ;;  %v33_v5 = vld [vmem:[%s3503_s0 + $0x18] sm:$0xff]  ;;  %v38_v6 = vsel %vm34_vm0, %v31_v2, 0.0  ;;  %v135_v28 = vld [vmem:[%s3504_s3 + $0xa8] sm:$0xff]  ;;  %v136_v38 = vld [vmem:[%s3504_s3 + $0xb0] sm:$0xff] }
   0x3   :  { %36 = vadd.xlane.f32.xlu0 %v35_v3  ;;  %42 = vadd.xlane.f32.xlu1 %v41_v4  ;;  %v44_v7 = vsel %vm34_vm0, %v33_v5, 0.0  ;;  %v2174_v29 = vcombine.high %v135_v28, %v135_v28  ;;  %v2173_v30 = vcombine.low %v135_v28, %v135_v28  ;;  %v2447_v31 = vld [vmem:[%s3504_s3 + $0x74] ss:$28 sps:$4 sm:$0xff]   ;;  %v2450_v35 = vld [vmem:[%s3504_s3 + $0x3c] ss:$28 sps:$4 sm:$0xff]   ;;  %v2176_v40 = vcombine.high %v136_v38, %v136_v38  ;;  %v2799_v41 = vld [vmem:[%s3505_s5 + $0x8] sm:$0xff]  }
   0x4   :  { %v2449_v34 = vld [vmem:[%s3504_s3 + $0x70] ss:$28 sps:$4 sm:$0xff]   ;;  %v2452_v36 = vld [vmem:[%s3504_s3 + $0x38] ss:$28 sps:$4 sm:$0xff]   ;;  %v2453_v37 = vld [vmem:[%s3504_s3 + $0x4] ss:$28 sps:$4 sm:$0xff]   ;;  %2392 = vmatprep.subr.bf16.mxu0 %v2799_v41 }
   0x5   :  { %2180 = vmatprep.subr.msk.bf16.mxu1 %vm308_vm1, %v2174_v29  ;;  %v310_v33 = vsel %vm308_vm1, %v2173_v30, 0  ;;  %v2455_v39 = vld [vmem:[%s3504_s3] ss:$28 sps:$4 sm:$0xff]   ;;  %2393 = vmatpush3.bf16.msra.mxu0 %v2799_v41  ;;  %v2475_v28 = vld [vmem:[%s3504_s3 + $0x10] ss:$28 sps:$4 sm:$0xff]   ;;  %vm1347_vm6 = vcmask 1044224  }
   0x6   :  { %339 = vmatpush1.bf16.msra.mxu1 %v310_v33  ;;  %v2805_v42 = vld [vmem:[%s3505_s5] sm:$0xff]   ;;  %v2480_v33 = vld [vmem:[%s3504_s3 + $0x50] ss:$28 sps:$4 sm:$0xff]   ;;  %vm2078_vm7 = vcmask 785408  }
   0x7   :  { %39 = vadd.xlane.f32.xlu0 %v38_v6  ;;  %45 = vadd.xlane.f32.xlu1 %v44_v7  ;;  %v2150_v57 = vld [vmem:[%s3506_s1] ss:$0 sm:$0xff] }
   0x8   :  { %340 = vmatprep.subr.bf16.mxu1 %v2447_v31  ;;  %2394 = vmatprep.subr.bf16.mxu0 %v2805_v42  ;;  %v2151_v62 = vld [vmem:[%s3507_s2] ss:$0 sm:$0xff]  ;;  %v2479_v31 = vld [vmem:[%s3504_s3 + $0x88] ss:$28 sps:$4 sm:$0xff]  }
   0x9   :  { %2395 = vmatpush3.bf16.msra.mxu0 %v2805_v42  ;;  %v2478_v29 = vld [vmem:[%s3504_s3 + $0xc0] ss:$0 sps:$4 sm:$0xff]  }
   0xa   :  { %341 = vmatpush1.bf16.msra.mxu1 %v2449_v34  ;;  %2408 = vmatprep.subr.bf16.mxu0 %v2799_v41  ;;  %v328_v30 = vsel %vm308_vm1, %v2478_v29, 0  ;;  %v2481_v34 = vld [vmem:[%s3504_s3 + $0x18] ss:$28 sps:$4 sm:$0xff]  }
   0xb   :  { %342 = vmatprep.subr.bf16.mxu1 %v2450_v35 }
   0xe   :  { %343 = vmatpush1.bf16.msra.mxu1 %v2452_v36 }
   0xf   :  { %344 = vmatprep.subr.bf16.mxu1 %v2453_v37 }
  0x12   :  { %345 = vmatpush1.bf16.msra.mxu1 %v2455_v39 }
  0x13   :  { %2183 = vmatprep.subr.msk.bf16.mxu1 %vm308_vm1, %v2176_v40 }
  0x8c   :  { %v37_v8 = vpop.xlane.xlu0 %36  ;;  %v43_v9 = vpop.xlane.xlu1 %42 }
  0x8d   :  { %v47_v10 = vmul.f32 0.017857144, %v37_v8  ;;  %v49_v11 = vmul.f32 0.017857144, %v43_v9  ;;  %v2460_v8 = vld [vmem:[%s3504_s3 + $0x7c] ss:$28 sps:$4 sm:$0xff]  }
  0x8f   :  { %v2748_v12 = vsub.f32 %v30_v0, %v47_v10  ;;  %v2750_v13 = vsub.f32 %v32_v1, %v49_v11  ;;  %v2175_v0 = vcombine.low %v136_v38, %v136_v38  ;;  %v2458_v11 = vld [vmem:[%s3504_s3 + $0x78] ss:$28 sps:$4 sm:$0xff]  }
  0x90   :  { %v40_v14 = vpop.xlane.xlu0 %39  ;;  %v46_v15 = vpop.xlane.xlu1 %45 }
  0x91   :  { %v48_v16 = vmul.f32 0.017857144, %v40_v14  ;;  %v50_v17 = vmul.f32 0.017857144, %v46_v15  ;;  %v55_v18 = vmul.f32 %v2748_v12, %v2748_v12  ;;  %v57_v19 = vmul.f32 %v2750_v13, %v2750_v13  ;;  %v2461_v15 = vld [vmem:[%s3504_s3 + $0x40] ss:$28 sps:$4 sm:$0xff]  }
  0x92   :  { %v316_v7 = vsel %vm308_vm1, %v2175_v0, 0 }
  0x93   :  { %v2756_v20 = vsub.f32 %v31_v2, %v48_v16  ;;  %v2758_v21 = vsub.f32 %v33_v5, %v50_v17  ;;  %v59_v22 = vsel %vm34_vm0, %v55_v18, 0.0  ;;  %v65_v23 = vsel %vm34_vm0, %v57_v19, 0.0  ;;  %v2466_v17 = vld [vmem:[%s3504_s3 + $0xc] ss:$28 sps:$4 sm:$0xff]   ;;  %v137_v18 = vld [vmem:[%s3504_s3 + $0xb8] sm:$0xff] }
  0x94   :  { %60 = vadd.xlane.f32.xlu0 %v59_v22  ;;  %v2464_v19 = vld [vmem:[%s3504_s3 + $0x8] ss:$28 sps:$4 sm:$0xff]  }
  0x95   :  { %v56_v24 = vmul.f32 %v2756_v20, %v2756_v20  ;;  %v58_v25 = vmul.f32 %v2758_v21, %v2758_v21 }
  0x97   :  { %v62_v26 = vsel %vm34_vm0, %v56_v24, 0.0  ;;  %v68_v27 = vsel %vm34_vm0, %v58_v25, 0.0  ;;  %v2469_v24 = vld [vmem:[%s3504_s3 + $0x80] ss:$28 sps:$4 sm:$0xff]   ;;  %v2474_v25 = vld [vmem:[%s3504_s3 + $0x4c] ss:$28 sps:$4 sm:$0xff]  }
  0x98   :  { %66 = vadd.xlane.f32.xlu0 %v65_v23  ;;  %63 = vadd.xlane.f32.xlu1 %v62_v26  ;;  %v2471_v23 = vld [vmem:[%s3504_s3 + $0x84] ss:$28 sps:$4 sm:$0xff]  }
  0x99   :  { %v2472_v26 = vld [vmem:[%s3504_s3 + $0x48] ss:$28 sps:$4 sm:$0xff]  }
  0x9c   :  { %69 = vadd.xlane.f32.xlu1 %v68_v27  ;;  %v2477_v27 = vld [vmem:[%s3504_s3 + $0x14] ss:$28 sps:$4 sm:$0xff]  }
 0x11d   :  { %v61_v43 = vpop.xlane.xlu0 %60 }
 0x11e   :  { %v71_v44 = vmul.f32 0.017857144, %v61_v43 }
 0x120   :  { %v75_v45 = vadd.f32 1.1920929e-07, %v71_v44 }
 0x121   :  { %v64_v46 = vpop.xlane.xlu1 %63  ;;  %v67_v47 = vpop.xlane.xlu0 %66 }
 0x122   :  { %2504 = vrsqrt.f32 %v75_v45  ;;  %v72_v48 = vmul.f32 0.017857144, %v64_v46  ;;  %v73_v49 = vmul.f32 0.017857144, %v67_v47 }
 0x124   :  { %v76_v50 = vadd.f32 1.1920929e-07, %v72_v48  ;;  %v77_v51 = vadd.f32 1.1920929e-07, %v73_v49 }
 0x125   :  { %v70_v52 = vpop.xlane.xlu1 %69 }
 0x126   :  { %2506 = vrsqrt.f32 %v76_v50  ;;  %v74_v53 = vmul.f32 0.017857144, %v70_v52 }
 0x127   :  { %2508 = vrsqrt.f32 %v77_v51 }
 0x128   :  { %v78_v54 = vadd.f32 1.1920929e-07, %v74_v53 }
 0x12a   :  { %2510 = vrsqrt.f32 %v78_v54 }
 0x12f   :  { %v2505_v55 = vpop.eup %2504 }
 0x130   :  { %v83_v56 = vmul.f32 %v2505_v55, %v2748_v12  ;;  %v2463_v12 = vld [vmem:[%s3504_s3 + $0x44] ss:$28 sps:$4 sm:$0xff]  }
 0x132   :  { %v94_v60 = vmul.f32 %v2150_v57, %v83_v56 }
 0x133   :  { %v2507_v58 = vpop.eup %2506 }
 0x134   :  { %v84_v59 = vmul.f32 %v2507_v58, %v2756_v20  ;;  %v2509_v61 = vpop.eup %2508  ;;  %v105_v2 = vadd.f32 %v2151_v62, %v94_v60  ;;  %v2178_v20 = vcombine.high %v137_v18, %v137_v18  ;;  %v141_v58 = vlaneseq }
 0x135   :  { %v85_v4 = vmul.f32 %v2509_v61, %v2750_v13 }
 0x136   :  { %v95_v63 = vmul.f32 %v2150_v57, %v84_v59  ;;  %v2939_v61 = vshrl.u32 %v141_v58, 7 }
 0x137   :  { %v2511_v1 = vpop.eup %2510  ;;  %v96_v10 = vmul.f32 %v2150_v57, %v85_v4 }
 0x138   :  { %v106_v3 = vadd.f32 %v2151_v62, %v95_v63  ;;  %v86_v5 = vmul.f32 %v2511_v1, %v2758_v21  ;;  %v2177_v21 = vcombine.low %v137_v18, %v137_v18  ;;  %v143_v0 = vsub.s32 0, %v2939_v61  ;;  %v2949_v1 = vld [vmem:[%s3508_s4] sm:$0xff] }
 0x139   :  { %v107_v14 = vadd.f32 %v2151_v62, %v96_v10 }
 0x13a   :  { %v109_v6 = vpack.c.bf16 %v106_v3, %v105_v2  ;;  %v97_v9 = vmul.f32 %v2150_v57, %v86_v5  ;;  %v322_v22 = vsel %vm308_vm1, %v2177_v21, 0  ;;  %v144_v4 = vrot.slane %v2949_v1, %v143_v0 }
 0x13c   :  { %2181 = vmatmul.mubr.msk.bf16.vlgmr.msra.gmra.mxu1 %vm34_vm0, %v109_v6  ;;  %v108_v13 = vadd.f32 %v2151_v62, %v97_v9 }
 0x13d   :  { %392 = vmatpush1.bf16.msra.mxu1 %v316_v7  ;;  %372 = vmatprep.mubr.bf16.mxu1 %v2683_v32 }
 0x13e   :  { %393 = vmatprep.subr.bf16.mxu1 %v2460_v8  ;;  %v110_v16 = vpack.c.bf16 %v108_v13, %v107_v14 }
 0x141   :  { %394 = vmatpush1.bf16.msra.mxu1 %v2458_v11 }
 0x142   :  { %395 = vmatprep.subr.bf16.mxu1 %v2463_v12 }
 0x144   :  { %2182 = vmatmul.mubr.msk.bf16.gmra.mxu1 %vm34_vm0, %v110_v16 }
 0x145   :  { %396 = vmatpush1.bf16.msra.mxu1 %v2461_v15  ;;  %415 = vmatprep.mubr.bf16.mxu1 %v2683_v32 }
 0x146   :  { %397 = vmatprep.subr.bf16.mxu1 %v2466_v17 }
 0x149   :  { %398 = vmatpush1.bf16.msra.mxu1 %v2464_v19 }
 0x14a   :  { %2186 = vmatprep.subr.msk.bf16.mxu1 %vm308_vm1, %v2178_v20 }
 0x14c   :  { %2184 = vmatmul.mubr.msk.bf16.vlgmr.msra.gmra.mxu1 %vm34_vm0, %v109_v6 }
 0x14d   :  { %445 = vmatpush1.bf16.msra.mxu1 %v322_v22  ;;  %425 = vmatprep.mubr.bf16.mxu1 %v2683_v32 }
 0x14e   :  { %446 = vmatprep.subr.bf16.mxu1 %v2471_v23 }
 0x151   :  { %447 = vmatpush1.bf16.msra.mxu1 %v2469_v24 }
 0x152   :  { %448 = vmatprep.subr.bf16.mxu1 %v2474_v25 }
 0x154   :  { %2185 = vmatmul.mubr.msk.bf16.gmra.mxu1 %vm34_vm0, %v110_v16 }
 0x155   :  { %449 = vmatpush1.bf16.msra.mxu1 %v2472_v26  ;;  %468 = vmatprep.mubr.bf16.mxu1 %v2683_v32 }
 0x156   :  { %450 = vmatprep.subr.bf16.mxu1 %v2477_v27 }
 0x159   :  { %451 = vmatpush1.bf16.msra.mxu1 %v2475_v28 }
 0x15a   :  { %2440 = vmatprep.subr.msk.bf16.mxu1 %vm308_vm1, %v2478_v29 }
 0x15c   :  { %2187 = vmatmul.mubr.msk.bf16.vlgmr.msra.gmra.mxu1 %vm34_vm0, %v109_v6 }
 0x15d   :  { %2373 = vmatpush3.bf16.msra.mxu1 %v328_v30  ;;  %478 = vmatprep.mubr.bf16.mxu1 %v2683_v32 }
 0x15e   :  { %2374 = vmatprep.subr.bf16.mxu1 %v2479_v31 }
 0x161   :  { %2375 = vmatpush3.bf16.msra.mxu1 %v2479_v31 }
 0x162   :  { %2376 = vmatprep.subr.bf16.mxu1 %v2480_v33 }
 0x164   :  { %2188 = vmatmul.mubr.msk.bf16.gmra.mxu1 %vm34_vm0, %v110_v16 }
 0x165   :  { %2377 = vmatpush3.bf16.msra.mxu1 %v2480_v33  ;;  %2380 = vmatprep.mubr.msk.bf16.mxu1 %vm34_vm0, %v109_v6 }
 0x166   :  { %2378 = vmatprep.subr.bf16.mxu1 %v2481_v34 }
 0x169   :  { %2379 = vmatpush3.bf16.msra.mxu1 %v2481_v34 }
 0x16a   :  { %2384 = vmatprep.subr.bf16.mxu1 %v2799_v41 }
 0x16c   :  { %2381 = vmatmul.mubr.msk.bf16.vlgmr.msra.gmra.mxu1 %vm34_vm0, %v110_v16 }
 0x16d   :  { %2385 = vmatpush3.bf16.msra.mxu1 %v2799_v41  ;;  %2388 = vmatprep.mubr.bf16.mxu1 %v2683_v32 }
 0x16e   :  { %2386 = vmatprep.subr.bf16.mxu1 %v2805_v42 }
 0x171   :  { %2387 = vmatpush3.bf16.msra.mxu1 %v2805_v42 }
 0x172   :  { %2400 = vmatprep.subr.bf16.mxu1 %v2799_v41 }
 0x174   :  { %2389 = vmatmul.mubr.bf16.vlgmr.msra.gmra.mxu1 %v2683_v32 }
 0x175   :  { %2401 = vmatpush3.bf16.msra.mxu1 %v2799_v41 }
 0x176   :  { %2402 = vmatprep.subr.bf16.mxu1 %v2805_v42 }
 0x179   :  { %2403 = vmatpush3.bf16.msra.mxu1 %v2805_v42 }
 0x17a   :  { %2416 = vmatprep.subr.bf16.mxu1 %v2799_v41 }
 0x1fc   :  { %v364_v35 = vpop.f32.mrf.mxu1 }
 0x1fd   :  { %v365_v8 = vadd.f32 %v364_v35, %v144_v4 }
 0x1fe   :  { %v2901_v36 = vpop.f32.mrf.mxu1 }
 0x200   :  { %v368_v37 = vpop.f32.mrf.mxu1 }
 0x201   :  { %v369_v15 = vadd.f32 %v368_v37, %v144_v4 }
 0x202   :  { %v2903_v38 = vpop.f32.mrf.mxu1 }
 0x204   :  { %v374_v39 = vpop.f32.mrf.mxu1 }
 0x205   :  { %v375_v6 = vadd.f32 %v374_v39, %v144_v4 }
 0x206   :  { %v2905_v40 = vpop.f32.mrf.mxu1 }
 0x208   :  { %v378_v43 = vpop.f32.mrf.mxu1 }
 0x209   :  { %v379_v11 = vadd.f32 %v378_v43, %v144_v4 }
 0x20a   :  { %v2907_v44 = vpop.f32.mrf.mxu1 }
 0x20c   :  { %v2909_v45 = vpop.f32.mrf.mxu1 }
 0x20e   :  { %v2911_v46 = vpop.f32.mrf.mxu1 }
 0x210   :  { %v2913_v47 = vpop.f32.mrf.mxu1 }
 0x212   :  { %v2915_v48 = vpop.f32.mrf.mxu1 }
 0x214   :  { %v2917_v49 = vpop.f32.mrf.mxu1 }
 0x216   :  { %v2919_v50 = vpop.f32.mrf.mxu1 }
 0x218   :  { %v2921_v51 = vpop.f32.mrf.mxu1 }
 0x21a   :  { %v2923_v52 = vpop.f32.mrf.mxu1 }
 0x21c   :  { %v2925_v53 = vpop.f32.mrf.mxu1 }
 0x21e   :  { %v2927_v54 = vpop.f32.mrf.mxu1 }
 0x220   :  { %v2929_v55 = vpop.f32.mrf.mxu1 }
 0x222   :  { %v2931_v56 = vpop.f32.mrf.mxu1 }
 0x224   :  { %v2933_v57 = vpop.f32.mrf.mxu1 }
 0x226   :  { %v2935_v59 = vpop.f32.mrf.mxu1 }
 0x228   :  { %v2937_v60 = vpop.f32.mrf.mxu1 }
 0x22a   :  { %v2941_v62 = vpop.f32.mrf.mxu1 }
 0x22c   :  { %v2943_v63 = vpop.f32.mrf.mxu1 }
 0x22e   :  { %v2951_v2 = vpop.f32.mrf.mxu1 }
 0x230   :  { %v2953_v3 = vpop.f32.mrf.mxu1 }
 0x232   :  { %v2956_v5 = vpop.f32.mrf.mxu1 }
 0x234   :  { %v2390_v7 = vpop.f32.mrf.mxu1 }
 0x235   :  { %v641_v9 = vadd.f32 %v2390_v7, %v375_v6 }
 0x236   :  { %v624_v10 = vpop.f32.mrf.mxu1 }
 0x237   :  { %v2195_v12 = vmul.f32 -1.442695, %v641_v9  ;;  %v639_v13 = vadd.f32 %v624_v10, %v365_v8 }
 0x238   :  { %v2391_v14 = vpop.f32.mrf.mxu1 }
 0x239   :  { %2512 = vpow2.f32 %v2195_v12  ;;  %v2193_v16 = vmul.f32 -1.442695, %v639_v13  ;;  %v642_v17 = vadd.f32 %v2391_v14, %v379_v11 }
 0x23a   :  { %v627_v18 = vpop.f32.mrf.mxu1 }
 0x23b   :  { %2514 = vpow2.f32 %v2193_v16  ;;  %v2196_v19 = vmul.f32 -1.442695, %v642_v17  ;;  %v640_v20 = vadd.f32 %v627_v18, %v369_v15 }
 0x23d   :  { %2516 = vpow2.f32 %v2196_v19  ;;  %v2194_v21 = vmul.f32 -1.442695, %v640_v20 }
 0x23f   :  { %2518 = vpow2.f32 %v2194_v21 }
 0x246   :  { %v2513_v22 = vpop.eup %2512 }
 0x247   :  { %v657_v23 = vadd.f32 1.0, %v2513_v22 }
 0x248   :  { %v2515_v24 = vpop.eup %2514 }
 0x249   :  { %2520 = vrcp.f32 %v657_v23  ;;  %v655_v25 = vadd.f32 1.0, %v2515_v24 }
 0x24a   :  { %v2517_v26 = vpop.eup %2516 }
 0x24b   :  { %2522 = vrcp.f32 %v655_v25  ;;  %v658_v27 = vadd.f32 1.0, %v2517_v26 }
 0x24c   :  { %v2519_v28 = vpop.eup %2518 }
 0x24d   :  { %v656_v29 = vadd.f32 1.0, %v2519_v28  ;;  %2524 = vrcp.f32 %v658_v27 }
 0x24f   :  { %2526 = vrcp.f32 %v656_v29 }
 0x256   :  { %v2521_v30 = vpop.eup %2520 }
 0x257   :  { %v669_v31 = vmul.f32 2.0, %v2521_v30  ;;  %v677_v18 = vmul.f32 0.0, %v2521_v30 }
 0x258   :  { %v2523_v33 = vpop.eup %2522 }
 0x259   :  { %v2199_v34 = vadd.f32 -1.0, %v669_v31  ;;  %v667_v35 = vmul.f32 2.0, %v2523_v33  ;;  %v675_v15 = vmul.f32 0.0, %v2523_v33 }
 0x25a   :  { %v2525_v37 = vpop.eup %2524 }
 0x25b   :  { %687 = vrot.lane.b32.xlu1 %v2199_v34, %s2684_s24  ;;  %v2197_v39 = vadd.f32 -1.0, %v667_v35  ;;  %v670_v4 = vmul.f32 2.0, %v2525_v37  ;;  %v678_v24 = vmul.f32 0.0, %v2525_v37 }
 0x25c   :  { %v2527_v43 = vpop.eup %2526 }
 0x25d   :  { %683 = vrot.lane.b32.xlu0 %v2197_v39, %s2684_s24  ;;  %v668_v58 = vmul.f32 2.0, %v2527_v43  ;;  %v2200_v6 = vadd.f32 -1.0, %v670_v4  ;;  %v676_v19 = vmul.f32 0.0, %v2527_v43 }
 0x25f   :  { %v2198_v0 = vadd.f32 -1.0, %v668_v58 }
 0x261   :  { %685 = vrot.lane.b32.xlu1 %v2198_v0, %s2684_s24 }
 0x265   :  { %689 = vrot.lane.b32.xlu1 %v2200_v6, %s2684_s24 }
 0x2cd   :  { %v688_v7 = vpop.permute.xlu1 %687 }
 0x2ce   :  { %v697_v11 = vmul.f32 %v2521_v30, %v688_v7 }
 0x2cf   :  { %v684_v8 = vpop.permute.xlu0 %683 }
 0x2d0   :  { %v695_v9 = vmul.f32 %v2523_v33, %v684_v8 }
 0x2d2   :  { %703 = vrot.lane.b32.xlu0 %v695_v9, %s2685_s25 }
 0x2d3   :  { %v686_v10 = vpop.permute.xlu1 %685 }
 0x2d4   :  { %v696_v12 = vmul.f32 %v2527_v43, %v686_v10 }
 0x2d6   :  { %707 = vrot.lane.b32.xlu0 %v697_v11, %s2685_s25  ;;  %705 = vrot.lane.b32.xlu1 %v696_v12, %s2685_s25 }
 0x2d7   :  { %v690_v13 = vpop.permute.xlu1 %689 }
 0x2d8   :  { %v698_v14 = vmul.f32 %v2525_v37, %v690_v13 }
 0x2da   :  { %709 = vrot.lane.b32.xlu1 %v698_v14, %s2685_s25 }
 0x344   :  { %v704_v16 = vpop.permute.xlu0 %703 }
 0x345   :  { %v2966_v17 = vadd.f32 %v704_v16, %v675_v15 }
 0x347   :  { %2528 = vtanh.f32 %v2966_v17 }
 0x348   :  { %v708_v20 = vpop.permute.xlu0 %707  ;;  %v706_v21 = vpop.permute.xlu1 %705 }
 0x349   :  { %v2969_v22 = vadd.f32 %v708_v20, %v677_v18  ;;  %v2971_v23 = vadd.f32 %v706_v21, %v676_v19 }
 0x34b   :  { %2530 = vtanh.f32 %v2969_v22 }
 0x34c   :  { %2532 = vtanh.f32 %v2971_v23  ;;  %v710_v25 = vpop.permute.xlu1 %709 }
 0x34d   :  { %v2975_v26 = vadd.f32 %v710_v25, %v678_v24 }
 0x34f   :  { %2534 = vtanh.f32 %v2975_v26 }
 0x354   :  { %v2529_v27 = vpop.eup %2528 }
 0x355   :  { %727 = vrot.lane.b32.xlu0 %v2529_v27, %s2684_s24 }
 0x358   :  { %v2531_v28 = vpop.eup %2530 }
 0x359   :  { %v2533_v29 = vpop.eup %2532  ;;  %731 = vrot.lane.b32.xlu0 %v2531_v28, %s2684_s24 }
 0x35a   :  { %729 = vrot.lane.b32.xlu1 %v2533_v29, %s2684_s24 }
 0x35c   :  { %v2535_v31 = vpop.eup %2534 }
 0x35e   :  { %733 = vrot.lane.b32.xlu1 %v2535_v31, %s2684_s24 }
 0x3c7   :  { %v728_v34 = vpop.permute.xlu0 %727 }
 0x3c8   :  { %v2982_v39 = vmul.f32 %v2523_v33, %v728_v34 }
 0x3cb   :  { %v732_v0 = vpop.permute.xlu0 %731 }
 0x3cc   :  { %v730_v35 = vpop.permute.xlu1 %729  ;;  %v2988_v7 = vmul.f32 %v2521_v30, %v732_v0  ;;  %v147_v30 = vsub.s32 1, %v2939_v61 }
 0x3cd   :  { %v2984_v58 = vmul.f32 %v2527_v43, %v730_v35 }
 0x3cf   :  { %v743_v4 = vpack.c.bf16 %v2984_v58, %v2982_v39 }
 0x3d0   :  { %v734_v6 = vpop.permute.xlu1 %733 }
 0x3d1   :  { %v2990_v8 = vmul.f32 %v2525_v37, %v734_v6  ;;  %776 = vrot.lane.b32.xlu0 %v743_v4, %s2685_s25  ;;  %v148_v37 = vrot.slane %v2949_v1, %v147_v30 }
 0x3d3   :  { %v744_v9 = vpack.c.bf16 %v2990_v8, %v2988_v7  ;;  %v377_v10 = vadd.f32 %v2905_v40, %v148_v37  ;;  %v367_v12 = vadd.f32 %v2901_v36, %v148_v37  ;;  %v381_v15 = vadd.f32 %v2907_v44, %v148_v37 }
 0x3d4   :  { %v371_v20 = vadd.f32 %v2903_v38, %v148_v37 }
 0x3d5   :  { %778 = vrot.lane.b32.xlu1 %v744_v9, %s2685_s25 }
 0x443   :  { %v777_v33 = vpop.permute.xlu0 %776 }
 0x444   :  { %2396 = vmatprep.mubr.msk.bf16.mxu0 %vm586_vm2, %v777_v33 }
 0x447   :  { %v779_v43 = vpop.permute.xlu1 %778 }
 0x448   :  { %2397 = vmatmul.mubr.msk.bf16.vlgmr.msra.gmra.mxu0 %vm586_vm2, %v779_v43 }
 0x449   :  { %2409 = vmatpush3.bf16.msra.mxu0 %v2799_v41 }
 0x44a   :  { %2410 = vmatprep.subr.bf16.mxu0 %v2805_v42 }
 0x44d   :  { %2411 = vmatpush3.bf16.msra.mxu0 %v2805_v42 }
 0x44e   :  { %2424 = vmatprep.subr.bf16.mxu0 %v2799_v41 }
 0x508   :  { %v2398_v11 = vpop.f32.mrf.mxu0 }
 0x509   :  { %v837_v13 = vadd.f32 %v2398_v11, %v377_v10 }
 0x50a   :  { %v820_v14 = vpop.f32.mrf.mxu0 }
 0x50b   :  { %v2209_v16 = vmul.f32 -1.442695, %v837_v13  ;;  %v835_v18 = vadd.f32 %v820_v14, %v367_v12 }
 0x50c   :  { %v2399_v19 = vpop.f32.mrf.mxu0 }
 0x50d   :  { %2536 = vpow2.f32 %v2209_v16  ;;  %v2207_v21 = vmul.f32 -1.442695, %v835_v18  ;;  %v838_v24 = vadd.f32 %v2399_v19, %v381_v15 }
 0x50e   :  { %v823_v25 = vpop.f32.mrf.mxu0 }
 0x50f   :  { %2538 = vpow2.f32 %v2207_v21  ;;  %v2210_v27 = vmul.f32 -1.442695, %v838_v24  ;;  %v836_v28 = vadd.f32 %v823_v25, %v371_v20 }
 0x511   :  { %2540 = vpow2.f32 %v2210_v27  ;;  %v2208_v40 = vmul.f32 -1.442695, %v836_v28 }
 0x513   :  { %2542 = vpow2.f32 %v2208_v40 }
 0x51a   :  { %v2537_v36 = vpop.eup %2536 }
 0x51b   :  { %v853_v29 = vadd.f32 1.0, %v2537_v36 }
 0x51c   :  { %v2539_v31 = vpop.eup %2538 }
 0x51d   :  { %v851_v34 = vadd.f32 1.0, %v2539_v31  ;;  %2544 = vrcp.f32 %v853_v29 }
 0x51e   :  { %v2541_v44 = vpop.eup %2540 }
 0x51f   :  { %2546 = vrcp.f32 %v851_v34  ;;  %v854_v35 = vadd.f32 1.0, %v2541_v44 }
 0x520   :  { %v2543_v0 = vpop.eup %2542 }
 0x521   :  { %v852_v38 = vadd.f32 1.0, %v2543_v0  ;;  %2548 = vrcp.f32 %v854_v35 }
 0x523   :  { %2550 = vrcp.f32 %v852_v38 }
 0x52a   :  { %v2545_v4 = vpop.eup %2544 }
 0x52b   :  { %v865_v30 = vmul.f32 2.0, %v2545_v4  ;;  %v873_v36 = vmul.f32 %v2545_v4, %v2969_v22 }
 0x52c   :  { %v2547_v6 = vpop.eup %2546 }
 0x52d   :  { %v863_v9 = vmul.f32 2.0, %v2547_v6  ;;  %v2213_v11 = vadd.f32 -1.0, %v865_v30  ;;  %v871_v27 = vmul.f32 %v2547_v6, %v2966_v17 }
 0x52e   :  { %v2549_v33 = vpop.eup %2548 }
 0x52f   :  { %v2211_v43 = vadd.f32 -1.0, %v863_v9  ;;  %v866_v13 = vmul.f32 2.0, %v2549_v33  ;;  %v874_v0 = vmul.f32 %v2549_v33, %v2975_v26 }
 0x530   :  { %v2551_v37 = vpop.eup %2550 }
 0x531   :  { %879 = vrot.lane.b32.xlu0 %v2211_v43, %s2684_s24  ;;  %v864_v10 = vmul.f32 2.0, %v2551_v37  ;;  %v2214_v14 = vadd.f32 -1.0, %v866_v13  ;;  %v872_v29 = vmul.f32 %v2551_v37, %v2971_v23 }
 0x533   :  { %v2212_v12 = vadd.f32 -1.0, %v864_v10 }
 0x535   :  { %883 = vrot.lane.b32.xlu0 %v2213_v11, %s2684_s24  ;;  %881 = vrot.lane.b32.xlu1 %v2212_v12, %s2684_s24 }
 0x539   :  { %885 = vrot.lane.b32.xlu1 %v2214_v14, %s2684_s24 }
 0x5a3   :  { %v880_v15 = vpop.permute.xlu0 %879 }
 0x5a4   :  { %v891_v16 = vmul.f32 %v2547_v6, %v880_v15 }
 0x5a6   :  { %899 = vrot.lane.b32.xlu0 %v891_v16, %s2685_s25 }
 0x5a7   :  { %v884_v18 = vpop.permute.xlu0 %883  ;;  %v882_v19 = vpop.permute.xlu1 %881 }
 0x5a8   :  { %v893_v20 = vmul.f32 %v2545_v4, %v884_v18  ;;  %v892_v21 = vmul.f32 %v2551_v37, %v882_v19 }
 0x5aa   :  { %903 = vrot.lane.b32.xlu0 %v893_v20, %s2685_s25  ;;  %901 = vrot.lane.b32.xlu1 %v892_v21, %s2685_s25 }
 0x5ab   :  { %v886_v24 = vpop.permute.xlu1 %885 }
 0x5ac   :  { %v894_v25 = vmul.f32 %v2549_v33, %v886_v24 }
 0x5ae   :  { %905 = vrot.lane.b32.xlu1 %v894_v25, %s2685_s25 }
 0x618   :  { %v900_v28 = vpop.permute.xlu0 %899 }
 0x619   :  { %v3017_v40 = vadd.f32 %v900_v28, %v871_v27 }
 0x61b   :  { %2552 = vtanh.f32 %v3017_v40 }
 0x61c   :  { %v904_v31 = vpop.permute.xlu0 %903  ;;  %v902_v34 = vpop.permute.xlu1 %901 }
 0x61d   :  { %v3022_v44 = vadd.f32 %v904_v31, %v873_v36  ;;  %v3024_v35 = vadd.f32 %v902_v34, %v872_v29 }
 0x61f   :  { %2554 = vtanh.f32 %v3022_v44 }
 0x620   :  { %2556 = vtanh.f32 %v3024_v35  ;;  %v906_v17 = vpop.permute.xlu1 %905 }
 0x621   :  { %v3029_v38 = vadd.f32 %v906_v17, %v874_v0 }
 0x623   :  { %2558 = vtanh.f32 %v3029_v38 }
 0x628   :  { %v2553_v22 = vpop.eup %2552 }
 0x629   :  { %923 = vrot.lane.b32.xlu0 %v2553_v22, %s2684_s24 }
 0x62c   :  { %v2555_v23 = vpop.eup %2554 }
 0x62d   :  { %v2557_v9 = vpop.eup %2556  ;;  %927 = vrot.lane.b32.xlu0 %v2555_v23, %s2684_s24 }
 0x62e   :  { %925 = vrot.lane.b32.xlu1 %v2557_v9, %s2684_s24 }
 0x630   :  { %v2559_v43 = vpop.eup %2558 }
 0x632   :  { %929 = vrot.lane.b32.xlu1 %v2559_v43, %s2684_s24 }
 0x69b   :  { %v924_v26 = vpop.permute.xlu0 %923 }
 0x69c   :  { %v3036_v10 = vmul.f32 %v2547_v6, %v924_v26 }
 0x69f   :  { %v928_v12 = vpop.permute.xlu0 %927 }
 0x6a0   :  { %v926_v30 = vpop.permute.xlu1 %925  ;;  %v3042_v15 = vmul.f32 %v2545_v4, %v928_v12  ;;  %v151_v4 = vsub.s32 2, %v2939_v61 }
 0x6a1   :  { %v3038_v11 = vmul.f32 %v2551_v37, %v926_v30 }
 0x6a3   :  { %v939_v13 = vpack.c.bf16 %v3038_v11, %v3036_v10 }
 0x6a4   :  { %v930_v14 = vpop.permute.xlu1 %929 }
 0x6a5   :  { %v3044_v16 = vmul.f32 %v2549_v33, %v930_v14  ;;  %972 = vrot.lane.b32.xlu0 %v939_v13, %s2685_s25  ;;  %v152_v33 = vrot.slane %v2949_v1, %v151_v4 }
 0x6a7   :  { %v940_v18 = vpack.c.bf16 %v3044_v16, %v3042_v15  ;;  %v428_v19 = vadd.f32 %v2917_v49, %v152_v33  ;;  %v418_v21 = vadd.f32 %v2909_v45, %v152_v33  ;;  %v432_v27 = vadd.f32 %v2921_v51, %v152_v33 }
 0x6a8   :  { %v422_v31 = vadd.f32 %v2913_v47, %v152_v33 }
 0x6a9   :  { %974 = vrot.lane.b32.xlu1 %v940_v18, %s2685_s25 }
 0x717   :  { %v973_v6 = vpop.permute.xlu0 %972 }
 0x718   :  { %2404 = vmatprep.mubr.msk.bf16.mxu1 %vm586_vm2, %v973_v6 }
 0x71b   :  { %v975_v37 = vpop.permute.xlu1 %974 }
 0x71c   :  { %2405 = vmatmul.mubr.msk.bf16.vlgmr.msra.gmra.mxu1 %vm586_vm2, %v975_v37 }
 0x71d   :  { %2417 = vmatpush3.bf16.msra.mxu1 %v2799_v41 }
 0x71e   :  { %2418 = vmatprep.subr.bf16.mxu1 %v2805_v42 }
 0x721   :  { %2419 = vmatpush3.bf16.msra.mxu1 %v2805_v42 }
 0x722   :  { %2432 = vmatprep.subr.bf16.mxu1 %v2799_v41 }
 0x7dc   :  { %v2406_v20 = vpop.f32.mrf.mxu1 }
 0x7dd   :  { %v1033_v24 = vadd.f32 %v2406_v20, %v428_v19 }
 0x7de   :  { %v1016_v25 = vpop.f32.mrf.mxu1 }
 0x7df   :  { %v2223_v28 = vmul.f32 -1.442695, %v1033_v24  ;;  %v1031_v36 = vadd.f32 %v1016_v25, %v418_v21 }
 0x7e0   :  { %v2407_v29 = vpop.f32.mrf.mxu1 }
 0x7e1   :  { %2560 = vpow2.f32 %v2223_v28  ;;  %v2221_v34 = vmul.f32 -1.442695, %v1031_v36  ;;  %v1034_v0 = vadd.f32 %v2407_v29, %v432_v27 }
 0x7e2   :  { %v1019_v17 = vpop.f32.mrf.mxu1 }
 0x7e3   :  { %2562 = vpow2.f32 %v2221_v34  ;;  %v2224_v22 = vmul.f32 -1.442695, %v1034_v0  ;;  %v1032_v23 = vadd.f32 %v1019_v17, %v422_v31 }
 0x7e5   :  { %2564 = vpow2.f32 %v2224_v22  ;;  %v2222_v49 = vmul.f32 -1.442695, %v1032_v23 }
 0x7e7   :  { %2566 = vpow2.f32 %v2222_v49 }
 0x7ee   :  { %v2561_v45 = vpop.eup %2560 }
 0x7ef   :  { %v1049_v9 = vadd.f32 1.0, %v2561_v45 }
 0x7f0   :  { %v2563_v43 = vpop.eup %2562 }
 0x7f1   :  { %v1047_v26 = vadd.f32 1.0, %v2563_v43  ;;  %2568 = vrcp.f32 %v1049_v9 }
 0x7f2   :  { %v2565_v51 = vpop.eup %2564 }
 0x7f3   :  { %2570 = vrcp.f32 %v1047_v26  ;;  %v1050_v30 = vadd.f32 1.0, %v2565_v51 }
 0x7f4   :  { %v2567_v12 = vpop.eup %2566 }
 0x7f5   :  { %v1048_v47 = vadd.f32 1.0, %v2567_v12  ;;  %2572 = vrcp.f32 %v1050_v30 }
 0x7f7   :  { %2574 = vrcp.f32 %v1048_v47 }
 0x7fe   :  { %v2569_v13 = vpop.eup %2568 }
 0x7ff   :  { %v1061_v4 = vmul.f32 2.0, %v2569_v13  ;;  %v1069_v45 = vmul.f32 %v2569_v13, %v3022_v44 }
 0x800   :  { %v2571_v14 = vpop.eup %2570 }
 0x801   :  { %v1059_v18 = vmul.f32 2.0, %v2571_v14  ;;  %v2227_v20 = vadd.f32 -1.0, %v1061_v4  ;;  %v1067_v22 = vmul.f32 %v2571_v14, %v3017_v40 }
 0x802   :  { %v2573_v6 = vpop.eup %2572 }
 0x803   :  { %v2225_v37 = vadd.f32 -1.0, %v1059_v18  ;;  %v1062_v24 = vmul.f32 2.0, %v2573_v6  ;;  %v1070_v12 = vmul.f32 %v2573_v6, %v3029_v38 }
 0x804   :  { %v2575_v33 = vpop.eup %2574 }
 0x805   :  { %1075 = vrot.lane.b32.xlu0 %v2225_v37, %s2684_s24  ;;  %v1060_v19 = vmul.f32 2.0, %v2575_v33  ;;  %v2228_v25 = vadd.f32 -1.0, %v1062_v24  ;;  %v1068_v9 = vmul.f32 %v2575_v33, %v3024_v35 }
 0x807   :  { %v2226_v21 = vadd.f32 -1.0, %v1060_v19 }
 0x809   :  { %1079 = vrot.lane.b32.xlu0 %v2227_v20, %s2684_s24  ;;  %1077 = vrot.lane.b32.xlu1 %v2226_v21, %s2684_s24 }
 0x80d   :  { %1081 = vrot.lane.b32.xlu1 %v2228_v25, %s2684_s24 }
 0x877   :  { %v1076_v27 = vpop.permute.xlu0 %1075 }
 0x878   :  { %v1087_v28 = vmul.f32 %v2571_v14, %v1076_v27 }
 0x87a   :  { %1095 = vrot.lane.b32.xlu0 %v1087_v28, %s2685_s25 }
 0x87b   :  { %v1080_v36 = vpop.permute.xlu0 %1079  ;;  %v1078_v29 = vpop.permute.xlu1 %1077 }
 0x87c   :  { %v1089_v31 = vmul.f32 %v2569_v13, %v1080_v36  ;;  %v1088_v34 = vmul.f32 %v2575_v33, %v1078_v29 }
 0x87e   :  { %1099 = vrot.lane.b32.xlu0 %v1089_v31, %s2685_s25  ;;  %1097 = vrot.lane.b32.xlu1 %v1088_v34, %s2685_s25 }
 0x87f   :  { %v1082_v0 = vpop.permute.xlu1 %1081 }
 0x880   :  { %v1090_v17 = vmul.f32 %v2573_v6, %v1082_v0 }
 0x882   :  { %1101 = vrot.lane.b32.xlu1 %v1090_v17, %s2685_s25 }
 0x8ec   :  { %v1096_v23 = vpop.permute.xlu0 %1095 }
 0x8ed   :  { %v3071_v49 = vadd.f32 %v1096_v23, %v1067_v22 }
 0x8ef   :  { %2576 = vtanh.f32 %v3071_v49 }
 0x8f0   :  { %v1100_v43 = vpop.permute.xlu0 %1099  ;;  %v1098_v26 = vpop.permute.xlu1 %1097 }
 0x8f1   :  { %v3076_v51 = vadd.f32 %v1100_v43, %v1069_v45  ;;  %v3078_v30 = vadd.f32 %v1098_v26, %v1068_v9 }
 0x8f3   :  { %2578 = vtanh.f32 %v3076_v51 }
 0x8f4   :  { %2580 = vtanh.f32 %v3078_v30  ;;  %v1102_v40 = vpop.permute.xlu1 %1101 }
 0x8f5   :  { %v3083_v47 = vadd.f32 %v1102_v40, %v1070_v12 }
 0x8f7   :  { %2582 = vtanh.f32 %v3083_v47 }
 0x8fc   :  { %v2577_v44 = vpop.eup %2576 }
 0x8fd   :  { %1119 = vrot.lane.b32.xlu0 %v2577_v44, %s2684_s24 }
 0x900   :  { %v2579_v35 = vpop.eup %2578 }
 0x901   :  { %v2581_v18 = vpop.eup %2580  ;;  %1123 = vrot.lane.b32.xlu0 %v2579_v35, %s2684_s24 }
 0x902   :  { %1121 = vrot.lane.b32.xlu1 %v2581_v18, %s2684_s24 }
 0x904   :  { %v2583_v37 = vpop.eup %2582 }
 0x906   :  { %1125 = vrot.lane.b32.xlu1 %v2583_v37, %s2684_s24 }
 0x96f   :  { %v1120_v38 = vpop.permute.xlu0 %1119 }
 0x970   :  { %v3090_v19 = vmul.f32 %v2571_v14, %v1120_v38 }
 0x973   :  { %v1124_v21 = vpop.permute.xlu0 %1123 }
 0x974   :  { %v1122_v4 = vpop.permute.xlu1 %1121  ;;  %v3096_v27 = vmul.f32 %v2569_v13, %v1124_v21  ;;  %v155_v13 = vsub.s32 3, %v2939_v61 }
 0x975   :  { %v3092_v20 = vmul.f32 %v2575_v33, %v1122_v4 }
 0x977   :  { %v1135_v24 = vpack.c.bf16 %v3092_v20, %v3090_v19 }
 0x978   :  { %v1126_v25 = vpop.permute.xlu1 %1125 }
 0x979   :  { %v3098_v28 = vmul.f32 %v2573_v6, %v1126_v25  ;;  %1168 = vrot.lane.b32.xlu0 %v1135_v24, %s2685_s25  ;;  %v156_v6 = vrot.slane %v2949_v1, %v155_v13 }
 0x97b   :  { %v1136_v36 = vpack.c.bf16 %v3098_v28, %v3096_v27  ;;  %v430_v29 = vadd.f32 %v2919_v50, %v156_v6  ;;  %v420_v34 = vadd.f32 %v2911_v46, %v156_v6  ;;  %v434_v22 = vadd.f32 %v2923_v52, %v156_v6 }
 0x97d   :  { %1170 = vrot.lane.b32.xlu1 %v1136_v36, %s2685_s25 }
 0x9eb   :  { %v1169_v14 = vpop.permute.xlu0 %1168 }
 0x9ec   :  { %2412 = vmatprep.mubr.msk.bf16.mxu0 %vm586_vm2, %v1169_v14 }
 0x9ef   :  { %v1171_v33 = vpop.permute.xlu1 %1170 }
 0x9f0   :  { %2413 = vmatmul.mubr.msk.bf16.vlgmr.msra.gmra.mxu0 %vm586_vm2, %v1171_v33 }
 0x9f1   :  { %2425 = vmatpush3.bf16.msra.mxu0 %v2799_v41 }
 0x9f2   :  { %2426 = vmatprep.subr.bf16.mxu0 %v2805_v42 }
 0x9f5   :  { %2427 = vmatpush3.bf16.msra.mxu0 %v2805_v42  ;;  %v424_v42 = vadd.f32 %v2915_v48, %v156_v6 }
 0x9f6   :  { %2085 = vmatprep.subr.bf16.mxu0 %v2683_v32 }
 0xab0   :  { %v2414_v31 = vpop.f32.mrf.mxu0 }
 0xab1   :  { %v1229_v0 = vadd.f32 %v2414_v31, %v430_v29 }
 0xab2   :  { %v1212_v17 = vpop.f32.mrf.mxu0 }
 0xab3   :  { %v2237_v41 = vmul.f32 -1.442695, %v1229_v0  ;;  %v1227_v23 = vadd.f32 %v1212_v17, %v420_v34 }
 0xab4   :  { %v2415_v45 = vpop.f32.mrf.mxu0 }
 0xab5   :  { %2584 = vpow2.f32 %v2237_v41  ;;  %v2235_v9 = vmul.f32 -1.442695, %v1227_v23  ;;  %v1230_v43 = vadd.f32 %v2415_v45, %v434_v22 }
 0xab6   :  { %v1215_v26 = vpop.f32.mrf.mxu0 }
 0xab7   :  { %2586 = vpow2.f32 %v2235_v9  ;;  %v2238_v12 = vmul.f32 -1.442695, %v1230_v43  ;;  %v1228_v40 = vadd.f32 %v1215_v26, %v424_v42 }
 0xab9   :  { %2588 = vpow2.f32 %v2238_v12  ;;  %v2236_v50 = vmul.f32 -1.442695, %v1228_v40 }
 0xabb   :  { %2590 = vpow2.f32 %v2236_v50 }
 0xac2   :  { %v2585_v46 = vpop.eup %2584 }
 0xac3   :  { %v1245_v44 = vadd.f32 1.0, %v2585_v46 }
 0xac4   :  { %v2587_v35 = vpop.eup %2586 }
 0xac5   :  { %v1243_v18 = vadd.f32 1.0, %v2587_v35  ;;  %2592 = vrcp.f32 %v1245_v44 }
 0xac6   :  { %v2589_v52 = vpop.eup %2588 }
 0xac7   :  { %2594 = vrcp.f32 %v1243_v18  ;;  %v1246_v37 = vadd.f32 1.0, %v2589_v52 }
 0xac8   :  { %v2591_v38 = vpop.eup %2590 }
 0xac9   :  { %v1244_v48 = vadd.f32 1.0, %v2591_v38  ;;  %2596 = vrcp.f32 %v1246_v37 }
 0xacb   :  { %2598 = vrcp.f32 %v1244_v48 }
 0xad2   :  { %v2593_v4 = vpop.eup %2592 }
 0xad3   :  { %v1257_v14 = vmul.f32 2.0, %v2593_v4  ;;  %v1265_v40 = vmul.f32 %v2593_v4, %v3076_v51 }
 0xad4   :  { %v2595_v21 = vpop.eup %2594 }
 0xad5   :  { %v1255_v24 = vmul.f32 2.0, %v2595_v21  ;;  %v2241_v6 = vadd.f32 -1.0, %v1257_v14  ;;  %v1263_v43 = vmul.f32 %v2595_v21, %v3071_v49 }
 0xad6   :  { %v2597_v25 = vpop.eup %2596 }
 0xad7   :  { %v2239_v36 = vadd.f32 -1.0, %v1255_v24  ;;  %v1258_v31 = vmul.f32 2.0, %v2597_v25  ;;  %v1266_v52 = vmul.f32 %v2597_v25, %v3083_v47 }
 0xad8   :  { %v2599_v33 = vpop.eup %2598 }
 0xad9   :  { %1271 = vrot.lane.b32.xlu0 %v2239_v36, %s2684_s24  ;;  %v1256_v13 = vmul.f32 2.0, %v2599_v33  ;;  %v2242_v34 = vadd.f32 -1.0, %v1258_v31  ;;  %v1264_v50 = vmul.f32 %v2599_v33, %v3078_v30 }
 0xadb   :  { %v2240_v29 = vadd.f32 -1.0, %v1256_v13 }
 0xadd   :  { %1275 = vrot.lane.b32.xlu0 %v2241_v6, %s2684_s24  ;;  %1273 = vrot.lane.b32.xlu1 %v2240_v29, %s2684_s24 }
 0xae1   :  { %1277 = vrot.lane.b32.xlu1 %v2242_v34, %s2684_s24 }
 0xb4b   :  { %v1272_v0 = vpop.permute.xlu0 %1271 }
 0xb4c   :  { %v1283_v17 = vmul.f32 %v2595_v21, %v1272_v0 }
 0xb4e   :  { %1291 = vrot.lane.b32.xlu0 %v1283_v17, %s2685_s25  ;;  %v159_v17 = vsub.s32 4, %v2939_v61 }
 0xb4f   :  { %v1276_v22 = vpop.permute.xlu0 %1275  ;;  %v1274_v41 = vpop.permute.xlu1 %1273 }
 0xb50   :  { %v1285_v23 = vmul.f32 %v2593_v4, %v1276_v22  ;;  %v1284_v45 = vmul.f32 %v2599_v33, %v1274_v41  ;;  %v160_v22 = vrot.slane %v2949_v1, %v159_v17 }
 0xb52   :  { %1295 = vrot.lane.b32.xlu0 %v1285_v23, %s2685_s25  ;;  %1293 = vrot.lane.b32.xlu1 %v1284_v45, %s2685_s25  ;;  %v481_v41 = vadd.f32 %v2933_v57, %v160_v22  ;;  %v471_v45 = vadd.f32 %v2925_v53, %v160_v22 }
 0xb53   :  { %v1278_v42 = vpop.permute.xlu1 %1277 }
 0xb54   :  { %v1286_v9 = vmul.f32 %v2597_v25, %v1278_v42 }
 0xb56   :  { %1297 = vrot.lane.b32.xlu1 %v1286_v9, %s2685_s25 }
 0xbc0   :  { %v1292_v26 = vpop.permute.xlu0 %1291 }
 0xbc1   :  { %v3125_v12 = vadd.f32 %v1292_v26, %v1263_v43  ;;  %v485_v43 = vadd.f32 %v2937_v60, %v160_v22 }
 0xbc3   :  { %2600 = vtanh.f32 %v3125_v12 }
 0xbc4   :  { %v1296_v46 = vpop.permute.xlu0 %1295  ;;  %v1294_v44 = vpop.permute.xlu1 %1293 }
 0xbc5   :  { %v3130_v35 = vadd.f32 %v1296_v46, %v1265_v40  ;;  %v3132_v18 = vadd.f32 %v1294_v44, %v1264_v50  ;;  %v475_v46 = vadd.f32 %v2929_v55, %v160_v22 }
 0xbc7   :  { %2602 = vtanh.f32 %v3130_v35 }
 0xbc8   :  { %2604 = vtanh.f32 %v3132_v18  ;;  %v1298_v49 = vpop.permute.xlu1 %1297 }
 0xbc9   :  { %v3137_v37 = vadd.f32 %v1298_v49, %v1266_v52 }
 0xbcb   :  { %2606 = vtanh.f32 %v3137_v37 }
 0xbd0   :  { %v2601_v51 = vpop.eup %2600 }
 0xbd1   :  { %1315 = vrot.lane.b32.xlu0 %v2601_v51, %s2684_s24 }
 0xbd4   :  { %v2603_v30 = vpop.eup %2602 }
 0xbd5   :  { %v2605_v38 = vpop.eup %2604  ;;  %1319 = vrot.lane.b32.xlu0 %v2603_v30, %s2684_s24 }
 0xbd6   :  { %1317 = vrot.lane.b32.xlu1 %v2605_v38, %s2684_s24 }
 0xbd8   :  { %v2607_v48 = vpop.eup %2606 }
 0xbda   :  { %1321 = vrot.lane.b32.xlu1 %v2607_v48, %s2684_s24 }
 0xc43   :  { %v1316_v47 = vpop.permute.xlu0 %1315 }
 0xc44   :  { %v3144_v36 = vmul.f32 %v2595_v21, %v1316_v47 }
 0xc47   :  { %v1320_v13 = vpop.permute.xlu0 %1319 }
 0xc48   :  { %v1318_v24 = vpop.permute.xlu1 %1317  ;;  %v3150_v31 = vmul.f32 %v2593_v4, %v1320_v13  ;;  %v2680_v4 = vld [vmem:[%s3505_s5 + $0x8] sm:$0xff]  }
 0xc49   :  { %v3146_v14 = vmul.f32 %v2599_v33, %v1318_v24 }
 0xc4b   :  { %v1331_v6 = vpack.c.bf16 %v3146_v14, %v3144_v36 }
 0xc4c   :  { %v1322_v29 = vpop.permute.xlu1 %1321 }
 0xc4d   :  { %v3152_v34 = vmul.f32 %v2597_v25, %v1322_v29  ;;  %1356 = vrot.lane.b32.xlu0 %v1331_v6, %s2685_s25  ;;  %v2681_v25 = vld [vmem:[%s3505_s5] sm:$0xff]  }
 0xc4f   :  { %v1332_v0 = vpack.c.bf16 %v3152_v34, %v3150_v31 }
 0xc51   :  { %1358 = vrot.lane.b32.xlu1 %v1332_v0, %s2685_s25 }
 0xcbf   :  { %v1357_v21 = vpop.permute.xlu0 %1356 }
 0xcc0   :  { %2420 = vmatprep.mubr.msk.bf16.mxu1 %vm586_vm2, %v1357_v21 }
 0xcc3   :  { %v1359_v33 = vpop.permute.xlu1 %1358 }
 0xcc4   :  { %2421 = vmatmul.mubr.msk.bf16.vlgmr.msra.gmra.mxu1 %vm586_vm2, %v1359_v33 }
 0xcc5   :  { %2433 = vmatpush3.bf16.msra.mxu1 %v2680_v4 }
 0xcc6   :  { %2434 = vmatprep.subr.bf16.mxu1 %v2681_v25 }
 0xcc9   :  { %2435 = vmatpush3.bf16.msra.mxu1 %v2681_v25 }
 0xd84   :  { %v2422_v23 = vpop.f32.mrf.mxu1 }
 0xd85   :  { %v1417_v42 = vadd.f32 %v2422_v23, %v481_v41 }
 0xd86   :  { %v1400_v9 = vpop.f32.mrf.mxu1 }
 0xd87   :  { %v2251_v26 = vmul.f32 -1.442695, %v1417_v42  ;;  %v1415_v40 = vadd.f32 %v1400_v9, %v471_v45 }
 0xd88   :  { %v2423_v50 = vpop.f32.mrf.mxu1 }
 0xd89   :  { %2608 = vpow2.f32 %v2251_v26  ;;  %v2249_v44 = vmul.f32 -1.442695, %v1415_v40  ;;  %v1418_v52 = vadd.f32 %v2423_v50, %v485_v43 }
 0xd8a   :  { %v1403_v49 = vpop.f32.mrf.mxu1 }
 0xd8b   :  { %2610 = vpow2.f32 %v2249_v44  ;;  %v2252_v1 = vmul.f32 -1.442695, %v1418_v52  ;;  %v1416_v51 = vadd.f32 %v1403_v49, %v475_v46 }
 0xd8d   :  { %2612 = vpow2.f32 %v2252_v1  ;;  %v2250_v57 = vmul.f32 -1.442695, %v1416_v51 }
 0xd8f   :  { %2614 = vpow2.f32 %v2250_v57 }
 0xd96   :  { %v2609_v53 = vpop.eup %2608 }
 0xd97   :  { %v1433_v30 = vadd.f32 1.0, %v2609_v53 }
 0xd98   :  { %v2611_v38 = vpop.eup %2610 }
 0xd99   :  { %v1431_v48 = vadd.f32 1.0, %v2611_v38  ;;  %2616 = vrcp.f32 %v1433_v30 }
 0xd9a   :  { %v2613_v60 = vpop.eup %2612 }
 0xd9b   :  { %2618 = vrcp.f32 %v1431_v48  ;;  %v1434_v47 = vadd.f32 1.0, %v2613_v60 }
 0xd9c   :  { %v2615_v24 = vpop.eup %2614 }
 0xd9d   :  { %v1432_v55 = vadd.f32 1.0, %v2615_v24  ;;  %2620 = vrcp.f32 %v1434_v47 }
 0xd9f   :  { %2622 = vrcp.f32 %v1432_v55 }
 0xda6   :  { %v2617_v13 = vpop.eup %2616 }
 0xda7   :  { %v1445_v33 = vmul.f32 2.0, %v2617_v13  ;;  %v1453_v1 = vmul.f32 %v2617_v13, %v3130_v35 }
 0xda8   :  { %v2619_v6 = vpop.eup %2618 }
 0xda9   :  { %v1443_v29 = vmul.f32 2.0, %v2619_v6  ;;  %v2255_v17 = vadd.f32 -1.0, %v1445_v33  ;;  %v1451_v44 = vmul.f32 %v2619_v6, %v3125_v12 }
 0xdaa   :  { %v2621_v0 = vpop.eup %2620 }
 0xdab   :  { %v2253_v21 = vadd.f32 -1.0, %v1443_v29  ;;  %v1446_v41 = vmul.f32 2.0, %v2621_v0  ;;  %v1454_v48 = vmul.f32 %v2621_v0, %v3137_v37 }
 0xdac   :  { %v2623_v4 = vpop.eup %2622 }
 0xdad   :  { %1459 = vrot.lane.b32.xlu0 %v2253_v21, %s2684_s24  ;;  %v1444_v25 = vmul.f32 2.0, %v2623_v4  ;;  %v2256_v23 = vadd.f32 -1.0, %v1446_v41  ;;  %v1452_v51 = vmul.f32 %v2623_v4, %v3132_v18 }
 0xdaf   :  { %v2254_v22 = vadd.f32 -1.0, %v1444_v25 }
 0xdb1   :  { %1463 = vrot.lane.b32.xlu0 %v2255_v17, %s2684_s24  ;;  %1461 = vrot.lane.b32.xlu1 %v2254_v22, %s2684_s24 }
 0xdb5   :  { %1465 = vrot.lane.b32.xlu1 %v2256_v23, %s2684_s24 }
 0xe1f   :  { %v1460_v45 = vpop.permute.xlu0 %1459 }
 0xe20   :  { %v1471_v42 = vmul.f32 %v2619_v6, %v1460_v45  ;;  %v163_v45 = vsub.s32 5, %v2939_v61 }
 0xe22   :  { %1479 = vrot.lane.b32.xlu0 %v1471_v42, %s2685_s25 }
 0xe23   :  { %v1464_v9 = vpop.permute.xlu0 %1463  ;;  %v1462_v43 = vpop.permute.xlu1 %1461 }
 0xe24   :  { %v1473_v26 = vmul.f32 %v2617_v13, %v1464_v9  ;;  %v1472_v40 = vmul.f32 %v2623_v4, %v1462_v43 }
 0xe26   :  { %1483 = vrot.lane.b32.xlu0 %v1473_v26, %s2685_s25  ;;  %1481 = vrot.lane.b32.xlu1 %v1472_v40, %s2685_s25 }
 0xe27   :  { %v1466_v50 = vpop.permute.xlu1 %1465 }
 0xe28   :  { %v1474_v46 = vmul.f32 %v2621_v0, %v1466_v50 }
 0xe2a   :  { %1485 = vrot.lane.b32.xlu1 %v1474_v46, %s2685_s25 }
 0xe94   :  { %v1480_v52 = vpop.permute.xlu0 %1479 }
 0xe95   :  { %v3181_v49 = vadd.f32 %v1480_v52, %v1451_v44 }
 0xe97   :  { %2624 = vtanh.f32 %v3181_v49 }
 0xe98   :  { %v1484_v57 = vpop.permute.xlu0 %1483  ;;  %v1482_v53 = vpop.permute.xlu1 %1481 }
 0xe99   :  { %v3186_v30 = vadd.f32 %v1484_v57, %v1453_v1  ;;  %v3188_v38 = vadd.f32 %v1482_v53, %v1452_v51 }
 0xe9b   :  { %2626 = vtanh.f32 %v3186_v30 }
 0xe9c   :  { %2628 = vtanh.f32 %v3188_v38  ;;  %v1486_v12 = vpop.permute.xlu1 %1485 }
 0xe9d   :  { %v3193_v60 = vadd.f32 %v1486_v12, %v1454_v48 }
 0xe9f   :  { %2630 = vtanh.f32 %v3193_v60 }
 0xea4   :  { %v2625_v35 = vpop.eup %2624 }
 0xea5   :  { %1503 = vrot.lane.b32.xlu0 %v2625_v35, %s2684_s24 }
 0xea8   :  { %v2627_v18 = vpop.eup %2626 }
 0xea9   :  { %v2629_v47 = vpop.eup %2628  ;;  %1507 = vrot.lane.b32.xlu0 %v2627_v18, %s2684_s24 }
 0xeaa   :  { %1505 = vrot.lane.b32.xlu1 %v2629_v47, %s2684_s24 }
 0xeac   :  { %v2631_v24 = vpop.eup %2630 }
 0xeae   :  { %1509 = vrot.lane.b32.xlu1 %v2631_v24, %s2684_s24 }
 0xf17   :  { %v1504_v37 = vpop.permute.xlu0 %1503 }
 0xf18   :  { %v3200_v29 = vmul.f32 %v2619_v6, %v1504_v37 }
 0xf1b   :  { %v1508_v33 = vpop.permute.xlu0 %1507 }
 0xf1c   :  { %v1506_v55 = vpop.permute.xlu1 %1505  ;;  %v3206_v22 = vmul.f32 %v2617_v13, %v1508_v33  ;;  %v3220_v13 = vld [vmem:[%s3508_s4] sm:$0xff]  ;;  %s2686_s4 = smov 96  }
 0xf1d   :  { %v3202_v21 = vmul.f32 %v2623_v4, %v1506_v55 }
 0xf1f   :  { %v1519_v25 = vpack.c.bf16 %v3202_v21, %v3200_v29 }
 0xf20   :  { %v1510_v17 = vpop.permute.xlu1 %1509 }
 0xf21   :  { %v3208_v41 = vmul.f32 %v2621_v0, %v1510_v17  ;;  %1551 = vrot.lane.b32.xlu0 %v1519_v25, %s2685_s25  ;;  %v164_v0 = vrot.slane %v3220_v13, %v163_v45 }
 0xf23   :  { %v1520_v23 = vpack.c.bf16 %v3208_v41, %v3206_v22  ;;  %v483_v42 = vadd.f32 %v2935_v59, %v164_v0  ;;  %v473_v43 = vadd.f32 %v2927_v54, %v164_v0  ;;  %v487_v50 = vadd.f32 %v2941_v62, %v164_v0 }
 0xf24   :  { %v477_v1 = vadd.f32 %v2931_v56, %v164_v0 }
 0xf25   :  { %1553 = vrot.lane.b32.xlu1 %v1520_v23, %s2685_s25 }
 0xf93   :  { %v1552_v6 = vpop.permute.xlu0 %1551 }
 0xf94   :  { %2428 = vmatprep.mubr.msk.bf16.mxu0 %vm586_vm2, %v1552_v6 }
 0xf97   :  { %v1554_v4 = vpop.permute.xlu1 %1553 }
 0xf98   :  { %2429 = vmatmul.mubr.msk.bf16.vlgmr.msra.gmra.mxu0 %vm586_vm2, %v1554_v4 }
0x1058   :  { %v2430_v9 = vpop.f32.mrf.mxu0 }
0x1059   :  { %v1612_v26 = vadd.f32 %v2430_v9, %v483_v42 }
0x105a   :  { %v1595_v40 = vpop.f32.mrf.mxu0 }
0x105b   :  { %v2265_v46 = vmul.f32 -1.442695, %v1612_v26  ;;  %v1610_v44 = vadd.f32 %v1595_v40, %v473_v43 }
0x105c   :  { %v2431_v52 = vpop.f32.mrf.mxu0 }
0x105d   :  { %2632 = vpow2.f32 %v2265_v46  ;;  %v2263_v51 = vmul.f32 -1.442695, %v1610_v44  ;;  %v1613_v57 = vadd.f32 %v2431_v52, %v487_v50 }
0x105e   :  { %v1598_v53 = vpop.f32.mrf.mxu0 }
0x105f   :  { %2634 = vpow2.f32 %v2263_v51  ;;  %v2266_v48 = vmul.f32 -1.442695, %v1613_v57  ;;  %v1611_v12 = vadd.f32 %v1598_v53, %v477_v1 }
0x1061   :  { %2636 = vpow2.f32 %v2266_v48  ;;  %v2264_v59 = vmul.f32 -1.442695, %v1611_v12 }
0x1063   :  { %2638 = vpow2.f32 %v2264_v59 }
0x106a   :  { %v2633_v54 = vpop.eup %2632 }
0x106b   :  { %v1628_v35 = vadd.f32 1.0, %v2633_v54 }
0x106c   :  { %v2635_v18 = vpop.eup %2634 }
0x106d   :  { %v1626_v47 = vadd.f32 1.0, %v2635_v18  ;;  %2640 = vrcp.f32 %v1628_v35 }
0x106e   :  { %v2637_v62 = vpop.eup %2636 }
0x106f   :  { %2642 = vrcp.f32 %v1626_v47  ;;  %v1629_v24 = vadd.f32 1.0, %v2637_v62 }
0x1070   :  { %v2639_v37 = vpop.eup %2638 }
0x1071   :  { %v1627_v56 = vadd.f32 1.0, %v2639_v37  ;;  %2644 = vrcp.f32 %v1629_v24 }
0x1073   :  { %2646 = vrcp.f32 %v1627_v56 }
0x107a   :  { %v2641_v55 = vpop.eup %2640 }
0x107b   :  { %v1640_v6 = vmul.f32 2.0, %v2641_v55  ;;  %v1648_v12 = vmul.f32 %v2641_v55, %v3186_v30 }
0x107c   :  { %v2643_v33 = vpop.eup %2642 }
0x107d   :  { %v1638_v25 = vmul.f32 2.0, %v2643_v33  ;;  %v2269_v0 = vadd.f32 -1.0, %v1640_v6  ;;  %v1646_v57 = vmul.f32 %v2643_v33, %v3181_v49 }
0x107e   :  { %v2645_v17 = vpop.eup %2644 }
0x107f   :  { %v2267_v23 = vadd.f32 -1.0, %v1638_v25  ;;  %v1641_v9 = vmul.f32 2.0, %v2645_v17  ;;  %v1649_v62 = vmul.f32 %v2645_v17, %v3193_v60 }
0x1080   :  { %v2647_v4 = vpop.eup %2646 }
0x1081   :  { %1654 = vrot.lane.b32.xlu0 %v2267_v23, %s2684_s24  ;;  %v1639_v45 = vmul.f32 2.0, %v2647_v4  ;;  %v2270_v43 = vadd.f32 -1.0, %v1641_v9  ;;  %v1647_v59 = vmul.f32 %v2647_v4, %v3188_v38 }
0x1083   :  { %v2268_v42 = vadd.f32 -1.0, %v1639_v45 }
0x1085   :  { %1658 = vrot.lane.b32.xlu0 %v2269_v0, %s2684_s24  ;;  %1656 = vrot.lane.b32.xlu1 %v2268_v42, %s2684_s24 }
0x1089   :  { %1660 = vrot.lane.b32.xlu1 %v2270_v43, %s2684_s24 }
0x10f3   :  { %v1655_v26 = vpop.permute.xlu0 %1654 }
0x10f4   :  { %v1666_v40 = vmul.f32 %v2643_v33, %v1655_v26 }
0x10f6   :  { %1674 = vrot.lane.b32.xlu0 %v1666_v40, %s2685_s25  ;;  %v167_v40 = vsub.s32 6, %v2939_v61 }
0x10f7   :  { %v1659_v50 = vpop.permute.xlu0 %1658  ;;  %v1657_v46 = vpop.permute.xlu1 %1656 }
0x10f8   :  { %v1668_v44 = vmul.f32 %v2641_v55, %v1659_v50  ;;  %v1667_v52 = vmul.f32 %v2647_v4, %v1657_v46 }
0x10fa   :  { %1678 = vrot.lane.b32.xlu0 %v1668_v44, %s2685_s25  ;;  %1676 = vrot.lane.b32.xlu1 %v1667_v52, %s2685_s25 }
0x10fb   :  { %v1661_v1 = vpop.permute.xlu1 %1660 }
0x10fc   :  { %v1669_v51 = vmul.f32 %v2645_v17, %v1661_v1 }
0x10fe   :  { %1680 = vrot.lane.b32.xlu1 %v1669_v51, %s2685_s25 }
0x1168   :  { %v1675_v53 = vpop.permute.xlu0 %1674 }
0x1169   :  { %v3236_v48 = vadd.f32 %v1675_v53, %v1646_v57 }
0x116b   :  { %2648 = vtanh.f32 %v3236_v48 }
0x116c   :  { %v1679_v54 = vpop.permute.xlu0 %1678  ;;  %v1677_v35 = vpop.permute.xlu1 %1676 }
0x116d   :  { %v3241_v18 = vadd.f32 %v1679_v54, %v1648_v12  ;;  %v3243_v47 = vadd.f32 %v1677_v35, %v1647_v59 }
0x116f   :  { %2650 = vtanh.f32 %v3241_v18 }
0x1170   :  { %2652 = vtanh.f32 %v3243_v47  ;;  %v1681_v49 = vpop.permute.xlu1 %1680 }
0x1171   :  { %v3248_v24 = vadd.f32 %v1681_v49, %v1649_v62 }
0x1173   :  { %2654 = vtanh.f32 %v3248_v24 }
0x1178   :  { %v2649_v30 = vpop.eup %2648 }
0x1179   :  { %1698 = vrot.lane.b32.xlu0 %v2649_v30, %s2684_s24 }
0x117c   :  { %v2651_v38 = vpop.eup %2650 }
0x117d   :  { %v2653_v37 = vpop.eup %2652  ;;  %1702 = vrot.lane.b32.xlu0 %v2651_v38, %s2684_s24 }
0x117e   :  { %1700 = vrot.lane.b32.xlu1 %v2653_v37, %s2684_s24 }
0x1180   :  { %v2655_v56 = vpop.eup %2654 }
0x1182   :  { %1704 = vrot.lane.b32.xlu1 %v2655_v56, %s2684_s24 }
0x11eb   :  { %v1699_v60 = vpop.permute.xlu0 %1698 }
0x11ec   :  { %v3255_v23 = vmul.f32 %v2643_v33, %v1699_v60 }
0x11ef   :  { %v1703_v45 = vpop.permute.xlu0 %1702 }
0x11f0   :  { %v1701_v25 = vpop.permute.xlu1 %1700  ;;  %v3261_v9 = vmul.f32 %v2641_v55, %v1703_v45  ;;  %v168_v55 = vrot.slane %v3220_v13, %v167_v40 }
0x11f1   :  { %v3257_v6 = vmul.f32 %v2647_v4, %v1701_v25 }
0x11f2   :  { %v524_v46 = vadd.f32 %v2951_v2, %v168_v55  ;;  %v535_v1 = vadd.f32 %v2953_v3, %v168_v55  ;;  %v527_v12 = vadd.f32 %v2956_v5, %v168_v55 }
0x11f3   :  { %v1714_v0 = vpack.c.bf16 %v3257_v6, %v3255_v23 }
0x11f4   :  { %v1705_v42 = vpop.permute.xlu1 %1704 }
0x11f5   :  { %v3263_v43 = vmul.f32 %v2645_v17, %v1705_v42  ;;  %1746 = vrot.lane.b32.xlu0 %v1714_v0, %s2685_s25  ;;  %v532_v17 = vadd.f32 %v2943_v63, %v168_v55 }
0x11f7   :  { %v1715_v26 = vpack.c.bf16 %v3263_v43, %v3261_v9 }
0x11f9   :  { %1748 = vrot.lane.b32.xlu1 %v1715_v26, %s2685_s25 }
0x1267   :  { %v1747_v33 = vpop.permute.xlu0 %1746 }
0x1268   :  { %2436 = vmatprep.mubr.msk.bf16.mxu1 %vm586_vm2, %v1747_v33 }
0x126b   :  { %v1749_v4 = vpop.permute.xlu1 %1748 }
0x126c   :  { %2437 = vmatmul.mubr.msk.bf16.vlgmr.msra.gmra.mxu1 %vm586_vm2, %v1749_v4 }
0x132c   :  { %v2438_v50 = vpop.f32.mrf.mxu1 }
0x132d   :  { %v1807_v44 = vadd.f32 %v2438_v50, %v532_v17 }
0x132e   :  { %v1790_v52 = vpop.f32.mrf.mxu1 }
0x132f   :  { %v2279_v51 = vmul.f32 -1.442695, %v1807_v44  ;;  %v1805_v57 = vadd.f32 %v1790_v52, %v524_v46 }
0x1330   :  { %v2439_v53 = vpop.f32.mrf.mxu1 }
0x1331   :  { %2656 = vpow2.f32 %v2279_v51  ;;  %v2277_v59 = vmul.f32 -1.442695, %v1805_v57  ;;  %v1808_v54 = vadd.f32 %v2439_v53, %v535_v1 }
0x1332   :  { %v1793_v61 = vpop.f32.mrf.mxu1 }
0x1333   :  { %2658 = vpow2.f32 %v2277_v59  ;;  %v2280_v13 = vmul.f32 -1.442695, %v1808_v54  ;;  %v1806_v35 = vadd.f32 %v1793_v61, %v527_v12 }
0x1335   :  { %2660 = vpow2.f32 %v2280_v13  ;;  %v2278_v63 = vmul.f32 -1.442695, %v1806_v35 }
0x1337   :  { %2662 = vpow2.f32 %v2278_v63 }
0x133e   :  { %v2657_v2 = vpop.eup %2656 }
0x133f   :  { %v1823_v62 = vadd.f32 1.0, %v2657_v2 }
0x1340   :  { %v2659_v49 = vpop.eup %2658 }
0x1341   :  { %v1821_v30 = vadd.f32 1.0, %v2659_v49  ;;  %2664 = vrcp.f32 %v1823_v62 }
0x1342   :  { %v2661_v3 = vpop.eup %2660 }
0x1343   :  { %2666 = vrcp.f32 %v1821_v30  ;;  %v1824_v38 = vadd.f32 1.0, %v2661_v3 }
0x1344   :  { %v2663_v37 = vpop.eup %2662 }
0x1345   :  { %v1822_v5 = vadd.f32 1.0, %v2663_v37  ;;  %2668 = vrcp.f32 %v1824_v38 }
0x1347   :  { %2670 = vrcp.f32 %v1822_v5  ;;  %v2311_v5 = vpack.c.bf16 %v2984_v58, %v2984_v58  ;;  %v2327_v58 = vpack.c.bf16 %v3202_v21, %v3202_v21  ;;  %v2331_v21 = vpack.c.bf16 %v3257_v6, %v3257_v6  ;;  %v2484_v6 = vld [vmem:[%s3509_s6 + $0x38] sm:$0xff]  }
0x1348   :  { %2086 = vmatpush1.bf16.msra.mxu0 %v2484_v6  ;;  %v2289_v6 = vld [vmem:[%s3510_s7] ss:$0 sm:$0xff] }
0x1349   :  { %2087 = vmatprep.subr.bf16.mxu0 %v2683_v32 }
0x134e   :  { %v3277_v56 = vpop.eup %2664 }
0x134f   :  { %v1835_v42 = vmul.f32 2.0, %v3277_v56  ;;  %v1843_v61 = vmul.f32 %v3277_v56, %v3241_v18 }
0x1350   :  { %v3279_v60 = vpop.eup %2666 }
0x1351   :  { %v1833_v25 = vmul.f32 2.0, %v3279_v60  ;;  %v2283_v4 = vadd.f32 -1.0, %v1835_v42  ;;  %v1841_v12 = vmul.f32 %v3279_v60, %v3236_v48  ;;  %v2321_v42 = vpack.c.bf16 %v3098_v28, %v3098_v28  ;;  %v2489_v28 = vld [vmem:[%s3509_s6 + $0x10] sm:$0xff]  }
0x1352   :  { %v3282_v45 = vpop.eup %2668 }
0x1353   :  { %v2281_v0 = vadd.f32 -1.0, %v1833_v25  ;;  %v1836_v55 = vmul.f32 2.0, %v3282_v45  ;;  %v1844_v49 = vmul.f32 %v3282_v45, %v3248_v24  ;;  %v2314_v24 = vpack.c.bf16 %v3036_v10, %v3036_v10 }
0x1354   :  { %v3285_v26 = vpop.eup %2670  ;;  %v2326_v25 = vpack.c.bf16 %v3200_v29, %v3200_v29  ;;  %v2318_v10 = vpack.c.bf16 %v3090_v19, %v3090_v19  ;;  %v2330_v29 = vpack.c.bf16 %v3255_v23, %v3255_v23  ;;  %v2312_v19 = vpack.c.bf16 %v2988_v7, %v2988_v7 }
0x1355   :  { %1849 = vrot.lane.b32.xlu0 %v2281_v0, %s2684_s24  ;;  %v1834_v33 = vmul.f32 2.0, %v3285_v26  ;;  %v2284_v17 = vadd.f32 -1.0, %v1836_v55  ;;  %v1842_v13 = vmul.f32 %v3285_v26, %v3243_v47  ;;  %v2310_v47 = vpack.c.bf16 %v2982_v39, %v2982_v39  ;;  %v2493_v55 = vld [vmem:[%s3509_s6 + $0x60] sm:$0xff]  }
0x1356   :  { %v2315_v39 = vpack.c.bf16 %v3038_v11, %v3038_v11  ;;  %v2319_v11 = vpack.c.bf16 %v3092_v20, %v3092_v20  ;;  %v2316_v23 = vpack.c.bf16 %v3042_v15, %v3042_v15  ;;  %v2313_v20 = vpack.c.bf16 %v2990_v8, %v2990_v8  ;;  %v2485_v8 = vld [vmem:[%s3509_s6 + $0x30] sm:$0xff]  }
0x1357   :  { %v2282_v40 = vadd.f32 -1.0, %v1834_v33  ;;  %v2328_v7 = vpack.c.bf16 %v3206_v22, %v3206_v22  ;;  %v2317_v0 = vpack.c.bf16 %v3044_v16, %v3044_v16  ;;  %v2320_v15 = vpack.c.bf16 %v3096_v27, %v3096_v27  ;;  %2088 = vmatpush1.bf16.msra.mxu0 %v2485_v8  ;;  %v2486_v16 = vld [vmem:[%s3509_s6 + $0x28] sm:$0xff]   ;;  %v2487_v27 = vld [vmem:[%s3509_s6 + $0x20] sm:$0xff]  }
0x1358   :  { %v2329_v22 = vpack.c.bf16 %v3208_v41, %v3208_v41  ;;  %2089 = vmatprep.subr.bf16.mxu0 %v2683_v32  ;;  %v2488_v41 = vld [vmem:[%s3509_s6 + $0x18] sm:$0xff]   ;;  %v2490_v33 = vld [vmem:[%s3509_s6 + $0x8] sm:$0xff]   ;;  %v2134_v8 = vld [vmem:[%s3503_s0] sm:$0xff] }
0x1359   :  { %1853 = vrot.lane.b32.xlu0 %v2283_v4, %s2684_s24  ;;  %1851 = vrot.lane.b32.xlu1 %v2282_v40, %s2684_s24  ;;  %v2491_v4 = vld [vmem:[%s3509_s6] sm:$0xff]   ;;  %v2492_v40 = vld [vmem:[%s3509_s6 + $0x68] sm:$0xff]  }
0x135b   :  { %2090 = vmatpush1.bf16.msra.mxu0 %v2486_v16 }
0x135c   :  { %2091 = vmatprep.subr.bf16.mxu0 %v2683_v32 }
0x135d   :  { %1855 = vrot.lane.b32.xlu1 %v2284_v17, %s2684_s24  ;;  %v2494_v17 = vld [vmem:[%s3509_s6 + $0x58] sm:$0xff]  }
0x135f   :  { %2092 = vmatpush1.bf16.msra.mxu0 %v2487_v27  ;;  %v2135_v27 = vld [vmem:[%s3503_s0 + $0x8] sm:$0xff] }
0x1360   :  { %2093 = vmatprep.subr.bf16.mxu0 %v2683_v32 }
0x1363   :  { %2094 = vmatpush1.bf16.msra.mxu0 %v2488_v41 }
0x1364   :  { %2095 = vmatprep.subr.bf16.mxu0 %v2683_v32 }
0x1367   :  { %2096 = vmatpush1.bf16.msra.mxu0 %v2489_v28 }
0x1368   :  { %2097 = vmatprep.subr.bf16.mxu0 %v2683_v32 }
0x136b   :  { %2098 = vmatpush1.bf16.msra.mxu0 %v2490_v33 }
0x136c   :  { %2099 = vmatprep.subr.bf16.mxu0 %v2683_v32 }
0x136f   :  { %2100 = vmatpush1.bf16.msra.mxu0 %v2491_v4 }
0x1370   :  { %2105 = vmatprep.subr.bf16.mxu0 %v2683_v32 }
0x1373   :  { %2106 = vmatpush2.bf16.msra.mxu0 %v2492_v40  ;;  %v2136_v40 = vld [vmem:[%s3503_s0 + $0x10] sm:$0xff] }
0x1374   :  { %2107 = vmatprep.subr.bf16.mxu0 %v2683_v32 }
0x1377   :  { %2108 = vmatpush2.bf16.msra.mxu0 %v2493_v55 }
0x1378   :  { %2109 = vmatprep.subr.bf16.mxu0 %v2683_v32 }
0x137b   :  { %2110 = vmatpush2.bf16.msra.mxu0 %v2494_v17 }
0x137c   :  { %2111 = vmatprep.subr.bf16.mxu0 %v2683_v32 }
0x13c7   :  { %v1850_v50 = vpop.permute.xlu0 %1849 }
0x13c8   :  { %v1861_v46 = vmul.f32 %v3279_v60, %v1850_v50  ;;  %v2495_v50 = vld [vmem:[%s3509_s6 + $0x50] sm:$0xff]  }
0x13c9   :  { %2112 = vmatpush2.bf16.msra.mxu0 %v2495_v50 }
0x13ca   :  { %1869 = vrot.lane.b32.xlu0 %v1861_v46, %s2685_s25  ;;  %2113 = vmatprep.subr.bf16.mxu0 %v2683_v32  ;;  %v2496_v46 = vld [vmem:[%s3509_s6 + $0x48] sm:$0xff]  }
0x13cb   :  { %v1854_v44 = vpop.permute.xlu0 %1853  ;;  %v1852_v52 = vpop.permute.xlu1 %1851 }
0x13cc   :  { %v1863_v1 = vmul.f32 %v3277_v56, %v1854_v44  ;;  %v1862_v51 = vmul.f32 %v3285_v26, %v1852_v52 }
0x13cd   :  { %2114 = vmatpush2.bf16.msra.mxu0 %v2496_v46 }
0x13ce   :  { %1873 = vrot.lane.b32.xlu0 %v1863_v1, %s2685_s25  ;;  %1871 = vrot.lane.b32.xlu1 %v1862_v51, %s2685_s25  ;;  %v2497_v1 = vld [vmem:[%s3509_s6 + $0x40] sm:$0xff]  }
0x13cf   :  { %v1856_v57 = vpop.permute.xlu1 %1855  ;;  %2115 = vmatprep.subr.bf16.mxu0 %v2683_v32 }
0x13d0   :  { %v1864_v53 = vmul.f32 %v3282_v45, %v1856_v57 }
0x13d1   :  { %2116 = vmatpush2.bf16.msra.mxu0 %v2497_v1 }
0x13d2   :  { %1875 = vrot.lane.b32.xlu1 %v1864_v53, %s2685_s25 }
0x143c   :  { %v1870_v59 = vpop.permute.xlu0 %1869 }
0x143d   :  { %v1881_v54 = vadd.f32 %v1870_v59, %v1841_v12  ;;  %v2332_v59 = vpack.c.bf16 %v3261_v9, %v3261_v9 }
0x143f   :  { %2672 = vtanh.f32 %v1881_v54 }
0x1440   :  { %v1874_v35 = vpop.permute.xlu0 %1873  ;;  %v1872_v63 = vpop.permute.xlu1 %1871 }
0x1441   :  { %v1883_v2 = vadd.f32 %v1874_v35, %v1843_v61  ;;  %v1882_v62 = vadd.f32 %v1872_v63, %v1842_v13 }
0x1443   :  { %2674 = vtanh.f32 %v1883_v2 }
0x1444   :  { %2676 = vtanh.f32 %v1882_v62  ;;  %v1876_v30 = vpop.permute.xlu1 %1875 }
0x1445   :  { %v1884_v48 = vadd.f32 %v1876_v30, %v1844_v49 }
0x1447   :  { %2678 = vtanh.f32 %v1884_v48  ;;  %v2323_v48 = vpack.c.bf16 %v3146_v14, %v3146_v14 }
0x144c   :  { %v2673_v3 = vpop.eup %2672 }
0x144d   :  { %1893 = vrot.lane.b32.xlu0 %v2673_v3, %s2684_s24 }
0x1450   :  { %v2675_v38 = vpop.eup %2674 }
0x1451   :  { %v2677_v18 = vpop.eup %2676  ;;  %1897 = vrot.lane.b32.xlu0 %v2675_v38, %s2684_s24 }
0x1452   :  { %1895 = vrot.lane.b32.xlu1 %v2677_v18, %s2684_s24 }
0x1454   :  { %v2679_v37 = vpop.eup %2678 }
0x1455   :  { %755 = vrot.lane.b32.xlu0 %v2310_v47, %s2685_s25 }
0x1456   :  { %1899 = vrot.lane.b32.xlu1 %v2679_v37, %s2684_s24 }
0x1459   :  { %951 = vrot.lane.b32.xlu0 %v2314_v24, %s2684_s24  ;;  %v2324_v24 = vpack.c.bf16 %v3150_v31, %v3150_v31 }
0x145a   :  { %757 = vrot.lane.b32.xlu1 %v2311_v5, %s2685_s25 }
0x145d   :  { %1531 = vrot.lane.b32.xlu0 %v2326_v25, %s2685_s25 }
0x145e   :  { %953 = vrot.lane.b32.xlu1 %v2315_v39, %s2684_s24  ;;  %v2325_v39 = vpack.c.bf16 %v3152_v34, %v3152_v34 }
0x1461   :  { %1147 = vrot.lane.b32.xlu0 %v2318_v10, %s2686_s4 }
0x1462   :  { %1533 = vrot.lane.b32.xlu1 %v2327_v58, %s2685_s25 }
0x1465   :  { %1726 = vrot.lane.b32.xlu0 %v2330_v29, %s2684_s24 }
0x1466   :  { %1149 = vrot.lane.b32.xlu1 %v2319_v11, %s2686_s4 }
0x1469   :  { %759 = vrot.lane.b32.xlu0 %v2312_v19, %s2685_s25 }
0x146a   :  { %1728 = vrot.lane.b32.xlu1 %v2331_v21, %s2684_s24 }
0x146d   :  { %955 = vrot.lane.b32.xlu0 %v2316_v23, %s2684_s24 }
0x146e   :  { %761 = vrot.lane.b32.xlu1 %v2313_v20, %s2685_s25 }
0x1471   :  { %1535 = vrot.lane.b32.xlu0 %v2328_v7, %s2685_s25 }
0x1472   :  { %957 = vrot.lane.b32.xlu1 %v2317_v0, %s2684_s24 }
0x1475   :  { %1151 = vrot.lane.b32.xlu0 %v2320_v15, %s2686_s4 }
0x1476   :  { %1537 = vrot.lane.b32.xlu1 %v2329_v22, %s2685_s25 }
0x147a   :  { %1153 = vrot.lane.b32.xlu1 %v2321_v42, %s2686_s4 }
0x14bf   :  { %v1894_v44 = vpop.permute.xlu0 %1893 }
0x14c0   :  { %v1905_v52 = vmul.f32 %v3279_v60, %v1894_v44  ;;  %v2137_v44 = vld [vmem:[%s3503_s0 + $0x18] sm:$0xff] }
0x14c2   :  { %v2334_v51 = vpack.c.bf16 %v1905_v52, %v1905_v52 }
0x14c3   :  { %v1898_v57 = vpop.permute.xlu0 %1897 }
0x14c4   :  { %v1896_v53 = vpop.permute.xlu1 %1895  ;;  %1921 = vrot.lane.b32.xlu0 %v2334_v51, %s2686_s4  ;;  %v1907_v60 = vmul.f32 %v3277_v56, %v1898_v57 }
0x14c5   :  { %v1906_v12 = vmul.f32 %v3285_v26, %v1896_v53  ;;  %v2333_v26 = vpack.c.bf16 %v3263_v43, %v3263_v43  ;;  %v2322_v43 = vpack.c.bf16 %v3144_v36, %v3144_v36 }
0x14c6   :  { %v2336_v13 = vpack.c.bf16 %v1907_v60, %v1907_v60 }
0x14c7   :  { %v2335_v54 = vpack.c.bf16 %v1906_v12, %v1906_v12  ;;  %v756_v32 = vpop.permute.xlu0 %755 }
0x14c8   :  { %768 = vst.msk [vmem:[#allocation3] sm:$0xf] %vm767_vm3, %v756_v32  ;;  %v1900_v61 = vpop.permute.xlu1 %1899  ;;  %1730 = vrot.lane.b32.xlu0 %v2332_v59, %s2684_s24 }
0x14c9   :  { %1923 = vrot.lane.b32.xlu1 %v2335_v54, %s2686_s4  ;;  %v1908_v35 = vmul.f32 %v3282_v45, %v1900_v61 }
0x14cb   :  { %v952_v63 = vpop.permute.xlu0 %951  ;;  %v2337_v56 = vpack.c.bf16 %v1908_v35, %v1908_v35 }
0x14cc   :  { %964 = vst.msk [vmem:[#allocation3] sm:$0xf] %vm963_vm4, %v952_v63  ;;  %v758_v9 = vpop.permute.xlu1 %757  ;;  %1925 = vrot.lane.b32.xlu0 %v2336_v13, %s2686_s4 }
0x14cd   :  { %769 = vst.msk [vmem:[#allocation3 + $0x8] sm:$0xf] %vm767_vm3, %v758_v9  ;;  %1732 = vrot.lane.b32.xlu1 %v2333_v26, %s2684_s24 }
0x14cf   :  { %v1532_v2 = vpop.permute.xlu0 %1531 }
0x14d0   :  { %1543 = vst.msk [vmem:[#allocation3 + $0x4] sm:$0xf] %vm767_vm3, %v1532_v2  ;;  %v954_v62 = vpop.permute.xlu1 %953 }
0x14d1   :  { %965 = vst.msk [vmem:[#allocation3 + $0x8] sm:$0xf] %vm963_vm4, %v954_v62  ;;  %1927 = vrot.lane.b32.xlu1 %v2337_v56, %s2686_s4 }
0x14d3   :  { %v1148_v45 = vpop.permute.xlu0 %1147 }
0x14d4   :  { %1160 = vst.msk [vmem:[#allocation3] sm:$0xf] %vm1159_vm5, %v1148_v45  ;;  %v1534_v49 = vpop.permute.xlu1 %1533 }
0x14d5   :  { %1348 = vst.msk [vmem:[#allocation3] sm:$0xf] %vm1347_vm6, %v2322_v43 }
0x14d6   :  { %1544 = vst.msk [vmem:[#allocation3 + $0xc] sm:$0xf] %vm767_vm3, %v1534_v49 }
0x14d7   :  { %v1727_v30 = vpop.permute.xlu0 %1726 }
0x14d8   :  { %1738 = vst.msk [vmem:[#allocation3 + $0x4] sm:$0xf] %vm963_vm4, %v1727_v30  ;;  %v1150_v3 = vpop.permute.xlu1 %1149 }
0x14d9   :  { %1161 = vst.msk [vmem:[#allocation3 + $0x8] sm:$0xf] %vm1159_vm5, %v1150_v3 }
0x14da   :  { %1349 = vst.msk [vmem:[#allocation3 + $0x8] sm:$0xf] %vm1347_vm6, %v2323_v48 }
0x14db   :  { %v760_v36 = vpop.permute.xlu0 %759 }
0x14dc   :  { %770 = vst.msk [vmem:[#allocation3 + $0x10] sm:$0xf] %vm767_vm3, %v760_v36  ;;  %v1729_v38 = vpop.permute.xlu1 %1728 }
0x14dd   :  { %1739 = vst.msk [vmem:[#allocation3 + $0xc] sm:$0xf] %vm963_vm4, %v1729_v38 }
0x14df   :  { %v956_v18 = vpop.permute.xlu0 %955 }
0x14e0   :  { %966 = vst.msk [vmem:[#allocation3 + $0x10] sm:$0xf] %vm963_vm4, %v956_v18  ;;  %v762_v47 = vpop.permute.xlu1 %761 }
0x14e1   :  { %771 = vst.msk [vmem:[#allocation3 + $0x18] sm:$0xf] %vm767_vm3, %v762_v47  ;;  %v2500_v23 = vld [vmem:[#allocation3] ss:$8 sps:$4 sm:$0xff]  }
0x14e3   :  { %v1536_v14 = vpop.permute.xlu0 %1535 }
0x14e4   :  { %1545 = vst.msk [vmem:[#allocation3 + $0x14] sm:$0xf] %vm767_vm3, %v1536_v14  ;;  %v958_v37 = vpop.permute.xlu1 %957 }
0x14e5   :  { %967 = vst.msk [vmem:[#allocation3 + $0x18] sm:$0xf] %vm963_vm4, %v958_v37 }
0x14e7   :  { %v1152_v5 = vpop.permute.xlu0 %1151 }
0x14e8   :  { %1162 = vst.msk [vmem:[#allocation3 + $0x10] sm:$0xf] %vm1159_vm5, %v1152_v5  ;;  %v1538_v25 = vpop.permute.xlu1 %1537 }
0x14e9   :  { %1350 = vst.msk [vmem:[#allocation3 + $0x10] sm:$0xf] %vm1347_vm6, %v2324_v24 }
0x14ea   :  { %1546 = vst.msk [vmem:[#allocation3 + $0x1c] sm:$0xf] %vm767_vm3, %v1538_v25 }
0x14ec   :  { %v1154_v10 = vpop.permute.xlu1 %1153 }
0x14ed   :  { %1163 = vst.msk [vmem:[#allocation3 + $0x18] sm:$0xf] %vm1159_vm5, %v1154_v10 }
0x14ee   :  { %1351 = vst.msk [vmem:[#allocation3 + $0x18] sm:$0xf] %vm1347_vm6, %v2325_v39 }
0x14f5   :  { %v2503_v7 = vld [vmem:[#allocation3 + $0x10] ss:$8 sps:$4 sm:$0xff]  }
0x1536   :  { %v1922_v58 = vpop.permute.xlu0 %1921 }
0x1537   :  { %1933 = vst.msk [vmem:[#allocation3 + $0x4] sm:$0xf] %vm1159_vm5, %v1922_v58 }
0x153a   :  { %v1731_v31 = vpop.permute.xlu0 %1730 }
0x153b   :  { %1740 = vst.msk [vmem:[#allocation3 + $0x14] sm:$0xf] %vm963_vm4, %v1731_v31  ;;  %v1924_v29 = vpop.permute.xlu1 %1923 }
0x153c   :  { %1934 = vst.msk [vmem:[#allocation3 + $0xc] sm:$0xf] %vm1159_vm5, %v1924_v29 }
0x153e   :  { %v1926_v11 = vpop.permute.xlu0 %1925 }
0x153f   :  { %1935 = vst.msk [vmem:[#allocation3 + $0x14] sm:$0xf] %vm1159_vm5, %v1926_v11  ;;  %v1733_v19 = vpop.permute.xlu1 %1732 }
0x1540   :  { %1741 = vst.msk [vmem:[#allocation3 + $0x1c] sm:$0xf] %vm963_vm4, %v1733_v19 }
0x1543   :  { %v1928_v34 = vpop.permute.xlu1 %1927  ;;  %v2498_v21 = vld [vmem:[#allocation3 + $0x4] ss:$8 sps:$4 sm:$0xff]  }
0x1544   :  { %1936 = vst.msk [vmem:[#allocation3 + $0x1c] sm:$0xf] %vm1159_vm5, %v1928_v34  ;;  %2308 = vmatprep.mubr.msk.bf16.mxu0 %vm2078_vm7, %v2498_v21 }
0x1545   :  { %2118 = vmatmul.mubr.bf16.vlgmr.msra.gmra.mxu0 %v2500_v23 }
0x154b   :  { %v2501_v20 = vld [vmem:[#allocation3 + $0x14] ss:$8 sps:$4 sm:$0xff]  }
0x154c   :  { %2309 = vmatprep.mubr.msk.bf16.mxu0 %vm2078_vm7, %v2501_v20 }
0x154d   :  { %2126 = vmatmul.mubr.bf16.gmra.mxu0 %v2503_v7 }
0x1605   :  { %v2119_v0 = vpop.f32.mrf.mxu0 }
0x1606   :  { %v2120_v15 = vadd.f32 %v2289_v6, %v2119_v0 }
0x1607   :  { %v2121_v22 = vpop.f32.mrf.mxu0 }
0x1608   :  { %v2138_v16 = vadd.f32 %v2134_v8, %v2120_v15 }
0x1609   :  { %v2122_v42 = vpop.f32.mrf.mxu0 }
0x160a   :  { %2142 = vst.msk [vmem:[%s3511_s8] sm:$0xff] %vm34_vm0, %v2138_v16  ;;  %v2123_v41 = vadd.f32 %v2289_v6, %v2122_v42 }
0x160b   :  { %v2124_v28 = vpop.f32.mrf.mxu0 }
0x160c   :  { %v2139_v33 = vadd.f32 %v2135_v27, %v2123_v41 }
0x160d   :  { %v2127_v4 = vpop.f32.mrf.mxu0 }
0x160e   :  { %2143 = vst.msk [vmem:[%s3511_s8 + $0x8] sm:$0xff] %vm34_vm0, %v2139_v33  ;;  %v2128_v55 = vadd.f32 %v2289_v6, %v2127_v4 }
0x160f   :  { %v2129_v17 = vpop.f32.mrf.mxu0 }
0x1610   :  { %v2140_v50 = vadd.f32 %v2136_v40, %v2128_v55 }
0x1611   :  { %v2130_v46 = vpop.f32.mrf.mxu0 }
0x1612   :  { %2144 = vst.msk [vmem:[%s3511_s8 + $0x10] sm:$0xff] %vm34_vm0, %v2140_v50  ;;  %v2131_v52 = vadd.f32 %v2289_v6, %v2130_v46 }
0x1613   :  { %v2132_v1 = vpop.f32.mrf.mxu0 }
0x1614   :  { %v2141_v51 = vadd.f32 %v2137_v44, %v2131_v52 }
0x1616   :  { %2145 = vst.msk [vmem:[%s3511_s8 + $0x18] sm:$0xff] %vm34_vm0, %v2141_v51 }

// kernel: bsnet_forward.2
= control target key start
LH: loop header
LB: loop body
LE: loop exit
PB: predicated region body
PF: predicated region fallthrough
CT: control target
= control target key end

     0   :  { %vm34_vm0 = vcmask 1045504   ;;  %vm4292_vm1 = vmmov 0   ;;  %s4294_s18 = smov 32   ;;  %vm1322_vm2 = vcmask 261120   ;;  %vm1431_vm3 = vcmask 257024   ;;  %s5412_s0 = inlined_call_operand.vmem [shape: f32[14,128], index: 0, kind: input, shape index: {}]   ;;  %s5413_s3 = inlined_call_operand.vmem [shape: bf16[128,2048], index: 3, kind: input, shape index: {}]   ;;  %s5414_s5 = inlined_call_operand.vmem [shape: bf16[32,128], index: 5, kind: input, shape index: {}]   ;;  %s5415_s1 = inlined_call_operand.vmem [shape: f32[1,128], index: 1, kind: input, shape index: {}]   ;;  %s5416_s2 = inlined_call_operand.vmem [shape: f32[1,128], index: 2, kind: input, shape index: {}]   ;;  %s5417_s4 = inlined_call_operand.vmem [shape: f32[1,2048], index: 4, kind: input, shape index: {}]   ;;  %s5418_s6 = inlined_call_operand.vmem [shape: bf16[512,128], index: 6, kind: input, shape index: {}]   ;;  %s5419_s7 = inlined_call_operand.vmem [shape: f32[1,128], index: 7, kind: input, shape index: {}]   ;;  %s5420_s8 = inlined_call_operand.vmem [shape: f32[14,128], index: 8, kind: output, shape index: {}]  }
   0x1   :  { %v31_v0 = vld [vmem:[%s5412_s0 + $0x8] sm:$0x3f]  ;;  %v30_v2 = vld [vmem:[%s5412_s0] sm:$0xff]  ;;  %vm1433_vm4 = vcmask 256000   ;;  %vm1547_vm5 = vcmask 519424   ;;  %vm1549_vm6 = vcmask 518400  }
   0x2   :  { %v35_v1 = vsel %vm34_vm0, %v31_v0, 0.0  ;;  %v188_v3 = vld [vmem:[%s5413_s3 + $0x380] sm:$0xff]  ;;  %v189_v5 = vld [vmem:[%s5413_s3 + $0x388] sm:$0xff]  ;;  %vm1663_vm7 = vcmask 781824   ;;  %vm1775_vm8 = vcmask 1044224   ;;  %vm1665_vm9 = vcmask 780800  }
   0x3   :  { %36 = vadd.xlane.f32.xlu0 %v35_v1  ;;  %v196_v4 = vld [vmem:[%s5413_s3 + $0x3c0] sm:$0xff]  ;;  %v197_v7 = vld [vmem:[%s5413_s3 + $0x3c8] sm:$0xff]  ;;  %vm1777_vm10 = vcmask 1043200  }
   0x4   :  { %v3629_v6 = vcombine.high %v188_v3, %v196_v4  ;;  %v3628_v8 = vcombine.low %v188_v3, %v196_v4  ;;  %v3631_v9 = vcombine.high %v189_v5, %v197_v7  ;;  %v3630_v10 = vcombine.low %v189_v5, %v197_v7  ;;  %v172_v20 = vld [vmem:[%s5413_s3 + $0x300] sm:$0xff]  ;;  %v173_v22 = vld [vmem:[%s5413_s3 + $0x308] sm:$0xff] }
   0x5   :  { %v180_v21 = vld [vmem:[%s5413_s3 + $0x340] sm:$0xff]  ;;  %v181_v24 = vld [vmem:[%s5413_s3 + $0x348] sm:$0xff] }
   0x6   :  { %928 = vmatprep.subr.bf16.mxu0 %v3629_v6  ;;  %971 = vmatprep.subr.bf16.mxu1 %v3631_v9  ;;  %v3613_v23 = vcombine.high %v172_v20, %v180_v21  ;;  %v3615_v25 = vcombine.high %v173_v22, %v181_v24  ;;  %v3612_v26 = vcombine.low %v172_v20, %v180_v21  ;;  %v156_v28 = vld [vmem:[%s5413_s3 + $0x280] sm:$0xff]  ;;  %v157_v30 = vld [vmem:[%s5413_s3 + $0x288] sm:$0xff] }
   0x7   :  { %32 = vadd.xlane.f32.xlu0 %v30_v2  ;;  %929 = vmatpush1.bf16.msra.mxu0 %v3628_v8  ;;  %v3614_v27 = vcombine.low %v173_v22, %v181_v24  ;;  %v164_v29 = vld [vmem:[%s5413_s3 + $0x2c0] sm:$0xff]  ;;  %v165_v32 = vld [vmem:[%s5413_s3 + $0x2c8] sm:$0xff]  ;;  %v4290_v22 = vmov 0  }
   0x8   :  { %972 = vmatpush1.bf16.msra.mxu1 %v3630_v10  ;;  %930 = vmatprep.subr.bf16.mxu0 %v3613_v23  ;;  %v3597_v31 = vcombine.high %v156_v28, %v164_v29  ;;  %v3599_v33 = vcombine.high %v157_v30, %v165_v32  ;;  %v3596_v34 = vcombine.low %v156_v28, %v164_v29  ;;  %v140_v36 = vld [vmem:[%s5413_s3 + $0x200] sm:$0xff]  ;;  %v141_v38 = vld [vmem:[%s5413_s3 + $0x208] sm:$0xff] }
   0x9   :  { %973 = vmatprep.subr.bf16.mxu1 %v3615_v25  ;;  %v3598_v35 = vcombine.low %v157_v30, %v165_v32  ;;  %v148_v37 = vld [vmem:[%s5413_s3 + $0x240] sm:$0xff]  ;;  %v149_v40 = vld [vmem:[%s5413_s3 + $0x248] sm:$0xff]  ;;  %960 = vmatprep.mubr.bf16.mxu0 %v4290_v22 }
   0xa   :  { %v3581_v39 = vcombine.high %v140_v36, %v148_v37  ;;  %v3583_v41 = vcombine.high %v141_v38, %v149_v40  ;;  %v3580_v42 = vcombine.low %v140_v36, %v148_v37  ;;  %v3582_v43 = vcombine.low %v141_v38, %v149_v40  ;;  %v124_v44 = vld [vmem:[%s5413_s3 + $0x180] sm:$0xff]  ;;  %v125_v46 = vld [vmem:[%s5413_s3 + $0x188] sm:$0xff]  ;;  %1003 = vmatprep.mubr.bf16.mxu1 %v4290_v22  ;;  %v174_v37 = vld [vmem:[%s5413_s3 + $0x310] sm:$0xff] }
   0xb   :  { %931 = vmatpush1.bf16.msra.mxu0 %v3612_v26  ;;  %v132_v45 = vld [vmem:[%s5413_s3 + $0x1c0] sm:$0xff]  ;;  %v133_v48 = vld [vmem:[%s5413_s3 + $0x1c8] sm:$0xff]  ;;  %v175_v38 = vld [vmem:[%s5413_s3 + $0x318] sm:$0xff] }
   0xc   :  { %974 = vmatpush1.bf16.msra.mxu1 %v3614_v27  ;;  %932 = vmatprep.subr.bf16.mxu0 %v3597_v31  ;;  %v3565_v47 = vcombine.high %v124_v44, %v132_v45  ;;  %v3567_v49 = vcombine.high %v125_v46, %v133_v48  ;;  %v3564_v50 = vcombine.low %v124_v44, %v132_v45  ;;  %v108_v52 = vld [vmem:[%s5413_s3 + $0x100] sm:$0xff]  ;;  %v109_v54 = vld [vmem:[%s5413_s3 + $0x108] sm:$0xff]  ;;  %v158_v44 = vld [vmem:[%s5413_s3 + $0x290] sm:$0xff] }
   0xd   :  { %975 = vmatprep.subr.bf16.mxu1 %v3599_v33  ;;  %v3566_v51 = vcombine.low %v125_v46, %v133_v48  ;;  %v116_v53 = vld [vmem:[%s5413_s3 + $0x140] sm:$0xff]  ;;  %v117_v56 = vld [vmem:[%s5413_s3 + $0x148] sm:$0xff]  ;;  %v166_v45 = vld [vmem:[%s5413_s3 + $0x2d0] sm:$0xff] }
   0xe   :  { %v3549_v55 = vcombine.high %v108_v52, %v116_v53  ;;  %v3551_v57 = vcombine.high %v109_v54, %v117_v56  ;;  %v3548_v58 = vcombine.low %v108_v52, %v116_v53  ;;  %v3550_v59 = vcombine.low %v109_v54, %v117_v56  ;;  %v92_v60 = vld [vmem:[%s5413_s3 + $0x80] sm:$0xff]  ;;  %v93_v62 = vld [vmem:[%s5413_s3 + $0x88] sm:$0xff]  ;;  %v159_v46 = vld [vmem:[%s5413_s3 + $0x298] sm:$0xff] }
   0xf   :  { %933 = vmatpush1.bf16.msra.mxu0 %v3596_v34  ;;  %v100_v61 = vld [vmem:[%s5413_s3 + $0xc0] sm:$0xff]  ;;  %v77_v6 = vld [vmem:[%s5413_s3 + $0x8] sm:$0xff]  ;;  %v142_v52 = vld [vmem:[%s5413_s3 + $0x210] sm:$0xff]  ;;  %v3600_v56 = vcombine.low %v158_v44, %v166_v45 }
  0x10   :  { %976 = vmatpush1.bf16.msra.mxu1 %v3598_v35  ;;  %934 = vmatprep.subr.bf16.mxu0 %v3581_v39  ;;  %v3533_v63 = vcombine.high %v92_v60, %v100_v61  ;;  %v76_v4 = vld [vmem:[%s5413_s3] sm:$0xff]  ;;  %v85_v8 = vld [vmem:[%s5413_s3 + $0x48] sm:$0xff]  ;;  %v150_v53 = vld [vmem:[%s5413_s3 + $0x250] sm:$0xff] }
  0x11   :  { %977 = vmatprep.subr.bf16.mxu1 %v3583_v41  ;;  %v84_v5 = vld [vmem:[%s5413_s3 + $0x40] sm:$0xff]  ;;  %v3519_v9 = vcombine.high %v77_v6, %v85_v8  ;;  %v143_v54 = vld [vmem:[%s5413_s3 + $0x218] sm:$0xff] }
  0x12   :  { %v3517_v7 = vcombine.high %v76_v4, %v84_v5  ;;  %v3516_v10 = vcombine.low %v76_v4, %v84_v5  ;;  %v3514_v31 = vld [vmem:[%s5415_s1] ss:$0 sm:$0xff]  ;;  %v110_v4 = vld [vmem:[%s5413_s3 + $0x110] sm:$0xff]  ;;  %s4295_s1 = smov 96  }
  0x13   :  { %935 = vmatpush1.bf16.msra.mxu0 %v3580_v42  ;;  %v3515_v35 = vld [vmem:[%s5416_s2] ss:$0 sm:$0xff]  ;;  %v118_v5 = vld [vmem:[%s5413_s3 + $0x150] sm:$0xff] }
  0x14   :  { %978 = vmatpush1.bf16.msra.mxu1 %v3582_v43  ;;  %936 = vmatprep.subr.bf16.mxu0 %v3565_v47  ;;  %v167_v47 = vld [vmem:[%s5413_s3 + $0x2d8] sm:$0xff] }
  0x15   :  { %979 = vmatprep.subr.bf16.mxu1 %v3567_v49 }
  0x17   :  { %937 = vmatpush1.bf16.msra.mxu0 %v3564_v50  ;;  %v3601_v50 = vcombine.high %v158_v44, %v166_v45 }
  0x18   :  { %980 = vmatpush1.bf16.msra.mxu1 %v3566_v51  ;;  %938 = vmatprep.subr.bf16.mxu0 %v3549_v55  ;;  %v3603_v51 = vcombine.high %v159_v46, %v167_v47  ;;  %v151_v55 = vld [vmem:[%s5413_s3 + $0x258] sm:$0xff] }
  0x19   :  { %981 = vmatprep.subr.bf16.mxu1 %v3551_v57  ;;  %v3602_v57 = vcombine.low %v159_v46, %v167_v47  ;;  %v160_v46 = vld [vmem:[%s5413_s3 + $0x2a0] sm:$0xff] }
  0x1a   :  { %v168_v47 = vld [vmem:[%s5413_s3 + $0x2e0] sm:$0xff] }
  0x1b   :  { %939 = vmatpush1.bf16.msra.mxu0 %v3548_v58  ;;  %v3585_v58 = vcombine.high %v142_v52, %v150_v53 }
  0x1c   :  { %982 = vmatpush1.bf16.msra.mxu1 %v3550_v59  ;;  %940 = vmatprep.subr.bf16.mxu0 %v3533_v63  ;;  %v3587_v59 = vcombine.high %v143_v54, %v151_v55  ;;  %v135_v63 = vld [vmem:[%s5413_s3 + $0x1d8] sm:$0xff] }
  0x8c   :  { %v37_v11 = vpop.xlane.xlu0 %36 }
  0x8d   :  { %v39_v12 = vmul.f32 0.0078125, %v37_v11  ;;  %v3518_v11 = vcombine.low %v77_v6, %v85_v8  ;;  %v111_v6 = vld [vmem:[%s5413_s3 + $0x118] sm:$0xff] }
  0x8f   :  { %v4360_v15 = vsub.f32 %v31_v0, %v39_v12  ;;  %v101_v0 = vld [vmem:[%s5413_s3 + $0xc8] sm:$0xff]  ;;  %v190_v12 = vld [vmem:[%s5413_s3 + $0x390] sm:$0xff] }
  0x90   :  { %v33_v13 = vpop.xlane.xlu0 %32  ;;  %v3535_v1 = vcombine.high %v93_v62, %v101_v0  ;;  %v3534_v3 = vcombine.low %v93_v62, %v101_v0  ;;  %v127_v62 = vld [vmem:[%s5413_s3 + $0x198] sm:$0xff]  ;;  %v3584_v0 = vcombine.low %v142_v52, %v150_v53  ;;  %v3605_v52 = vcombine.high %v160_v46, %v168_v47 }
  0x91   :  { %v38_v14 = vmul.f32 0.0078125, %v33_v13  ;;  %v43_v18 = vmul.f32 %v4360_v15, %v4360_v15  ;;  %v198_v13 = vld [vmem:[%s5413_s3 + $0x3d0] sm:$0xff] }
  0x92   :  { %983 = vmatprep.subr.bf16.mxu1 %v3535_v1  ;;  %v3586_v1 = vcombine.low %v143_v54, %v151_v55  ;;  %v144_v54 = vld [vmem:[%s5413_s3 + $0x220] sm:$0xff] }
  0x93   :  { %v4362_v16 = vsub.f32 %v30_v2, %v38_v14  ;;  %v46_v19 = vsel %vm34_vm0, %v43_v18, 0.0  ;;  %v3532_v2 = vcombine.low %v92_v60, %v100_v61  ;;  %984 = vmatpush1.bf16.msra.mxu1 %v3534_v3  ;;  %v191_v14 = vld [vmem:[%s5413_s3 + $0x398] sm:$0xff]  ;;  %v126_v60 = vld [vmem:[%s5413_s3 + $0x190] sm:$0xff]  ;;  %v3571_v3 = vcombine.high %v127_v62, %v135_v63  ;;  %v152_v55 = vld [vmem:[%s5413_s3 + $0x260] sm:$0xff] }
  0x94   :  { %985 = vmatprep.subr.bf16.mxu1 %v3519_v9  ;;  %v199_v18 = vld [vmem:[%s5413_s3 + $0x3d8] sm:$0xff]  ;;  %v134_v61 = vld [vmem:[%s5413_s3 + $0x1d0] sm:$0xff]  ;;  %v3570_v9 = vcombine.low %v127_v62, %v135_v63  ;;  %v128_v62 = vld [vmem:[%s5413_s3 + $0x1a0] sm:$0xff] }
  0x95   :  { %v42_v17 = vmul.f32 %v4362_v16, %v4362_v16  ;;  %941 = vmatpush1.bf16.msra.mxu0 %v3532_v2  ;;  %v3634_v20 = vcombine.low %v191_v14, %v199_v18  ;;  %v3635_v21 = vcombine.high %v191_v14, %v199_v18  ;;  %v3569_v2 = vcombine.high %v126_v60, %v134_v61  ;;  %v95_v14 = vld [vmem:[%s5413_s3 + $0x98] sm:$0xff]  ;;  %v136_v63 = vld [vmem:[%s5413_s3 + $0x1e0] sm:$0xff] }
  0x96   :  { %942 = vmatprep.subr.bf16.mxu0 %v3517_v7  ;;  %v119_v7 = vld [vmem:[%s5413_s3 + $0x158] sm:$0xff]  ;;  %v3568_v8 = vcombine.low %v126_v60, %v134_v61  ;;  %v3552_v18 = vcombine.low %v110_v4, %v118_v5  ;;  %v3589_v60 = vcombine.high %v144_v54, %v152_v55 }
  0x97   :  { %44 = vadd.xlane.f32.xlu1 %v42_v17  ;;  %986 = vmatpush1.bf16.msra.mxu1 %v3518_v11  ;;  %v3633_v17 = vcombine.high %v190_v12, %v198_v13  ;;  %v3555_v11 = vcombine.high %v111_v6, %v119_v7 }
  0x98   :  { %1057 = vmatprep.subr.bf16.mxu1 %v3635_v21 }
  0x99   :  { %943 = vmatpush1.bf16.msra.mxu0 %v3516_v10  ;;  %v3553_v10 = vcombine.high %v110_v4, %v118_v5  ;;  %v3573_v4 = vcombine.high %v128_v62, %v136_v63 }
  0x9a   :  { %1014 = vmatprep.subr.bf16.mxu0 %v3633_v17  ;;  %v103_v17 = vld [vmem:[%s5413_s3 + $0xd8] sm:$0xff] }
  0x9b   :  { %47 = vadd.xlane.f32.xlu1 %v46_v19  ;;  %v3632_v19 = vcombine.low %v190_v12, %v198_v13  ;;  %v94_v12 = vld [vmem:[%s5413_s3 + $0x90] sm:$0xff]  ;;  %v3539_v21 = vcombine.high %v95_v14, %v103_v17 }
  0x9c   :  { %v102_v13 = vld [vmem:[%s5413_s3 + $0xd0] sm:$0xff] }
 0x120   :  { %v45_v23 = vpop.xlane.xlu1 %44 }
 0x121   :  { %v49_v24 = vmul.f32 0.0078125, %v45_v23  ;;  %v78_v23 = vld [vmem:[%s5413_s3 + $0x10] sm:$0xff] }
 0x123   :  { %v51_v25 = vadd.f32 1.1920929e-07, %v49_v24  ;;  %v86_v24 = vld [vmem:[%s5413_s3 + $0x50] sm:$0xff] }
 0x124   :  { %v48_v26 = vpop.xlane.xlu1 %47 }
 0x125   :  { %4092 = vrsqrt.f32 %v51_v25  ;;  %v50_v27 = vmul.f32 0.0078125, %v48_v26  ;;  %v79_v25 = vld [vmem:[%s5413_s3 + $0x18] sm:$0xff] }
 0x126   :  { %v87_v26 = vld [vmem:[%s5413_s3 + $0x58] sm:$0xff] }
 0x127   :  { %v52_v28 = vadd.f32 1.1920929e-07, %v50_v27  ;;  %v3536_v27 = vcombine.low %v94_v12, %v102_v13 }
 0x129   :  { %4094 = vrsqrt.f32 %v52_v28  ;;  %v3538_v28 = vcombine.low %v95_v14, %v103_v17  ;;  %v96_v14 = vld [vmem:[%s5413_s3 + $0xa0] sm:$0xff] }
 0x12a   :  { %v104_v17 = vld [vmem:[%s5413_s3 + $0xe0] sm:$0xff] }
 0x132   :  { %v4093_v29 = vpop.eup %4092 }
 0x133   :  { %v55_v30 = vmul.f32 %v4093_v29, %v4362_v16  ;;  %v182_v16 = vld [vmem:[%s5413_s3 + $0x350] sm:$0xff]  ;;  %v3521_v29 = vcombine.high %v78_v23, %v86_v24 }
 0x134   :  { %v3617_v42 = vcombine.high %v174_v37, %v182_v16  ;;  %v3616_v48 = vcombine.low %v174_v37, %v182_v16 }
 0x135   :  { %v64_v33 = vmul.f32 %v3514_v31, %v55_v30  ;;  %v3523_v30 = vcombine.high %v79_v25, %v87_v26 }
 0x136   :  { %v4095_v32 = vpop.eup %4094 }
 0x137   :  { %v56_v34 = vmul.f32 %v4095_v32, %v4360_v15  ;;  %v183_v15 = vld [vmem:[%s5413_s3 + $0x358] sm:$0xff]  ;;  %v73_v39 = vadd.f32 %v3515_v35, %v64_v33  ;;  %v200_v32 = vld [vmem:[%s5413_s3 + $0x3e0] sm:$0xff]  ;;  %v193_v33 = vld [vmem:[%s5413_s3 + $0x3a8] sm:$0xff] }
 0x138   :  { %v3619_v43 = vcombine.high %v175_v38, %v183_v15  ;;  %v3618_v49 = vcombine.low %v175_v38, %v183_v15  ;;  %v176_v38 = vld [vmem:[%s5413_s3 + $0x320] sm:$0xff] }
 0x139   :  { %v65_v36 = vmul.f32 %v3514_v31, %v56_v34  ;;  %v192_v31 = vld [vmem:[%s5413_s3 + $0x3a0] sm:$0xff]  ;;  %v201_v34 = vld [vmem:[%s5413_s3 + $0x3e8] sm:$0xff] }
 0x13a   :  { %v3637_v37 = vcombine.high %v192_v31, %v200_v32  ;;  %v3639_v16 = vcombine.high %v193_v33, %v201_v34  ;;  %v184_v15 = vld [vmem:[%s5413_s3 + $0x360] sm:$0xff] }
 0x13b   :  { %v74_v40 = vadd.f32 %v3515_v35, %v65_v36  ;;  %v3520_v35 = vcombine.low %v78_v23, %v86_v24  ;;  %v3522_v36 = vcombine.low %v79_v25, %v87_v26  ;;  %v3621_v44 = vcombine.high %v176_v38, %v184_v15  ;;  %v80_v25 = vld [vmem:[%s5413_s3 + $0x20] sm:$0xff] }
 0x13c   :  { %v3541_v23 = vcombine.high %v96_v14, %v104_v17  ;;  %v88_v26 = vld [vmem:[%s5413_s3 + $0x60] sm:$0xff] }
 0x13d   :  { %v4487_v41 = vpack.c.bf16 %v74_v40, %v73_v39  ;;  %v177_v39 = vld [vmem:[%s5413_s3 + $0x328] sm:$0xff] }
 0x13e   :  { %v185_v40 = vld [vmem:[%s5413_s3 + $0x368] sm:$0xff] }
 0x13f   :  { %961 = vmatmul.mubr.bf16.vlgmr.msra.gmra.mxu0 %v4487_v41  ;;  %1004 = vmatmul.mubr.bf16.vlgmr.msra.gmra.mxu1 %v4487_v41  ;;  %v3623_v45 = vcombine.high %v177_v39, %v185_v40 }
 0x140   :  { %1015 = vmatpush1.bf16.msra.mxu0 %v3632_v19  ;;  %1058 = vmatpush1.bf16.msra.mxu1 %v3634_v20  ;;  %v3554_v19 = vcombine.low %v111_v6, %v119_v7  ;;  %v3537_v20 = vcombine.high %v94_v12, %v102_v13  ;;  %v112_v6 = vld [vmem:[%s5413_s3 + $0x120] sm:$0xff] }
 0x141   :  { %1016 = vmatprep.subr.bf16.mxu0 %v3617_v42  ;;  %1059 = vmatprep.subr.bf16.mxu1 %v3619_v43  ;;  %v3636_v42 = vcombine.low %v192_v31, %v200_v32  ;;  %v3638_v43 = vcombine.low %v193_v33, %v201_v34  ;;  %v120_v7 = vld [vmem:[%s5413_s3 + $0x160] sm:$0xff]  ;;  %v3525_v31 = vcombine.high %v80_v25, %v88_v26  ;;  %v194_v33 = vld [vmem:[%s5413_s3 + $0x3b0] sm:$0xff] }
 0x142   :  { %1046 = vmatprep.mubr.bf16.mxu0 %v4290_v22  ;;  %1089 = vmatprep.mubr.bf16.mxu1 %v4290_v22  ;;  %v3557_v12 = vcombine.high %v112_v6, %v120_v7  ;;  %v202_v34 = vld [vmem:[%s5413_s3 + $0x3f0] sm:$0xff] }
 0x144   :  { %1017 = vmatpush1.bf16.msra.mxu0 %v3616_v48  ;;  %1060 = vmatpush1.bf16.msra.mxu1 %v3618_v49  ;;  %v161_v48 = vld [vmem:[%s5413_s3 + $0x2a8] sm:$0xff] }
 0x145   :  { %1018 = vmatprep.subr.bf16.mxu0 %v3601_v50  ;;  %1061 = vmatprep.subr.bf16.mxu1 %v3603_v51  ;;  %v169_v49 = vld [vmem:[%s5413_s3 + $0x2e8] sm:$0xff]  ;;  %v3620_v50 = vcombine.low %v176_v38, %v184_v15  ;;  %v3622_v51 = vcombine.low %v177_v39, %v185_v40  ;;  %v3641_v38 = vcombine.high %v194_v33, %v202_v34  ;;  %v178_v39 = vld [vmem:[%s5413_s3 + $0x330] sm:$0xff] }
 0x146   :  { %v3607_v53 = vcombine.high %v161_v48, %v169_v49  ;;  %v186_v40 = vld [vmem:[%s5413_s3 + $0x370] sm:$0xff] }
 0x148   :  { %1019 = vmatpush1.bf16.msra.mxu0 %v3600_v56  ;;  %1062 = vmatpush1.bf16.msra.mxu1 %v3602_v57  ;;  %v145_v56 = vld [vmem:[%s5413_s3 + $0x228] sm:$0xff] }
 0x149   :  { %1020 = vmatprep.subr.bf16.mxu0 %v3585_v58  ;;  %1063 = vmatprep.subr.bf16.mxu1 %v3587_v59  ;;  %v153_v57 = vld [vmem:[%s5413_s3 + $0x268] sm:$0xff]  ;;  %v3604_v58 = vcombine.low %v160_v46, %v168_v47  ;;  %v3606_v59 = vcombine.low %v161_v48, %v169_v49  ;;  %v3625_v46 = vcombine.high %v178_v39, %v186_v40  ;;  %v162_v48 = vld [vmem:[%s5413_s3 + $0x2b0] sm:$0xff] }
 0x14a   :  { %v3591_v61 = vcombine.high %v145_v56, %v153_v57  ;;  %v170_v49 = vld [vmem:[%s5413_s3 + $0x2f0] sm:$0xff] }
 0x14c   :  { %1021 = vmatpush1.bf16.msra.mxu0 %v3584_v0  ;;  %1064 = vmatpush1.bf16.msra.mxu1 %v3586_v1  ;;  %v129_v0 = vld [vmem:[%s5413_s3 + $0x1a8] sm:$0xff] }
 0x14d   :  { %1022 = vmatprep.subr.bf16.mxu0 %v3569_v2  ;;  %1065 = vmatprep.subr.bf16.mxu1 %v3571_v3  ;;  %v137_v1 = vld [vmem:[%s5413_s3 + $0x1e8] sm:$0xff]  ;;  %v3588_v2 = vcombine.low %v144_v54, %v152_v55  ;;  %v3590_v3 = vcombine.low %v145_v56, %v153_v57  ;;  %v3609_v54 = vcombine.high %v162_v48, %v170_v49  ;;  %v146_v56 = vld [vmem:[%s5413_s3 + $0x230] sm:$0xff] }
 0x14e   :  { %v3575_v5 = vcombine.high %v129_v0, %v137_v1  ;;  %v154_v57 = vld [vmem:[%s5413_s3 + $0x270] sm:$0xff] }
 0x150   :  { %1023 = vmatpush1.bf16.msra.mxu0 %v3568_v8  ;;  %1066 = vmatpush1.bf16.msra.mxu1 %v3570_v9  ;;  %v113_v8 = vld [vmem:[%s5413_s3 + $0x128] sm:$0xff] }
 0x151   :  { %1024 = vmatprep.subr.bf16.mxu0 %v3553_v10  ;;  %1067 = vmatprep.subr.bf16.mxu1 %v3555_v11  ;;  %v121_v9 = vld [vmem:[%s5413_s3 + $0x168] sm:$0xff]  ;;  %v3572_v10 = vcombine.low %v128_v62, %v136_v63  ;;  %v3574_v11 = vcombine.low %v129_v0, %v137_v1  ;;  %v3593_v62 = vcombine.high %v146_v56, %v154_v57  ;;  %v130_v0 = vld [vmem:[%s5413_s3 + $0x1b0] sm:$0xff] }
 0x152   :  { %v3559_v13 = vcombine.high %v113_v8, %v121_v9  ;;  %v138_v1 = vld [vmem:[%s5413_s3 + $0x1f0] sm:$0xff] }
 0x154   :  { %1025 = vmatpush1.bf16.msra.mxu0 %v3552_v18  ;;  %1068 = vmatpush1.bf16.msra.mxu1 %v3554_v19  ;;  %v97_v18 = vld [vmem:[%s5413_s3 + $0xa8] sm:$0xff] }
 0x155   :  { %1026 = vmatprep.subr.bf16.mxu0 %v3537_v20  ;;  %1069 = vmatprep.subr.bf16.mxu1 %v3539_v21  ;;  %v105_v19 = vld [vmem:[%s5413_s3 + $0xe8] sm:$0xff]  ;;  %v3556_v20 = vcombine.low %v112_v6, %v120_v7  ;;  %v3558_v21 = vcombine.low %v113_v8, %v121_v9  ;;  %v3577_v6 = vcombine.high %v130_v0, %v138_v1  ;;  %v114_v8 = vld [vmem:[%s5413_s3 + $0x130] sm:$0xff] }
 0x156   :  { %v3543_v24 = vcombine.high %v97_v18, %v105_v19  ;;  %v122_v9 = vld [vmem:[%s5413_s3 + $0x170] sm:$0xff] }
 0x158   :  { %1027 = vmatpush1.bf16.msra.mxu0 %v3536_v27  ;;  %1070 = vmatpush1.bf16.msra.mxu1 %v3538_v28  ;;  %v81_v27 = vld [vmem:[%s5413_s3 + $0x28] sm:$0xff] }
 0x159   :  { %1028 = vmatprep.subr.bf16.mxu0 %v3521_v29  ;;  %1071 = vmatprep.subr.bf16.mxu1 %v3523_v30  ;;  %v89_v28 = vld [vmem:[%s5413_s3 + $0x68] sm:$0xff]  ;;  %v3540_v29 = vcombine.low %v96_v14, %v104_v17  ;;  %v3542_v30 = vcombine.low %v97_v18, %v105_v19  ;;  %v3561_v14 = vcombine.high %v114_v8, %v122_v9  ;;  %v98_v18 = vld [vmem:[%s5413_s3 + $0xb0] sm:$0xff] }
 0x15a   :  { %v3527_v32 = vcombine.high %v81_v27, %v89_v28  ;;  %v106_v19 = vld [vmem:[%s5413_s3 + $0xf0] sm:$0xff] }
 0x15c   :  { %1029 = vmatpush1.bf16.msra.mxu0 %v3520_v35  ;;  %1072 = vmatpush1.bf16.msra.mxu1 %v3522_v36  ;;  %v195_v35 = vld [vmem:[%s5413_s3 + $0x3b8] sm:$0xff] }
 0x15d   :  { %1100 = vmatprep.subr.bf16.mxu0 %v3637_v37  ;;  %1143 = vmatprep.subr.bf16.mxu1 %v3639_v16  ;;  %v203_v36 = vld [vmem:[%s5413_s3 + $0x3f8] sm:$0xff]  ;;  %v3524_v37 = vcombine.low %v80_v25, %v88_v26  ;;  %v3526_v16 = vcombine.low %v81_v27, %v89_v28  ;;  %v3545_v25 = vcombine.high %v98_v18, %v106_v19  ;;  %v82_v27 = vld [vmem:[%s5413_s3 + $0x30] sm:$0xff] }
 0x15e   :  { %v3643_v15 = vcombine.high %v195_v35, %v203_v36  ;;  %v90_v28 = vld [vmem:[%s5413_s3 + $0x70] sm:$0xff] }
 0x15f   :  { %1047 = vmatmul.mubr.bf16.vlgmr.msra.gmra.mxu0 %v4487_v41  ;;  %1090 = vmatmul.mubr.bf16.vlgmr.msra.gmra.mxu1 %v4487_v41 }
 0x160   :  { %1101 = vmatpush1.bf16.msra.mxu0 %v3636_v42  ;;  %1144 = vmatpush1.bf16.msra.mxu1 %v3638_v43  ;;  %v179_v42 = vld [vmem:[%s5413_s3 + $0x338] sm:$0xff] }
 0x161   :  { %1102 = vmatprep.subr.bf16.mxu0 %v3621_v44  ;;  %1145 = vmatprep.subr.bf16.mxu1 %v3623_v45  ;;  %v187_v43 = vld [vmem:[%s5413_s3 + $0x378] sm:$0xff]  ;;  %v3640_v44 = vcombine.low %v194_v33, %v202_v34  ;;  %v3642_v45 = vcombine.low %v195_v35, %v203_v36  ;;  %v3529_v33 = vcombine.high %v82_v27, %v90_v28 }
 0x162   :  { %1132 = vmatprep.mubr.bf16.mxu0 %v4290_v22  ;;  %1175 = vmatprep.mubr.bf16.mxu1 %v4290_v22  ;;  %v3627_v47 = vcombine.high %v179_v42, %v187_v43  ;;  %v3528_v35 = vcombine.low %v82_v27, %v90_v28 }
 0x164   :  { %1103 = vmatpush1.bf16.msra.mxu0 %v3620_v50  ;;  %1146 = vmatpush1.bf16.msra.mxu1 %v3622_v51  ;;  %v163_v50 = vld [vmem:[%s5413_s3 + $0x2b8] sm:$0xff] }
 0x165   :  { %1104 = vmatprep.subr.bf16.mxu0 %v3605_v52  ;;  %1147 = vmatprep.subr.bf16.mxu1 %v3607_v53  ;;  %v171_v51 = vld [vmem:[%s5413_s3 + $0x2f8] sm:$0xff]  ;;  %v3624_v52 = vcombine.low %v178_v39, %v186_v40  ;;  %v3626_v53 = vcombine.low %v179_v42, %v187_v43  ;;  %v205_v40 = vld [vmem:[%s5417_s4 + $0x8] sm:$0xff] }
 0x166   :  { %v3611_v55 = vcombine.high %v163_v50, %v171_v51 }
 0x168   :  { %1105 = vmatpush1.bf16.msra.mxu0 %v3604_v58  ;;  %1148 = vmatpush1.bf16.msra.mxu1 %v3606_v59  ;;  %v147_v58 = vld [vmem:[%s5413_s3 + $0x238] sm:$0xff] }
 0x169   :  { %1106 = vmatprep.subr.bf16.mxu0 %v3589_v60  ;;  %1149 = vmatprep.subr.bf16.mxu1 %v3591_v61  ;;  %v155_v59 = vld [vmem:[%s5413_s3 + $0x278] sm:$0xff]  ;;  %v3608_v60 = vcombine.low %v162_v48, %v170_v49  ;;  %v3610_v61 = vcombine.low %v163_v50, %v171_v51 }
 0x16a   :  { %v3595_v63 = vcombine.high %v147_v58, %v155_v59 }
 0x16c   :  { %1107 = vmatpush1.bf16.msra.mxu0 %v3588_v2  ;;  %1150 = vmatpush1.bf16.msra.mxu1 %v3590_v3  ;;  %v131_v2 = vld [vmem:[%s5413_s3 + $0x1b8] sm:$0xff] }
 0x16d   :  { %1108 = vmatprep.subr.bf16.mxu0 %v3573_v4  ;;  %1151 = vmatprep.subr.bf16.mxu1 %v3575_v5  ;;  %v139_v3 = vld [vmem:[%s5413_s3 + $0x1f8] sm:$0xff]  ;;  %v3592_v4 = vcombine.low %v146_v56, %v154_v57  ;;  %v3594_v5 = vcombine.low %v147_v58, %v155_v59  ;;  %v204_v56 = vld [vmem:[%s5417_s4] sm:$0xff]  ;;  %s4293_s4 = smov 64  }
 0x16e   :  { %v3579_v7 = vcombine.high %v131_v2, %v139_v3 }
 0x170   :  { %1109 = vmatpush1.bf16.msra.mxu0 %v3572_v10  ;;  %1152 = vmatpush1.bf16.msra.mxu1 %v3574_v11  ;;  %v115_v10 = vld [vmem:[%s5413_s3 + $0x138] sm:$0xff] }
 0x171   :  { %1110 = vmatprep.subr.bf16.mxu0 %v3557_v12  ;;  %1153 = vmatprep.subr.bf16.mxu1 %v3559_v13  ;;  %v123_v11 = vld [vmem:[%s5413_s3 + $0x178] sm:$0xff]  ;;  %v3576_v12 = vcombine.low %v130_v0, %v138_v1  ;;  %v3578_v13 = vcombine.low %v131_v2, %v139_v3 }
 0x172   :  { %v3563_v17 = vcombine.high %v115_v10, %v123_v11 }
 0x174   :  { %1111 = vmatpush1.bf16.msra.mxu0 %v3556_v20  ;;  %1154 = vmatpush1.bf16.msra.mxu1 %v3558_v21  ;;  %v99_v20 = vld [vmem:[%s5413_s3 + $0xb8] sm:$0xff] }
 0x175   :  { %1112 = vmatprep.subr.bf16.mxu0 %v3541_v23  ;;  %1155 = vmatprep.subr.bf16.mxu1 %v3543_v24  ;;  %v107_v21 = vld [vmem:[%s5413_s3 + $0xf8] sm:$0xff]  ;;  %v3560_v23 = vcombine.low %v114_v8, %v122_v9  ;;  %v3562_v24 = vcombine.low %v115_v10, %v123_v11 }
 0x176   :  { %v3547_v26 = vcombine.high %v99_v20, %v107_v21 }
 0x178   :  { %1113 = vmatpush1.bf16.msra.mxu0 %v3540_v29  ;;  %1156 = vmatpush1.bf16.msra.mxu1 %v3542_v30  ;;  %v83_v29 = vld [vmem:[%s5413_s3 + $0x38] sm:$0xff] }
 0x179   :  { %1114 = vmatprep.subr.bf16.mxu0 %v3525_v31  ;;  %1157 = vmatprep.subr.bf16.mxu1 %v3527_v32  ;;  %v91_v30 = vld [vmem:[%s5413_s3 + $0x78] sm:$0xff]  ;;  %v3544_v31 = vcombine.low %v98_v18, %v106_v19  ;;  %v3546_v32 = vcombine.low %v99_v20, %v107_v21 }
 0x17a   :  { %v3531_v34 = vcombine.high %v83_v29, %v91_v30  ;;  %v3530_v36 = vcombine.low %v83_v29, %v91_v30 }
 0x17c   :  { %1115 = vmatpush1.bf16.msra.mxu0 %v3524_v37  ;;  %1158 = vmatpush1.bf16.msra.mxu1 %v3526_v16  ;;  %v4768_v37 = vld [vmem:[%s5414_s5 + $0x8] sm:$0xff]   ;;  %v4291_v16 = vmov 0.0  }
 0x17d   :  { %1186 = vmatprep.subr.bf16.mxu0 %v3641_v38  ;;  %1229 = vmatprep.subr.bf16.mxu1 %v3643_v15  ;;  %v208_v38 = vlaneseq  ;;  %v4778_v15 = vld [vmem:[%s5414_s5] sm:$0xff]  }
 0x17f   :  { %1133 = vmatmul.mubr.bf16.vlgmr.msra.gmra.mxu0 %v4487_v41  ;;  %1176 = vmatmul.mubr.bf16.vlgmr.msra.gmra.mxu1 %v4487_v41 }
 0x180   :  { %1187 = vmatpush1.bf16.msra.mxu0 %v3640_v44  ;;  %1230 = vmatpush1.bf16.msra.mxu1 %v3642_v45 }
 0x181   :  { %1188 = vmatprep.subr.bf16.mxu0 %v3625_v46  ;;  %1231 = vmatprep.subr.bf16.mxu1 %v3627_v47 }
 0x182   :  { %1218 = vmatprep.mubr.bf16.mxu0 %v4290_v22  ;;  %1261 = vmatprep.mubr.bf16.mxu1 %v4290_v22 }
 0x184   :  { %1189 = vmatpush1.bf16.msra.mxu0 %v3624_v52  ;;  %1232 = vmatpush1.bf16.msra.mxu1 %v3626_v53 }
 0x185   :  { %1190 = vmatprep.subr.bf16.mxu0 %v3609_v54  ;;  %1233 = vmatprep.subr.bf16.mxu1 %v3611_v55 }
 0x188   :  { %1191 = vmatpush1.bf16.msra.mxu0 %v3608_v60  ;;  %1234 = vmatpush1.bf16.msra.mxu1 %v3610_v61 }
 0x189   :  { %1192 = vmatprep.subr.bf16.mxu0 %v3593_v62  ;;  %1235 = vmatprep.subr.bf16.mxu1 %v3595_v63 }
 0x18c   :  { %1193 = vmatpush1.bf16.msra.mxu0 %v3592_v4  ;;  %1236 = vmatpush1.bf16.msra.mxu1 %v3594_v5 }
 0x18d   :  { %1194 = vmatprep.subr.bf16.mxu0 %v3577_v6  ;;  %1237 = vmatprep.subr.bf16.mxu1 %v3579_v7 }
 0x190   :  { %1195 = vmatpush1.bf16.msra.mxu0 %v3576_v12  ;;  %1238 = vmatpush1.bf16.msra.mxu1 %v3578_v13 }
 0x191   :  { %1196 = vmatprep.subr.bf16.mxu0 %v3561_v14  ;;  %1239 = vmatprep.subr.bf16.mxu1 %v3563_v17 }
 0x194   :  { %1197 = vmatpush1.bf16.msra.mxu0 %v3560_v23  ;;  %1240 = vmatpush1.bf16.msra.mxu1 %v3562_v24 }
 0x195   :  { %1198 = vmatprep.subr.bf16.mxu0 %v3545_v25  ;;  %1241 = vmatprep.subr.bf16.mxu1 %v3547_v26 }
 0x198   :  { %1199 = vmatpush1.bf16.msra.mxu0 %v3544_v31  ;;  %1242 = vmatpush1.bf16.msra.mxu1 %v3546_v32 }
 0x199   :  { %1200 = vmatprep.subr.bf16.mxu0 %v3529_v33  ;;  %1243 = vmatprep.subr.bf16.mxu1 %v3531_v34 }
 0x19c   :  { %1201 = vmatpush1.bf16.msra.mxu0 %v3528_v35  ;;  %1244 = vmatpush1.bf16.msra.mxu1 %v3530_v36 }
 0x19d   :  { %3918 = vmatprep.subr.bf16.mxu0 %v4291_v16  ;;  %3926 = vmatprep.subr.bf16.mxu1 %v4291_v16 }
 0x19f   :  { %1219 = vmatmul.mubr.bf16.vlgmr.msra.gmra.mxu0 %v4487_v41  ;;  %1262 = vmatmul.mubr.bf16.vlgmr.msra.gmra.mxu1 %v4487_v41  ;;  %v209_v41 = vshrl.u32 %v208_v38, 7 }
 0x1a0   :  { %3919 = vmatpush3.bf16.msra.mxu0 %v4768_v37  ;;  %3922 = vmatprep.mubr.msk.bf16.mxu0 %vm4292_vm1, %v4291_v16 }
 0x1a1   :  { %3920 = vmatprep.subr.bf16.mxu0 %v4291_v16  ;;  %3927 = vmatpush3.bf16.msra.mxu1 %v4768_v37  ;;  %v210_v39 = vsub.s32 0, %v209_v41  ;;  %v218_v43 = vsub.s32 2, %v209_v41  ;;  %v222_v44 = vsub.s32 3, %v209_v41  ;;  %v226_v48 = vsub.s32 4, %v209_v41 }
 0x1a2   :  { %3928 = vmatprep.subr.bf16.mxu1 %v4291_v16  ;;  %3930 = vmatprep.mubr.msk.bf16.mxu1 %vm4292_vm1, %v4291_v16  ;;  %v234_v50 = vsub.s32 6, %v209_v41  ;;  %v230_v51 = vsub.s32 5, %v209_v41  ;;  %v238_v52 = vsub.s32 7, %v209_v41 }
 0x1a3   :  { %v4798_v42 = vrot.slane %v205_v40, %v210_v39  ;;  %v4803_v45 = vrot.slane %v205_v40, %v218_v43  ;;  %v4807_v47 = vrot.slane %v205_v40, %v222_v44  ;;  %v4809_v49 = vrot.slane %v205_v40, %v226_v48 }
 0x1a4   :  { %3921 = vmatpush3.bf16.msra.mxu0 %v4778_v15  ;;  %v4811_v53 = vrot.slane %v205_v40, %v234_v50  ;;  %v4813_v54 = vrot.slane %v205_v40, %v230_v51  ;;  %v4815_v55 = vrot.slane %v205_v40, %v238_v52  ;;  %v211_v57 = vrot.slane %v204_v56, %v210_v39 }
 0x1a5   :  { %3929 = vmatpush3.bf16.msra.mxu1 %v4778_v15  ;;  %3934 = vmatprep.subr.bf16.mxu0 %v4291_v16  ;;  %v219_v58 = vrot.slane %v204_v56, %v218_v43  ;;  %v223_v60 = vrot.slane %v204_v56, %v222_v44  ;;  %v227_v13 = vrot.slane %v204_v56, %v226_v48 }
 0x1a6   :  { %3942 = vmatprep.subr.bf16.mxu1 %v4291_v16  ;;  %v235_v14 = vrot.slane %v204_v56, %v234_v50  ;;  %v231_v17 = vrot.slane %v204_v56, %v230_v51  ;;  %v239_v18 = vrot.slane %v204_v56, %v238_v52 }
 0x1a7   :  { %3923 = vmatmul.mubr.bf16.vlgmr.msra.gmra.mxu0 %v4290_v22  ;;  %v214_v22 = vsub.s32 1, %v209_v41 }
 0x1a8   :  { %3935 = vmatpush3.bf16.msra.mxu0 %v4768_v37  ;;  %3938 = vmatprep.mubr.msk.bf16.mxu0 %vm4292_vm1, %v4291_v16 }
 0x1a9   :  { %3936 = vmatprep.subr.bf16.mxu0 %v4291_v16  ;;  %v4805_v46 = vrot.slane %v205_v40, %v214_v22  ;;  %v215_v59 = vrot.slane %v204_v56, %v214_v22 }
 0x1ac   :  { %3937 = vmatpush3.bf16.msra.mxu0 %v4778_v15 }
 0x1ad   :  { %3950 = vmatprep.subr.bf16.mxu0 %v4291_v16 }
 0x1ff   :  { %v962_v61 = vpop.f32.mrf.mxu0  ;;  %v1005_v62 = vpop.f32.mrf.mxu1 }
 0x200   :  { %v4820_v63 = vadd.f32 %v962_v61, %v211_v57  ;;  %v4822_v0 = vadd.f32 %v1005_v62, %v219_v58 }
 0x201   :  { %v964_v1 = vpop.f32.mrf.mxu0  ;;  %v1007_v2 = vpop.f32.mrf.mxu1 }
 0x202   :  { %v4824_v3 = vadd.f32 %v964_v1, %v215_v59  ;;  %v4826_v4 = vadd.f32 %v1007_v2, %v223_v60 }
 0x203   :  { %v966_v5 = vpop.f32.mrf.mxu0  ;;  %v1009_v6 = vpop.f32.mrf.mxu1 }
 0x204   :  { %v967_v7 = vadd.f32 %v966_v5, %v211_v57  ;;  %v1010_v8 = vadd.f32 %v1009_v6, %v219_v58 }
 0x205   :  { %v968_v9 = vpop.f32.mrf.mxu0  ;;  %v1011_v10 = vpop.f32.mrf.mxu1 }
 0x206   :  { %1288 = vst [vmem:[#allocation2 + $0x38] sm:$0x3f] %v967_v7  ;;  %1290 = vst [vmem:[#allocation2 + $0x40] sm:$0x3f] %v1010_v8  ;;  %v969_v11 = vadd.f32 %v968_v9, %v215_v59  ;;  %v1012_v12 = vadd.f32 %v1011_v10, %v223_v60 }
 0x208   :  { %1289 = vst [vmem:[#allocation2 + $0x58] sm:$0x3f] %v969_v11  ;;  %1291 = vst [vmem:[#allocation2 + $0xc8] sm:$0x3f] %v1012_v12 }
 0x21f   :  { %v1048_v19 = vpop.f32.mrf.mxu0  ;;  %v1091_v20 = vpop.f32.mrf.mxu1 }
 0x220   :  { %v4828_v21 = vadd.f32 %v1048_v19, %v227_v13  ;;  %v4830_v23 = vadd.f32 %v1091_v20, %v235_v14 }
 0x221   :  { %v1050_v24 = vpop.f32.mrf.mxu0  ;;  %v1093_v25 = vpop.f32.mrf.mxu1 }
 0x222   :  { %v4832_v26 = vadd.f32 %v1050_v24, %v231_v17  ;;  %v4834_v27 = vadd.f32 %v1093_v25, %v239_v18 }
 0x223   :  { %v1052_v28 = vpop.f32.mrf.mxu0  ;;  %v1095_v29 = vpop.f32.mrf.mxu1 }
 0x224   :  { %v1053_v30 = vadd.f32 %v1052_v28, %v227_v13  ;;  %v1096_v31 = vadd.f32 %v1095_v29, %v235_v14 }
 0x225   :  { %v1054_v32 = vpop.f32.mrf.mxu0  ;;  %v1097_v33 = vpop.f32.mrf.mxu1 }
 0x226   :  { %1292 = vst [vmem:[#allocation2 + $0xe0] sm:$0x3f] %v1053_v30  ;;  %1294 = vst [vmem:[#allocation2 + $0x70] sm:$0x3f] %v1096_v31  ;;  %v1055_v34 = vadd.f32 %v1054_v32, %v231_v17  ;;  %v1098_v35 = vadd.f32 %v1097_v33, %v239_v18  ;;  %v1309_v18 = vld [vmem:[#allocation2 + $0x38] sm:$0x3f] }
 0x228   :  { %1293 = vst [vmem:[#allocation2 + $0x90] sm:$0x3f] %v1055_v34  ;;  %1295 = vst [vmem:[#allocation2 + $0xc0] sm:$0x3f] %v1098_v35 }
 0x23f   :  { %v1134_v36 = vpop.f32.mrf.mxu0  ;;  %v1177_v38 = vpop.f32.mrf.mxu1 }
 0x240   :  { %v4837_v41 = vadd.f32 %v1134_v36, %v4798_v42  ;;  %v1178_v39 = vadd.f32 %v1177_v38, %v4803_v45 }
 0x241   :  { %v1136_v40 = vpop.f32.mrf.mxu0  ;;  %v1179_v43 = vpop.f32.mrf.mxu1 }
 0x242   :  { %1282 = vst [vmem:[#allocation2 + $0xe8] sm:$0xff] %v1178_v39  ;;  %v1137_v22 = vadd.f32 %v1136_v40, %v4805_v46  ;;  %v1180_v44 = vadd.f32 %v1179_v43, %v4807_v47 }
 0x243   :  { %v1138_v48 = vpop.f32.mrf.mxu0  ;;  %v1181_v50 = vpop.f32.mrf.mxu1 }
 0x244   :  { %1281 = vst [vmem:[#allocation2 + $0x88] sm:$0xff] %v1137_v22  ;;  %1283 = vst [vmem:[#allocation2 + $0xb8] sm:$0xff] %v1180_v44  ;;  %v1139_v51 = vadd.f32 %v1138_v48, %v4798_v42  ;;  %v1182_v52 = vadd.f32 %v1181_v50, %v4803_v45 }
 0x245   :  { %v1140_v56 = vpop.f32.mrf.mxu0  ;;  %v1183_v57 = vpop.f32.mrf.mxu1 }
 0x246   :  { %1296 = vst [vmem:[#allocation2 + $0xa8] sm:$0x3f] %v1139_v51  ;;  %1298 = vst [vmem:[#allocation2 + $0x10] sm:$0x3f] %v1182_v52  ;;  %v1141_v58 = vadd.f32 %v1140_v56, %v4805_v46  ;;  %v1184_v59 = vadd.f32 %v1183_v57, %v4807_v47 }
 0x248   :  { %1297 = vst [vmem:[#allocation2 + $0xd0] sm:$0x3f] %v1141_v58  ;;  %1299 = vst [vmem:[#allocation2 + $0x28] sm:$0x3f] %v1184_v59 }
 0x25f   :  { %v1220_v60 = vpop.f32.mrf.mxu0  ;;  %v1263_v61 = vpop.f32.mrf.mxu1 }
 0x260   :  { %v1221_v62 = vadd.f32 %v1220_v60, %v4809_v49  ;;  %v1264_v1 = vadd.f32 %v1263_v61, %v4811_v53 }
 0x261   :  { %v1222_v2 = vpop.f32.mrf.mxu0  ;;  %v1265_v42 = vpop.f32.mrf.mxu1 }
 0x262   :  { %1284 = vst [vmem:[#allocation2 + $0x60] sm:$0xff] %v1221_v62  ;;  %1286 = vst [vmem:[#allocation2 + $0x8] sm:$0xff] %v1264_v1  ;;  %v1223_v45 = vadd.f32 %v1222_v2, %v4813_v54  ;;  %v1266_v5 = vadd.f32 %v1265_v42, %v4815_v55  ;;  %v1436_v2 = vld [vmem:[#allocation2 + $0x58] sm:$0x3f] }
 0x263   :  { %v1224_v6 = vpop.f32.mrf.mxu0  ;;  %v1267_v46 = vpop.f32.mrf.mxu1 }
 0x264   :  { %1285 = vst [vmem:[#allocation2 + $0xf0] sm:$0xff] %v1223_v45  ;;  %1287 = vst [vmem:[#allocation2 + $0x78] sm:$0xff] %v1266_v5  ;;  %v1225_v47 = vadd.f32 %v1224_v6, %v4809_v49  ;;  %v1268_v7 = vadd.f32 %v1267_v46, %v4811_v53 }
 0x265   :  { %v1226_v8 = vpop.f32.mrf.mxu0  ;;  %v1269_v9 = vpop.f32.mrf.mxu1 }
 0x266   :  { %1300 = vst [vmem:[#allocation2 + $0xa0] sm:$0x3f] %v1225_v47  ;;  %1302 = vst [vmem:[#allocation2 + $0x20] sm:$0x3f] %v1268_v7  ;;  %v1227_v10 = vadd.f32 %v1226_v8, %v4813_v54  ;;  %v1270_v11 = vadd.f32 %v1269_v9, %v4815_v55 }
 0x267   :  { %v1360_v12 = vpop.f32.mrf.mxu0 }
 0x268   :  { %1301 = vst [vmem:[#allocation2 + $0xf8] sm:$0x3f] %v1227_v10  ;;  %1303 = vst [vmem:[#allocation2 + $0x98] sm:$0x3f] %v1270_v11  ;;  %v1367_v13 = vadd.f32 %v1360_v12, %v4820_v63 }
 0x269   :  { %v3924_v14 = vpop.f32.mrf.mxu0 }
 0x26a   :  { %v3646_v17 = vmul.f32 -1.442695, %v1367_v13 }
 0x26b   :  { %v1363_v19 = vpop.f32.mrf.mxu0 }
 0x26c   :  { %4096 = vpow2.f32 %v3646_v17  ;;  %v1368_v49 = vadd.f32 %v1363_v19, %v1309_v18 }
 0x26d   :  { %v3925_v53 = vpop.f32.mrf.mxu0 }
 0x26e   :  { %v3647_v20 = vmul.f32 -1.442695, %v1368_v49 }
 0x270   :  { %4098 = vpow2.f32 %v3647_v20 }
 0x279   :  { %v4097_v24 = vpop.eup %4096 }
 0x27a   :  { %v1375_v25 = vadd.f32 1.0, %v4097_v24 }
 0x27c   :  { %4100 = vrcp.f32 %v1375_v25 }
 0x27d   :  { %v4099_v54 = vpop.eup %4098 }
 0x27e   :  { %v1376_v28 = vadd.f32 1.0, %v4099_v54 }
 0x280   :  { %4102 = vrcp.f32 %v1376_v28 }
 0x289   :  { %v4101_v55 = vpop.eup %4100 }
 0x28a   :  { %v1381_v29 = vmul.f32 2.0, %v4101_v55  ;;  %v1385_v38 = vmul.f32 0.0, %v4101_v55 }
 0x28c   :  { %v3648_v30 = vadd.f32 -1.0, %v1381_v29 }
 0x28d   :  { %v4103_v31 = vpop.eup %4102 }
 0x28e   :  { %1389 = vrot.lane.b32.xlu0 %v3648_v30, %s4293_s4  ;;  %v1382_v63 = vmul.f32 2.0, %v4103_v31  ;;  %v1386_v43 = vmul.f32 0.0, %v4103_v31 }
 0x290   :  { %v3649_v32 = vadd.f32 -1.0, %v1382_v63 }
 0x292   :  { %1391 = vrot.lane.b32.xlu1 %v3649_v32, %s4293_s4 }
 0x300   :  { %v1390_v33 = vpop.permute.xlu0 %1389 }
 0x301   :  { %v1395_v34 = vmul.f32 %v4101_v55, %v1390_v33 }
 0x303   :  { %1399 = vrot.lane.b32.xlu1 %v1395_v34, %s4294_s18 }
 0x304   :  { %v1392_v35 = vpop.permute.xlu1 %1391 }
 0x305   :  { %v1396_v36 = vmul.f32 %v4103_v31, %v1392_v35 }
 0x307   :  { %1401 = vrot.lane.b32.xlu1 %v1396_v36, %s4294_s18 }
 0x375   :  { %v1400_v39 = vpop.permute.xlu1 %1399 }
 0x376   :  { %v1405_v40 = vadd.f32 %v1400_v39, %v1385_v38  ;;  %v1552_v39 = vld [vmem:[#allocation2 + $0x40] sm:$0x3f] }
 0x378   :  { %4104 = vtanh.f32 %v1405_v40 }
 0x379   :  { %v1402_v22 = vpop.permute.xlu1 %1401 }
 0x37a   :  { %v1406_v44 = vadd.f32 %v1402_v22, %v1386_v43 }
 0x37c   :  { %4106 = vtanh.f32 %v1406_v44 }
 0x385   :  { %v4105_v48 = vpop.eup %4104 }
 0x386   :  { %1411 = vrot.lane.b32.xlu0 %v4105_v48, %s4293_s4 }
 0x389   :  { %v4107_v50 = vpop.eup %4106 }
 0x38a   :  { %1413 = vrot.lane.b32.xlu1 %v4107_v50, %s4293_s4 }
 0x3f8   :  { %v1412_v51 = vpop.permute.xlu0 %1411 }
 0x3f9   :  { %v4861_v56 = vmul.f32 %v4101_v55, %v1412_v51 }
 0x3fc   :  { %v1414_v52 = vpop.permute.xlu1 %1413 }
 0x3fd   :  { %v4863_v57 = vmul.f32 %v4103_v31, %v1414_v52 }
 0x3ff   :  { %v1419_v58 = vpack.c.bf16 %v4863_v57, %v4861_v56 }
 0x401   :  { %1437 = vrot.lane.b32.xlu0 %v1419_v58, %s4294_s18 }
 0x473   :  { %v1438_v59 = vpop.permute.xlu0 %1437 }
 0x474   :  { %3931 = vmatmul.mubr.msk.bf16.vlgmr.msra.gmra.mxu1 %vm1322_vm2, %v1438_v59 }
 0x475   :  { %3943 = vmatpush3.bf16.msra.mxu1 %v4768_v37  ;;  %3946 = vmatprep.mubr.msk.bf16.mxu1 %vm4292_vm1, %v4291_v16 }
 0x476   :  { %3944 = vmatprep.subr.bf16.mxu1 %v4291_v16 }
 0x479   :  { %3945 = vmatpush3.bf16.msra.mxu1 %v4778_v15 }
 0x47a   :  { %3958 = vmatprep.subr.bf16.mxu1 %v4291_v16 }
 0x534   :  { %v1476_v60 = vpop.f32.mrf.mxu1 }
 0x535   :  { %v1483_v61 = vadd.f32 %v1476_v60, %v4824_v3 }
 0x536   :  { %v3932_v62 = vpop.f32.mrf.mxu1 }
 0x537   :  { %v3653_v1 = vmul.f32 -1.442695, %v1483_v61 }
 0x538   :  { %v1479_v42 = vpop.f32.mrf.mxu1 }
 0x539   :  { %4108 = vpow2.f32 %v3653_v1  ;;  %v1484_v45 = vadd.f32 %v1479_v42, %v1436_v2 }
 0x53a   :  { %v3933_v5 = vpop.f32.mrf.mxu1 }
 0x53b   :  { %v3654_v6 = vmul.f32 -1.442695, %v1484_v45 }
 0x53d   :  { %4110 = vpow2.f32 %v3654_v6 }
 0x546   :  { %v4109_v46 = vpop.eup %4108 }
 0x547   :  { %v1491_v47 = vadd.f32 1.0, %v4109_v46 }
 0x549   :  { %4112 = vrcp.f32 %v1491_v47 }
 0x54a   :  { %v4111_v7 = vpop.eup %4110 }
 0x54b   :  { %v1492_v8 = vadd.f32 1.0, %v4111_v7 }
 0x54d   :  { %4114 = vrcp.f32 %v1492_v8 }
 0x556   :  { %v4113_v9 = vpop.eup %4112 }
 0x557   :  { %v1497_v10 = vmul.f32 2.0, %v4113_v9  ;;  %v1501_v49 = vmul.f32 %v4113_v9, %v1405_v40 }
 0x559   :  { %v3655_v11 = vadd.f32 -1.0, %v1497_v10 }
 0x55a   :  { %v4115_v12 = vpop.eup %4114 }
 0x55b   :  { %1505 = vrot.lane.b32.xlu1 %v3655_v11, %s4293_s4  ;;  %v1498_v3 = vmul.f32 2.0, %v4115_v12  ;;  %v1502_v24 = vmul.f32 %v4115_v12, %v1406_v44 }
 0x55d   :  { %v3656_v13 = vadd.f32 -1.0, %v1498_v3 }
 0x55f   :  { %1507 = vrot.lane.b32.xlu0 %v3656_v13, %s4293_s4 }
 0x5cd   :  { %v1506_v14 = vpop.permute.xlu1 %1505 }
 0x5ce   :  { %v1511_v17 = vmul.f32 %v4113_v9, %v1506_v14 }
 0x5d0   :  { %1515 = vrot.lane.b32.xlu1 %v1511_v17, %s4294_s18 }
 0x5d1   :  { %v1508_v18 = vpop.permute.xlu0 %1507 }
 0x5d2   :  { %v1512_v19 = vmul.f32 %v4115_v12, %v1508_v18 }
 0x5d4   :  { %1517 = vrot.lane.b32.xlu0 %v1512_v19, %s4294_s18 }
 0x642   :  { %v1516_v53 = vpop.permute.xlu1 %1515 }
 0x643   :  { %v1521_v20 = vadd.f32 %v1516_v53, %v1501_v49 }
 0x645   :  { %4116 = vtanh.f32 %v1521_v20 }
 0x646   :  { %v1518_v25 = vpop.permute.xlu0 %1517 }
 0x647   :  { %v1522_v54 = vadd.f32 %v1518_v25, %v1502_v24 }
 0x649   :  { %4118 = vtanh.f32 %v1522_v54 }
 0x652   :  { %v4117_v28 = vpop.eup %4116 }
 0x653   :  { %1527 = vrot.lane.b32.xlu1 %v4117_v28, %s4293_s4 }
 0x656   :  { %v4119_v55 = vpop.eup %4118 }
 0x657   :  { %1529 = vrot.lane.b32.xlu0 %v4119_v55, %s4293_s4 }
 0x6c5   :  { %v1528_v29 = vpop.permute.xlu1 %1527 }
 0x6c6   :  { %v4882_v31 = vmul.f32 %v4113_v9, %v1528_v29 }
 0x6c9   :  { %v1530_v30 = vpop.permute.xlu0 %1529 }
 0x6ca   :  { %v4884_v63 = vmul.f32 %v4115_v12, %v1530_v30 }
 0x6cc   :  { %v1535_v32 = vpack.c.bf16 %v4884_v63, %v4882_v31 }
 0x6ce   :  { %1553 = vrot.lane.b32.xlu1 %v1535_v32, %s4294_s18 }
 0x740   :  { %v1554_v33 = vpop.permute.xlu1 %1553 }
 0x741   :  { %3939 = vmatmul.mubr.msk.bf16.vlgmr.msra.gmra.mxu0 %vm1322_vm2, %v1554_v33 }
 0x742   :  { %3951 = vmatpush3.bf16.msra.mxu0 %v4768_v37  ;;  %3954 = vmatprep.mubr.msk.bf16.mxu0 %vm4292_vm1, %v4291_v16 }
 0x743   :  { %3952 = vmatprep.subr.bf16.mxu0 %v4291_v16 }
 0x746   :  { %3953 = vmatpush3.bf16.msra.mxu0 %v4778_v15 }
 0x747   :  { %3966 = vmatprep.subr.bf16.mxu0 %v4291_v16 }
 0x801   :  { %v1592_v34 = vpop.f32.mrf.mxu0 }
 0x802   :  { %v1599_v35 = vadd.f32 %v1592_v34, %v4822_v0 }
 0x803   :  { %v3940_v36 = vpop.f32.mrf.mxu0 }
 0x804   :  { %v3660_v38 = vmul.f32 -1.442695, %v1599_v35 }
 0x805   :  { %v1595_v40 = vpop.f32.mrf.mxu0 }
 0x806   :  { %4120 = vpow2.f32 %v3660_v38  ;;  %v1600_v43 = vadd.f32 %v1595_v40, %v1552_v39 }
 0x807   :  { %v3941_v22 = vpop.f32.mrf.mxu0 }
 0x808   :  { %v3661_v44 = vmul.f32 -1.442695, %v1600_v43 }
 0x80a   :  { %4122 = vpow2.f32 %v3661_v44 }
 0x813   :  { %v4121_v48 = vpop.eup %4120 }
 0x814   :  { %v1607_v50 = vadd.f32 1.0, %v4121_v48 }
 0x816   :  { %4124 = vrcp.f32 %v1607_v50 }
 0x817   :  { %v4123_v51 = vpop.eup %4122 }
 0x818   :  { %v1608_v52 = vadd.f32 1.0, %v4123_v51 }
 0x81a   :  { %4126 = vrcp.f32 %v1608_v52 }
 0x823   :  { %v4125_v58 = vpop.eup %4124 }
 0x824   :  { %v1613_v59 = vmul.f32 2.0, %v4125_v58  ;;  %v1617_v5 = vmul.f32 %v4125_v58, %v1521_v20  ;;  %v1668_v20 = vld [vmem:[#allocation2 + $0xc8] sm:$0x3f] }
 0x826   :  { %v3662_v60 = vadd.f32 -1.0, %v1613_v59 }
 0x827   :  { %v4127_v61 = vpop.eup %4126 }
 0x828   :  { %1621 = vrot.lane.b32.xlu0 %v3662_v60, %s4293_s4  ;;  %v1614_v0 = vmul.f32 2.0, %v4127_v61  ;;  %v1618_v47 = vmul.f32 %v4127_v61, %v1522_v54 }
 0x82a   :  { %v3663_v62 = vadd.f32 -1.0, %v1614_v0 }
 0x82c   :  { %1623 = vrot.lane.b32.xlu1 %v3663_v62, %s4293_s4 }
 0x89a   :  { %v1622_v1 = vpop.permute.xlu0 %1621 }
 0x89b   :  { %v1627_v2 = vmul.f32 %v4125_v58, %v1622_v1 }
 0x89d   :  { %1631 = vrot.lane.b32.xlu0 %v1627_v2, %s4294_s18 }
 0x89e   :  { %v1624_v42 = vpop.permute.xlu1 %1623 }
 0x89f   :  { %v1628_v45 = vmul.f32 %v4127_v61, %v1624_v42 }
 0x8a1   :  { %1633 = vrot.lane.b32.xlu1 %v1628_v45, %s4294_s18 }
 0x90f   :  { %v1632_v6 = vpop.permute.xlu0 %1631 }
 0x910   :  { %v1637_v46 = vadd.f32 %v1632_v6, %v1617_v5 }
 0x912   :  { %4128 = vtanh.f32 %v1637_v46 }
 0x913   :  { %v1634_v7 = vpop.permute.xlu1 %1633 }
 0x914   :  { %v1638_v8 = vadd.f32 %v1634_v7, %v1618_v47  ;;  %v1780_v47 = vld [vmem:[#allocation2 + $0xe0] sm:$0x3f] }
 0x916   :  { %4130 = vtanh.f32 %v1638_v8 }
 0x91f   :  { %v4129_v9 = vpop.eup %4128 }
 0x920   :  { %1643 = vrot.lane.b32.xlu0 %v4129_v9, %s4293_s4 }
 0x923   :  { %v4131_v10 = vpop.eup %4130 }
 0x924   :  { %1645 = vrot.lane.b32.xlu1 %v4131_v10, %s4293_s4 }
 0x992   :  { %v1644_v11 = vpop.permute.xlu0 %1643 }
 0x993   :  { %v4903_v3 = vmul.f32 %v4125_v58, %v1644_v11 }
 0x996   :  { %v1646_v12 = vpop.permute.xlu1 %1645 }
 0x997   :  { %v4905_v13 = vmul.f32 %v4127_v61, %v1646_v12 }
 0x999   :  { %v1651_v14 = vpack.c.bf16 %v4905_v13, %v4903_v3 }
 0x99b   :  { %1669 = vrot.lane.b32.xlu0 %v1651_v14, %s4294_s18 }
 0xa0d   :  { %v1670_v17 = vpop.permute.xlu0 %1669 }
 0xa0e   :  { %3947 = vmatmul.mubr.msk.bf16.vlgmr.msra.gmra.mxu1 %vm1322_vm2, %v1670_v17 }
 0xa0f   :  { %3959 = vmatpush3.bf16.msra.mxu1 %v4768_v37  ;;  %3962 = vmatprep.mubr.msk.bf16.mxu1 %vm4292_vm1, %v4291_v16 }
 0xa10   :  { %3960 = vmatprep.subr.bf16.mxu1 %v4291_v16 }
 0xa13   :  { %3961 = vmatpush3.bf16.msra.mxu1 %v4778_v15 }
 0xa14   :  { %3974 = vmatprep.subr.bf16.mxu1 %v4291_v16 }
 0xace   :  { %v1708_v18 = vpop.f32.mrf.mxu1 }
 0xacf   :  { %v1715_v19 = vadd.f32 %v1708_v18, %v4826_v4 }
 0xad0   :  { %v3948_v49 = vpop.f32.mrf.mxu1 }
 0xad1   :  { %v3667_v53 = vmul.f32 -1.442695, %v1715_v19 }
 0xad2   :  { %v1711_v24 = vpop.f32.mrf.mxu1 }
 0xad3   :  { %4132 = vpow2.f32 %v3667_v53  ;;  %v1716_v25 = vadd.f32 %v1711_v24, %v1668_v20 }
 0xad4   :  { %v3949_v54 = vpop.f32.mrf.mxu1 }
 0xad5   :  { %v3668_v28 = vmul.f32 -1.442695, %v1716_v25 }
 0xad7   :  { %4134 = vpow2.f32 %v3668_v28 }
 0xae0   :  { %v4133_v55 = vpop.eup %4132 }
 0xae1   :  { %v1723_v29 = vadd.f32 1.0, %v4133_v55 }
 0xae3   :  { %4136 = vrcp.f32 %v1723_v29 }
 0xae4   :  { %v4135_v30 = vpop.eup %4134 }
 0xae5   :  { %v1724_v32 = vadd.f32 1.0, %v4135_v30 }
 0xae7   :  { %4138 = vrcp.f32 %v1724_v32 }
 0xaf0   :  { %v4137_v33 = vpop.eup %4136 }
 0xaf1   :  { %v1729_v34 = vmul.f32 2.0, %v4137_v33  ;;  %v1733_v44 = vmul.f32 %v4137_v33, %v1637_v46 }
 0xaf3   :  { %v3669_v35 = vadd.f32 -1.0, %v1729_v34 }
 0xaf4   :  { %v4139_v36 = vpop.eup %4138 }
 0xaf5   :  { %1737 = vrot.lane.b32.xlu1 %v3669_v35, %s4293_s4  ;;  %v1730_v4 = vmul.f32 2.0, %v4139_v36  ;;  %v1734_v51 = vmul.f32 %v4139_v36, %v1638_v8 }
 0xaf7   :  { %v3670_v38 = vadd.f32 -1.0, %v1730_v4 }
 0xaf9   :  { %1739 = vrot.lane.b32.xlu0 %v3670_v38, %s4293_s4 }
 0xb67   :  { %v1738_v39 = vpop.permute.xlu1 %1737 }
 0xb68   :  { %v1743_v40 = vmul.f32 %v4137_v33, %v1738_v39 }
 0xb6a   :  { %1747 = vrot.lane.b32.xlu1 %v1743_v40, %s4294_s18 }
 0xb6b   :  { %v1740_v43 = vpop.permute.xlu0 %1739 }
 0xb6c   :  { %v1744_v22 = vmul.f32 %v4139_v36, %v1740_v43 }
 0xb6e   :  { %1749 = vrot.lane.b32.xlu0 %v1744_v22, %s4294_s18 }
 0xbdc   :  { %v1748_v48 = vpop.permute.xlu1 %1747 }
 0xbdd   :  { %v1753_v50 = vadd.f32 %v1748_v48, %v1733_v44 }
 0xbdf   :  { %4140 = vtanh.f32 %v1753_v50 }
 0xbe0   :  { %v1750_v52 = vpop.permute.xlu0 %1749 }
 0xbe1   :  { %v1754_v58 = vadd.f32 %v1750_v52, %v1734_v51  ;;  %v1894_v52 = vld [vmem:[#allocation2 + $0x90] sm:$0x3f] }
 0xbe3   :  { %4142 = vtanh.f32 %v1754_v58 }
 0xbec   :  { %v4141_v59 = vpop.eup %4140 }
 0xbed   :  { %1759 = vrot.lane.b32.xlu1 %v4141_v59, %s4293_s4 }
 0xbf0   :  { %v4143_v60 = vpop.eup %4142 }
 0xbf1   :  { %1761 = vrot.lane.b32.xlu0 %v4143_v60, %s4293_s4 }
 0xc5f   :  { %v1760_v61 = vpop.permute.xlu1 %1759 }
 0xc60   :  { %v4924_v62 = vmul.f32 %v4137_v33, %v1760_v61 }
 0xc63   :  { %v1762_v0 = vpop.permute.xlu0 %1761 }
 0xc64   :  { %v4926_v1 = vmul.f32 %v4139_v36, %v1762_v0 }
 0xc66   :  { %v1767_v2 = vpack.c.bf16 %v4926_v1, %v4924_v62 }
 0xc68   :  { %1781 = vrot.lane.b32.xlu1 %v1767_v2, %s4294_s18 }
 0xcda   :  { %v1782_v42 = vpop.permute.xlu1 %1781 }
 0xcdb   :  { %3955 = vmatmul.mubr.msk.bf16.vlgmr.msra.gmra.mxu0 %vm1322_vm2, %v1782_v42 }
 0xcdc   :  { %3967 = vmatpush3.bf16.msra.mxu0 %v4768_v37  ;;  %3970 = vmatprep.mubr.msk.bf16.mxu0 %vm4292_vm1, %v4291_v16 }
 0xcdd   :  { %3968 = vmatprep.subr.bf16.mxu0 %v4291_v16 }
 0xce0   :  { %3969 = vmatpush3.bf16.msra.mxu0 %v4778_v15 }
 0xce1   :  { %3982 = vmatprep.subr.bf16.mxu0 %v4291_v16 }
 0xd9b   :  { %v1820_v45 = vpop.f32.mrf.mxu0 }
 0xd9c   :  { %v1827_v5 = vadd.f32 %v1820_v45, %v4828_v21 }
 0xd9d   :  { %v3956_v6 = vpop.f32.mrf.mxu0 }
 0xd9e   :  { %v3674_v46 = vmul.f32 -1.442695, %v1827_v5 }
 0xd9f   :  { %v1823_v7 = vpop.f32.mrf.mxu0 }
 0xda0   :  { %4144 = vpow2.f32 %v3674_v46  ;;  %v1828_v8 = vadd.f32 %v1823_v7, %v1780_v47 }
 0xda1   :  { %v3957_v9 = vpop.f32.mrf.mxu0 }
 0xda2   :  { %v3675_v10 = vmul.f32 -1.442695, %v1828_v8 }
 0xda4   :  { %4146 = vpow2.f32 %v3675_v10 }
 0xdad   :  { %v4145_v11 = vpop.eup %4144 }
 0xdae   :  { %v1835_v12 = vadd.f32 1.0, %v4145_v11 }
 0xdb0   :  { %4148 = vrcp.f32 %v1835_v12 }
 0xdb1   :  { %v4147_v14 = vpop.eup %4146 }
 0xdb2   :  { %v1836_v17 = vadd.f32 1.0, %v4147_v14 }
 0xdb4   :  { %4150 = vrcp.f32 %v1836_v17 }
 0xdbd   :  { %v4149_v18 = vpop.eup %4148 }
 0xdbe   :  { %v1841_v19 = vmul.f32 2.0, %v4149_v18  ;;  %v1845_v55 = vmul.f32 %v4149_v18, %v1753_v50 }
 0xdc0   :  { %v3676_v49 = vadd.f32 -1.0, %v1841_v19 }
 0xdc1   :  { %v4151_v53 = vpop.eup %4150 }
 0xdc2   :  { %1849 = vrot.lane.b32.xlu0 %v3676_v49, %s4293_s4  ;;  %v1842_v21 = vmul.f32 2.0, %v4151_v53  ;;  %v1846_v32 = vmul.f32 %v4151_v53, %v1754_v58 }
 0xdc4   :  { %v3677_v20 = vadd.f32 -1.0, %v1842_v21 }
 0xdc6   :  { %1851 = vrot.lane.b32.xlu1 %v3677_v20, %s4293_s4 }
 0xe34   :  { %v1850_v24 = vpop.permute.xlu0 %1849 }
 0xe35   :  { %v1855_v25 = vmul.f32 %v4149_v18, %v1850_v24 }
 0xe37   :  { %1859 = vrot.lane.b32.xlu0 %v1855_v25, %s4294_s18 }
 0xe38   :  { %v1852_v54 = vpop.permute.xlu1 %1851 }
 0xe39   :  { %v1856_v28 = vmul.f32 %v4151_v53, %v1852_v54 }
 0xe3b   :  { %1861 = vrot.lane.b32.xlu1 %v1856_v28, %s4294_s18 }
 0xea9   :  { %v1860_v29 = vpop.permute.xlu0 %1859 }
 0xeaa   :  { %v1865_v30 = vadd.f32 %v1860_v29, %v1845_v55 }
 0xeac   :  { %4152 = vtanh.f32 %v1865_v30 }
 0xead   :  { %v1862_v33 = vpop.permute.xlu1 %1861 }
 0xeae   :  { %v1866_v34 = vadd.f32 %v1862_v33, %v1846_v32 }
 0xeb0   :  { %4154 = vtanh.f32 %v1866_v34 }
 0xeb9   :  { %v4153_v35 = vpop.eup %4152 }
 0xeba   :  { %1871 = vrot.lane.b32.xlu0 %v4153_v35, %s4293_s4 }
 0xebd   :  { %v4155_v36 = vpop.eup %4154 }
 0xebe   :  { %1873 = vrot.lane.b32.xlu1 %v4155_v36, %s4293_s4 }
 0xf2c   :  { %v1872_v4 = vpop.permute.xlu0 %1871 }
 0xf2d   :  { %v4945_v39 = vmul.f32 %v4149_v18, %v1872_v4 }
 0xf30   :  { %v1874_v38 = vpop.permute.xlu1 %1873 }
 0xf31   :  { %v4947_v40 = vmul.f32 %v4151_v53, %v1874_v38 }
 0xf33   :  { %v1879_v43 = vpack.c.bf16 %v4947_v40, %v4945_v39 }
 0xf35   :  { %1895 = vrot.lane.b32.xlu0 %v1879_v43, %s4294_s18 }
 0xfa7   :  { %v1896_v22 = vpop.permute.xlu0 %1895 }
 0xfa8   :  { %3963 = vmatmul.mubr.msk.bf16.vlgmr.msra.gmra.mxu1 %vm1322_vm2, %v1896_v22 }
 0xfa9   :  { %3975 = vmatpush3.bf16.msra.mxu1 %v4768_v37  ;;  %3978 = vmatprep.mubr.msk.bf16.mxu1 %vm4292_vm1, %v4291_v16 }
 0xfaa   :  { %3976 = vmatprep.subr.bf16.mxu1 %v4291_v16 }
 0xfad   :  { %3977 = vmatpush3.bf16.msra.mxu1 %v4778_v15 }
 0xfae   :  { %3990 = vmatprep.subr.bf16.mxu1 %v4291_v16 }
0x1068   :  { %v1934_v44 = vpop.f32.mrf.mxu1 }
0x1069   :  { %v1941_v48 = vadd.f32 %v1934_v44, %v4832_v26 }
0x106a   :  { %v3964_v50 = vpop.f32.mrf.mxu1 }
0x106b   :  { %v3681_v51 = vmul.f32 -1.442695, %v1941_v48 }
0x106c   :  { %v1937_v58 = vpop.f32.mrf.mxu1 }
0x106d   :  { %4156 = vpow2.f32 %v3681_v51  ;;  %v1942_v59 = vadd.f32 %v1937_v58, %v1894_v52 }
0x106e   :  { %v3965_v60 = vpop.f32.mrf.mxu1 }
0x106f   :  { %v3682_v61 = vmul.f32 -1.442695, %v1942_v59 }
0x1071   :  { %4158 = vpow2.f32 %v3682_v61 }
0x107a   :  { %v4157_v0 = vpop.eup %4156 }
0x107b   :  { %v1949_v2 = vadd.f32 1.0, %v4157_v0 }
0x107d   :  { %4160 = vrcp.f32 %v1949_v2 }
0x107e   :  { %v4159_v42 = vpop.eup %4158 }
0x107f   :  { %v1950_v45 = vadd.f32 1.0, %v4159_v42 }
0x1081   :  { %4162 = vrcp.f32 %v1950_v45 }
0x108a   :  { %v4161_v5 = vpop.eup %4160 }
0x108b   :  { %v1955_v6 = vmul.f32 2.0, %v4161_v5  ;;  %v1959_v12 = vmul.f32 %v4161_v5, %v1865_v30 }
0x108d   :  { %v3683_v46 = vadd.f32 -1.0, %v1955_v6 }
0x108e   :  { %v4163_v47 = vpop.eup %4162 }
0x108f   :  { %1963 = vrot.lane.b32.xlu1 %v3683_v46, %s4293_s4  ;;  %v1956_v26 = vmul.f32 2.0, %v4163_v47  ;;  %v1960_v18 = vmul.f32 %v4163_v47, %v1866_v34  ;;  %v2008_v34 = vld [vmem:[#allocation2 + $0x70] sm:$0x3f] }
0x1091   :  { %v3684_v7 = vadd.f32 -1.0, %v1956_v26 }
0x1093   :  { %1965 = vrot.lane.b32.xlu0 %v3684_v7, %s4293_s4 }
0x1101   :  { %v1964_v8 = vpop.permute.xlu1 %1963 }
0x1102   :  { %v1969_v9 = vmul.f32 %v4161_v5, %v1964_v8 }
0x1104   :  { %1973 = vrot.lane.b32.xlu1 %v1969_v9, %s4294_s18 }
0x1105   :  { %v1966_v10 = vpop.permute.xlu0 %1965 }
0x1106   :  { %v1970_v11 = vmul.f32 %v4163_v47, %v1966_v10 }
0x1108   :  { %1975 = vrot.lane.b32.xlu0 %v1970_v11, %s4294_s18 }
0x1176   :  { %v1974_v14 = vpop.permute.xlu1 %1973 }
0x1177   :  { %v1979_v17 = vadd.f32 %v1974_v14, %v1959_v12  ;;  %v4998_v12 = vld [vmem:[%s5414_s5 + $0x8] sm:$0xff]   ;;  %v5007_v14 = vld [vmem:[%s5414_s5] sm:$0xff]  }
0x1179   :  { %4164 = vtanh.f32 %v1979_v17 }
0x117a   :  { %v1976_v19 = vpop.permute.xlu0 %1975 }
0x117b   :  { %v1980_v49 = vadd.f32 %v1976_v19, %v1960_v18 }
0x117d   :  { %4166 = vtanh.f32 %v1980_v49 }
0x1186   :  { %v4165_v53 = vpop.eup %4164 }
0x1187   :  { %1985 = vrot.lane.b32.xlu1 %v4165_v53, %s4293_s4  ;;  %v2122_v53 = vld [vmem:[#allocation2 + $0xc0] sm:$0x3f] }
0x118a   :  { %v4167_v21 = vpop.eup %4166 }
0x118b   :  { %1987 = vrot.lane.b32.xlu0 %v4167_v21, %s4293_s4 }
0x11f9   :  { %v1986_v20 = vpop.permute.xlu1 %1985 }
0x11fa   :  { %v4966_v25 = vmul.f32 %v4161_v5, %v1986_v20 }
0x11fd   :  { %v1988_v24 = vpop.permute.xlu0 %1987 }
0x11fe   :  { %v4968_v54 = vmul.f32 %v4163_v47, %v1988_v24 }
0x1200   :  { %v1993_v28 = vpack.c.bf16 %v4968_v54, %v4966_v25 }
0x1202   :  { %2009 = vrot.lane.b32.xlu1 %v1993_v28, %s4294_s18 }
0x1274   :  { %v2010_v55 = vpop.permute.xlu1 %2009 }
0x1275   :  { %3971 = vmatmul.mubr.msk.bf16.vlgmr.msra.gmra.mxu0 %vm1322_vm2, %v2010_v55 }
0x1276   :  { %3983 = vmatpush3.bf16.msra.mxu0 %v4768_v37  ;;  %3986 = vmatprep.mubr.msk.bf16.mxu0 %vm4292_vm1, %v4291_v16 }
0x1277   :  { %3984 = vmatprep.subr.bf16.mxu0 %v4291_v16 }
0x127a   :  { %3985 = vmatpush3.bf16.msra.mxu0 %v4778_v15 }
0x127b   :  { %3998 = vmatprep.subr.bf16.mxu0 %v4291_v16 }
0x1335   :  { %v2048_v29 = vpop.f32.mrf.mxu0 }
0x1336   :  { %v2055_v30 = vadd.f32 %v2048_v29, %v4830_v23 }
0x1337   :  { %v3972_v32 = vpop.f32.mrf.mxu0 }
0x1338   :  { %v3688_v33 = vmul.f32 -1.442695, %v2055_v30 }
0x1339   :  { %v2051_v35 = vpop.f32.mrf.mxu0 }
0x133a   :  { %4168 = vpow2.f32 %v3688_v33  ;;  %v2056_v36 = vadd.f32 %v2051_v35, %v2008_v34 }
0x133b   :  { %v3973_v4 = vpop.f32.mrf.mxu0 }
0x133c   :  { %v3689_v37 = vmul.f32 -1.442695, %v2056_v36 }
0x133e   :  { %4170 = vpow2.f32 %v3689_v37 }
0x1347   :  { %v4169_v38 = vpop.eup %4168 }
0x1348   :  { %v2063_v43 = vadd.f32 1.0, %v4169_v38 }
0x134a   :  { %4172 = vrcp.f32 %v2063_v43 }
0x134b   :  { %v4171_v22 = vpop.eup %4170 }
0x134c   :  { %v2064_v44 = vadd.f32 1.0, %v4171_v22 }
0x134e   :  { %4174 = vrcp.f32 %v2064_v44 }
0x1357   :  { %v4173_v15 = vpop.eup %4172 }
0x1358   :  { %v2069_v48 = vmul.f32 2.0, %v4173_v15  ;;  %v2073_v0 = vmul.f32 %v4173_v15, %v1979_v17 }
0x135a   :  { %v3690_v50 = vadd.f32 -1.0, %v2069_v48 }
0x135b   :  { %v4175_v51 = vpop.eup %4174 }
0x135c   :  { %2077 = vrot.lane.b32.xlu0 %v3690_v50, %s4293_s4  ;;  %v2070_v23 = vmul.f32 2.0, %v4175_v51  ;;  %v2074_v45 = vmul.f32 %v4175_v51, %v1980_v49 }
0x135e   :  { %v3691_v52 = vadd.f32 -1.0, %v2070_v23 }
0x1360   :  { %2079 = vrot.lane.b32.xlu1 %v3691_v52, %s4293_s4 }
0x13ce   :  { %v2078_v58 = vpop.permute.xlu0 %2077 }
0x13cf   :  { %v2083_v59 = vmul.f32 %v4173_v15, %v2078_v58 }
0x13d1   :  { %2087 = vrot.lane.b32.xlu0 %v2083_v59, %s4294_s18 }
0x13d2   :  { %v2080_v60 = vpop.permute.xlu1 %2079 }
0x13d3   :  { %v2084_v61 = vmul.f32 %v4175_v51, %v2080_v60 }
0x13d5   :  { %2089 = vrot.lane.b32.xlu1 %v2084_v61, %s4294_s18 }
0x1443   :  { %v2088_v2 = vpop.permute.xlu0 %2087 }
0x1444   :  { %v2093_v42 = vadd.f32 %v2088_v2, %v2073_v0 }
0x1446   :  { %4176 = vtanh.f32 %v2093_v42 }
0x1447   :  { %v2090_v5 = vpop.permute.xlu1 %2089 }
0x1448   :  { %v2094_v6 = vadd.f32 %v2090_v5, %v2074_v45 }
0x144a   :  { %4178 = vtanh.f32 %v2094_v6 }
0x1453   :  { %v4177_v46 = vpop.eup %4176 }
0x1454   :  { %2099 = vrot.lane.b32.xlu0 %v4177_v46, %s4293_s4 }
0x1457   :  { %v4179_v47 = vpop.eup %4178 }
0x1458   :  { %2101 = vrot.lane.b32.xlu1 %v4179_v47, %s4293_s4  ;;  %v2232_v47 = vld [vmem:[#allocation2 + $0xa8] sm:$0x3f] }
0x14c6   :  { %v2100_v26 = vpop.permute.xlu0 %2099 }
0x14c7   :  { %v4987_v8 = vmul.f32 %v4173_v15, %v2100_v26 }
0x14ca   :  { %v2102_v7 = vpop.permute.xlu1 %2101 }
0x14cb   :  { %v4989_v9 = vmul.f32 %v4175_v51, %v2102_v7 }
0x14cd   :  { %v2107_v10 = vpack.c.bf16 %v4989_v9, %v4987_v8 }
0x14cf   :  { %2123 = vrot.lane.b32.xlu0 %v2107_v10, %s4294_s18 }
0x1541   :  { %v2124_v11 = vpop.permute.xlu0 %2123 }
0x1542   :  { %3979 = vmatmul.mubr.msk.bf16.vlgmr.msra.gmra.mxu1 %vm1322_vm2, %v2124_v11 }
0x1543   :  { %3991 = vmatpush3.bf16.msra.mxu1 %v4998_v12  ;;  %3994 = vmatprep.mubr.msk.bf16.mxu1 %vm4292_vm1, %v4291_v16 }
0x1544   :  { %3992 = vmatprep.subr.bf16.mxu1 %v4291_v16 }
0x1547   :  { %3993 = vmatpush3.bf16.msra.mxu1 %v5007_v14 }
0x1548   :  { %4006 = vmatprep.subr.bf16.mxu1 %v4291_v16 }
0x1602   :  { %v2162_v17 = vpop.f32.mrf.mxu1 }
0x1603   :  { %v2169_v18 = vadd.f32 %v2162_v17, %v4834_v27 }
0x1604   :  { %v3980_v19 = vpop.f32.mrf.mxu1 }
0x1605   :  { %v3695_v49 = vmul.f32 -1.442695, %v2169_v18 }
0x1606   :  { %v2165_v21 = vpop.f32.mrf.mxu1 }
0x1607   :  { %4180 = vpow2.f32 %v3695_v49  ;;  %v2170_v20 = vadd.f32 %v2165_v21, %v2122_v53 }
0x1608   :  { %v3981_v24 = vpop.f32.mrf.mxu1 }
0x1609   :  { %v3696_v28 = vmul.f32 -1.442695, %v2170_v20 }
0x160b   :  { %4182 = vpow2.f32 %v3696_v28 }
0x1614   :  { %v4181_v55 = vpop.eup %4180 }
0x1615   :  { %v2177_v29 = vadd.f32 1.0, %v4181_v55 }
0x1617   :  { %4184 = vrcp.f32 %v2177_v29 }
0x1618   :  { %v4183_v30 = vpop.eup %4182 }
0x1619   :  { %v2178_v32 = vadd.f32 1.0, %v4183_v30 }
0x161b   :  { %4186 = vrcp.f32 %v2178_v32 }
0x1624   :  { %v4185_v33 = vpop.eup %4184 }
0x1625   :  { %v2183_v34 = vmul.f32 2.0, %v4185_v33  ;;  %v2187_v44 = vmul.f32 %v4185_v33, %v2093_v42 }
0x1627   :  { %v3697_v35 = vadd.f32 -1.0, %v2183_v34 }
0x1628   :  { %v4187_v36 = vpop.eup %4186 }
0x1629   :  { %2191 = vrot.lane.b32.xlu1 %v3697_v35, %s4293_s4  ;;  %v2184_v27 = vmul.f32 2.0, %v4187_v36  ;;  %v2188_v50 = vmul.f32 %v4187_v36, %v2094_v6 }
0x162b   :  { %v3698_v4 = vadd.f32 -1.0, %v2184_v27 }
0x162d   :  { %2193 = vrot.lane.b32.xlu0 %v3698_v4, %s4293_s4 }
0x169b   :  { %v2192_v37 = vpop.permute.xlu1 %2191 }
0x169c   :  { %v2197_v38 = vmul.f32 %v4185_v33, %v2192_v37 }
0x169e   :  { %2201 = vrot.lane.b32.xlu1 %v2197_v38, %s4294_s18 }
0x169f   :  { %v2194_v43 = vpop.permute.xlu0 %2193 }
0x16a0   :  { %v2198_v22 = vmul.f32 %v4187_v36, %v2194_v43 }
0x16a2   :  { %2203 = vrot.lane.b32.xlu0 %v2198_v22, %s4294_s18 }
0x1710   :  { %v2202_v15 = vpop.permute.xlu1 %2201 }
0x1711   :  { %v2207_v48 = vadd.f32 %v2202_v15, %v2187_v44 }
0x1713   :  { %4188 = vtanh.f32 %v2207_v48 }
0x1714   :  { %v2204_v51 = vpop.permute.xlu0 %2203 }
0x1715   :  { %v2208_v23 = vadd.f32 %v2204_v51, %v2188_v50  ;;  %v2345_v51 = vld [vmem:[#allocation2 + $0x88] sm:$0xff] }
0x1717   :  { %4190 = vtanh.f32 %v2208_v23 }
0x1720   :  { %v4189_v52 = vpop.eup %4188 }
0x1721   :  { %2213 = vrot.lane.b32.xlu1 %v4189_v52, %s4293_s4 }
0x1724   :  { %v4191_v58 = vpop.eup %4190 }
0x1725   :  { %2215 = vrot.lane.b32.xlu0 %v4191_v58, %s4293_s4 }
0x1793   :  { %v2214_v59 = vpop.permute.xlu1 %2213 }
0x1794   :  { %v5018_v61 = vmul.f32 %v4185_v33, %v2214_v59 }
0x1797   :  { %v2216_v60 = vpop.permute.xlu0 %2215 }
0x1798   :  { %v5020_v0 = vmul.f32 %v4187_v36, %v2216_v60  ;;  %v2346_v60 = vld [vmem:[#allocation2 + $0xd0] sm:$0x3f] }
0x179a   :  { %v2221_v2 = vpack.c.bf16 %v5020_v0, %v5018_v61 }
0x179c   :  { %2233 = vrot.lane.b32.xlu1 %v2221_v2, %s4294_s18 }
0x180e   :  { %v2234_v42 = vpop.permute.xlu1 %2233 }
0x180f   :  { %3987 = vmatmul.mubr.msk.bf16.vlgmr.msra.gmra.mxu0 %vm1322_vm2, %v2234_v42 }
0x1810   :  { %3999 = vmatpush3.bf16.msra.mxu0 %v4998_v12  ;;  %4002 = vmatprep.mubr.msk.bf16.mxu0 %vm4292_vm1, %v4291_v16 }
0x1811   :  { %4000 = vmatprep.subr.bf16.mxu0 %v4291_v16 }
0x1814   :  { %4001 = vmatpush3.bf16.msra.mxu0 %v5007_v14 }
0x1815   :  { %4014 = vmatprep.subr.bf16.mxu0 %v4291_v16 }
0x18cf   :  { %v2272_v45 = vpop.f32.mrf.mxu0 }
0x18d0   :  { %v2279_v5 = vadd.f32 %v2272_v45, %v4837_v41 }
0x18d1   :  { %v3988_v6 = vpop.f32.mrf.mxu0 }
0x18d2   :  { %v3702_v46 = vmul.f32 -1.442695, %v2279_v5 }
0x18d3   :  { %v2275_v26 = vpop.f32.mrf.mxu0 }
0x18d4   :  { %4192 = vpow2.f32 %v3702_v46  ;;  %v2280_v7 = vadd.f32 %v2275_v26, %v2232_v47 }
0x18d5   :  { %v3989_v10 = vpop.f32.mrf.mxu0 }
0x18d6   :  { %v3703_v11 = vmul.f32 -1.442695, %v2280_v7 }
0x18d8   :  { %4194 = vpow2.f32 %v3703_v11 }
0x18e1   :  { %v4193_v17 = vpop.eup %4192 }
0x18e2   :  { %v2287_v18 = vadd.f32 1.0, %v4193_v17 }
0x18e4   :  { %4196 = vrcp.f32 %v2287_v18 }
0x18e5   :  { %v4195_v19 = vpop.eup %4194 }
0x18e6   :  { %v2288_v49 = vadd.f32 1.0, %v4195_v19 }
0x18e8   :  { %4198 = vrcp.f32 %v2288_v49 }
0x18f1   :  { %v4197_v53 = vpop.eup %4196 }
0x18f2   :  { %v2293_v21 = vmul.f32 2.0, %v4197_v53  ;;  %v2297_v33 = vmul.f32 %v4197_v53, %v2207_v48 }
0x18f4   :  { %v3704_v20 = vadd.f32 -1.0, %v2293_v21 }
0x18f5   :  { %v4199_v24 = vpop.eup %4198 }
0x18f6   :  { %2301 = vrot.lane.b32.xlu0 %v3704_v20, %s4293_s4  ;;  %v2294_v41 = vmul.f32 2.0, %v4199_v24  ;;  %v2298_v36 = vmul.f32 %v4199_v24, %v2208_v23 }
0x18f8   :  { %v3705_v28 = vadd.f32 -1.0, %v2294_v41 }
0x18fa   :  { %2303 = vrot.lane.b32.xlu1 %v3705_v28, %s4293_s4 }
0x1968   :  { %v2302_v55 = vpop.permute.xlu0 %2301 }
0x1969   :  { %v2307_v29 = vmul.f32 %v4197_v53, %v2302_v55 }
0x196b   :  { %2311 = vrot.lane.b32.xlu0 %v2307_v29, %s4294_s18 }
0x196c   :  { %v2304_v30 = vpop.permute.xlu1 %2303 }
0x196d   :  { %v2308_v32 = vmul.f32 %v4199_v24, %v2304_v30 }
0x196f   :  { %2313 = vrot.lane.b32.xlu1 %v2308_v32, %s4294_s18 }
0x19dd   :  { %v2312_v34 = vpop.permute.xlu0 %2311 }
0x19de   :  { %v2317_v35 = vadd.f32 %v2312_v34, %v2297_v33 }
0x19e0   :  { %4200 = vtanh.f32 %v2317_v35 }
0x19e1   :  { %v2314_v27 = vpop.permute.xlu1 %2313 }
0x19e2   :  { %v2318_v4 = vadd.f32 %v2314_v27, %v2298_v36 }
0x19e4   :  { %4202 = vtanh.f32 %v2318_v4 }
0x19ed   :  { %v4201_v37 = vpop.eup %4200 }
0x19ee   :  { %2323 = vrot.lane.b32.xlu0 %v4201_v37, %s4293_s4 }
0x19f1   :  { %v4203_v38 = vpop.eup %4202 }
0x19f2   :  { %2325 = vrot.lane.b32.xlu1 %v4203_v38, %s4293_s4  ;;  %v2459_v38 = vld [vmem:[#allocation2 + $0xe8] sm:$0xff] }
0x1a60   :  { %v2324_v43 = vpop.permute.xlu0 %2323 }
0x1a61   :  { %v5039_v44 = vmul.f32 %v4197_v53, %v2324_v43 }
0x1a64   :  { %v2326_v22 = vpop.permute.xlu1 %2325 }
0x1a65   :  { %v5041_v15 = vmul.f32 %v4199_v24, %v2326_v22 }
0x1a67   :  { %v2331_v48 = vpack.c.bf16 %v5041_v15, %v5039_v44 }
0x1a69   :  { %2347 = vrot.lane.b32.xlu0 %v2331_v48, %s4294_s18 }
0x1adb   :  { %v2348_v50 = vpop.permute.xlu0 %2347 }
0x1adc   :  { %3995 = vmatmul.mubr.msk.bf16.vlgmr.msra.gmra.mxu1 %vm1322_vm2, %v2348_v50 }
0x1add   :  { %4007 = vmatpush3.bf16.msra.mxu1 %v4998_v12  ;;  %4010 = vmatprep.mubr.msk.bf16.mxu1 %vm4292_vm1, %v4291_v16 }
0x1ade   :  { %4008 = vmatprep.subr.bf16.mxu1 %v4291_v16 }
0x1ae1   :  { %4009 = vmatpush3.bf16.msra.mxu1 %v5007_v14 }
0x1ae2   :  { %4022 = vmatprep.subr.bf16.mxu1 %v4291_v16 }
0x1b9c   :  { %v2386_v23 = vpop.f32.mrf.mxu1 }
0x1b9d   :  { %v2393_v52 = vadd.f32 %v2386_v23, %v2345_v51  ;;  %v2460_v51 = vld [vmem:[#allocation2 + $0x10] sm:$0x3f] }
0x1b9e   :  { %v3996_v58 = vpop.f32.mrf.mxu1 }
0x1b9f   :  { %v3709_v59 = vmul.f32 -1.442695, %v2393_v52 }
0x1ba0   :  { %v2389_v2 = vpop.f32.mrf.mxu1 }
0x1ba1   :  { %4204 = vpow2.f32 %v3709_v59  ;;  %v2394_v42 = vadd.f32 %v2389_v2, %v2346_v60 }
0x1ba2   :  { %v3997_v45 = vpop.f32.mrf.mxu1 }
0x1ba3   :  { %v3710_v5 = vmul.f32 -1.442695, %v2394_v42 }
0x1ba5   :  { %4206 = vpow2.f32 %v3710_v5 }
0x1bae   :  { %v4205_v6 = vpop.eup %4204 }
0x1baf   :  { %v2401_v46 = vadd.f32 1.0, %v4205_v6 }
0x1bb1   :  { %4208 = vrcp.f32 %v2401_v46 }
0x1bb2   :  { %v4207_v47 = vpop.eup %4206 }
0x1bb3   :  { %v2402_v26 = vadd.f32 1.0, %v4207_v47 }
0x1bb5   :  { %4210 = vrcp.f32 %v2402_v26 }
0x1bbe   :  { %v4209_v7 = vpop.eup %4208 }
0x1bbf   :  { %v2407_v10 = vmul.f32 2.0, %v4209_v7  ;;  %v2411_v24 = vmul.f32 %v4209_v7, %v2317_v35 }
0x1bc1   :  { %v3711_v11 = vadd.f32 -1.0, %v2407_v10 }
0x1bc2   :  { %v4211_v17 = vpop.eup %4210 }
0x1bc3   :  { %2415 = vrot.lane.b32.xlu1 %v3711_v11, %s4293_s4  ;;  %v2408_v18 = vmul.f32 2.0, %v4211_v17  ;;  %v2412_v55 = vmul.f32 %v4211_v17, %v2318_v4 }
0x1bc5   :  { %v3712_v19 = vadd.f32 -1.0, %v2408_v18 }
0x1bc7   :  { %2417 = vrot.lane.b32.xlu0 %v3712_v19, %s4293_s4 }
0x1c35   :  { %v2416_v49 = vpop.permute.xlu1 %2415 }
0x1c36   :  { %v2421_v53 = vmul.f32 %v4209_v7, %v2416_v49 }
0x1c38   :  { %2425 = vrot.lane.b32.xlu1 %v2421_v53, %s4294_s18 }
0x1c39   :  { %v2418_v21 = vpop.permute.xlu0 %2417 }
0x1c3a   :  { %v2422_v20 = vmul.f32 %v4211_v17, %v2418_v21 }
0x1c3c   :  { %2427 = vrot.lane.b32.xlu0 %v2422_v20, %s4294_s18 }
0x1caa   :  { %v2426_v41 = vpop.permute.xlu1 %2425 }
0x1cab   :  { %v2431_v28 = vadd.f32 %v2426_v41, %v2411_v24 }
0x1cad   :  { %4212 = vtanh.f32 %v2431_v28 }
0x1cae   :  { %v2428_v29 = vpop.permute.xlu0 %2427 }
0x1caf   :  { %v2432_v30 = vadd.f32 %v2428_v29, %v2412_v55 }
0x1cb1   :  { %4214 = vtanh.f32 %v2432_v30 }
0x1cba   :  { %v4213_v32 = vpop.eup %4212 }
0x1cbb   :  { %2437 = vrot.lane.b32.xlu1 %v4213_v32, %s4293_s4 }
0x1cbe   :  { %v4215_v33 = vpop.eup %4214 }
0x1cbf   :  { %2439 = vrot.lane.b32.xlu0 %v4215_v33, %s4293_s4 }
0x1d2d   :  { %v2438_v34 = vpop.permute.xlu1 %2437 }
0x1d2e   :  { %v5059_v27 = vmul.f32 %v4209_v7, %v2438_v34 }
0x1d31   :  { %v2440_v36 = vpop.permute.xlu0 %2439 }
0x1d32   :  { %v5061_v37 = vmul.f32 %v4211_v17, %v2440_v36  ;;  %v2573_v36 = vld [vmem:[#allocation2 + $0xb8] sm:$0xff] }
0x1d34   :  { %v2445_v35 = vpack.c.bf16 %v5061_v37, %v5059_v27 }
0x1d36   :  { %2461 = vrot.lane.b32.xlu1 %v2445_v35, %s4294_s18 }
0x1da8   :  { %v2462_v4 = vpop.permute.xlu1 %2461 }
0x1da9   :  { %4003 = vmatmul.mubr.msk.bf16.vlgmr.msra.gmra.mxu0 %vm1322_vm2, %v2462_v4 }
0x1daa   :  { %4015 = vmatpush3.bf16.msra.mxu0 %v4998_v12  ;;  %4018 = vmatprep.mubr.msk.bf16.mxu0 %vm4292_vm1, %v4291_v16 }
0x1dab   :  { %4016 = vmatprep.subr.bf16.mxu0 %v4291_v16 }
0x1dae   :  { %4017 = vmatpush3.bf16.msra.mxu0 %v5007_v14 }
0x1daf   :  { %4030 = vmatprep.subr.bf16.mxu0 %v4291_v16 }
0x1e69   :  { %v2500_v43 = vpop.f32.mrf.mxu0 }
0x1e6a   :  { %v2507_v22 = vadd.f32 %v2500_v43, %v2459_v38 }
0x1e6b   :  { %v4004_v48 = vpop.f32.mrf.mxu0 }
0x1e6c   :  { %v3716_v50 = vmul.f32 -1.442695, %v2507_v22  ;;  %v2574_v22 = vld [vmem:[#allocation2 + $0x28] sm:$0x3f] }
0x1e6d   :  { %v2503_v23 = vpop.f32.mrf.mxu0 }
0x1e6e   :  { %4216 = vpow2.f32 %v3716_v50  ;;  %v2508_v52 = vadd.f32 %v2503_v23, %v2460_v51 }
0x1e6f   :  { %v4005_v58 = vpop.f32.mrf.mxu0 }
0x1e70   :  { %v3717_v59 = vmul.f32 -1.442695, %v2508_v52 }
0x1e72   :  { %4218 = vpow2.f32 %v3717_v59 }
0x1e7b   :  { %v4217_v60 = vpop.eup %4216 }
0x1e7c   :  { %v2515_v2 = vadd.f32 1.0, %v4217_v60 }
0x1e7e   :  { %4220 = vrcp.f32 %v2515_v2 }
0x1e7f   :  { %v4219_v42 = vpop.eup %4218 }
0x1e80   :  { %v2516_v45 = vadd.f32 1.0, %v4219_v42 }
0x1e82   :  { %4222 = vrcp.f32 %v2516_v45 }
0x1e8b   :  { %v4221_v5 = vpop.eup %4220 }
0x1e8c   :  { %v2521_v6 = vmul.f32 2.0, %v4221_v5  ;;  %v2525_v19 = vmul.f32 %v4221_v5, %v2431_v28 }
0x1e8e   :  { %v3718_v46 = vadd.f32 -1.0, %v2521_v6 }
0x1e8f   :  { %v4223_v47 = vpop.eup %4222 }
0x1e90   :  { %2529 = vrot.lane.b32.xlu0 %v3718_v46, %s4293_s4  ;;  %v2522_v26 = vmul.f32 2.0, %v4223_v47  ;;  %v2526_v21 = vmul.f32 %v4223_v47, %v2432_v30 }
0x1e92   :  { %v3719_v7 = vadd.f32 -1.0, %v2522_v26 }
0x1e94   :  { %2531 = vrot.lane.b32.xlu1 %v3719_v7, %s4293_s4 }
0x1f02   :  { %v2530_v10 = vpop.permute.xlu0 %2529 }
0x1f03   :  { %v2535_v11 = vmul.f32 %v4221_v5, %v2530_v10 }
0x1f05   :  { %2539 = vrot.lane.b32.xlu0 %v2535_v11, %s4294_s18 }
0x1f06   :  { %v2532_v17 = vpop.permute.xlu1 %2531 }
0x1f07   :  { %v2536_v18 = vmul.f32 %v4223_v47, %v2532_v17 }
0x1f09   :  { %2541 = vrot.lane.b32.xlu1 %v2536_v18, %s4294_s18 }
0x1f77   :  { %v2540_v49 = vpop.permute.xlu0 %2539 }
0x1f78   :  { %v2545_v53 = vadd.f32 %v2540_v49, %v2525_v19 }
0x1f7a   :  { %4224 = vtanh.f32 %v2545_v53 }
0x1f7b   :  { %v2542_v20 = vpop.permute.xlu1 %2541 }
0x1f7c   :  { %v2546_v24 = vadd.f32 %v2542_v20, %v2526_v21 }
0x1f7e   :  { %4226 = vtanh.f32 %v2546_v24 }
0x1f87   :  { %v4225_v41 = vpop.eup %4224 }
0x1f88   :  { %2551 = vrot.lane.b32.xlu0 %v4225_v41, %s4293_s4 }
0x1f8b   :  { %v4227_v55 = vpop.eup %4226 }
0x1f8c   :  { %2553 = vrot.lane.b32.xlu1 %v4227_v55, %s4293_s4 }
0x1ffa   :  { %v2552_v29 = vpop.permute.xlu0 %2551 }
0x1ffb   :  { %v5079_v33 = vmul.f32 %v4221_v5, %v2552_v29 }
0x1ffe   :  { %v2554_v32 = vpop.permute.xlu1 %2553 }
0x1fff   :  { %v5081_v34 = vmul.f32 %v4223_v47, %v2554_v32 }
0x2001   :  { %v2559_v28 = vpack.c.bf16 %v5081_v34, %v5079_v33 }
0x2003   :  { %2575 = vrot.lane.b32.xlu0 %v2559_v28, %s4294_s18 }
0x2075   :  { %v2576_v30 = vpop.permute.xlu0 %2575 }
0x2076   :  { %4011 = vmatmul.mubr.msk.bf16.vlgmr.msra.gmra.mxu1 %vm1322_vm2, %v2576_v30  ;;  %v2683_v30 = vld [vmem:[#allocation2 + $0x60] sm:$0xff] }
0x2077   :  { %4023 = vmatpush3.bf16.msra.mxu1 %v4998_v12  ;;  %4026 = vmatprep.mubr.msk.bf16.mxu1 %vm4292_vm1, %v4291_v16 }
0x2078   :  { %4024 = vmatprep.subr.bf16.mxu1 %v4291_v16 }
0x207b   :  { %4025 = vmatpush3.bf16.msra.mxu1 %v5007_v14 }
0x207c   :  { %4038 = vmatprep.subr.bf16.mxu1 %v4291_v16 }
0x2136   :  { %v2614_v35 = vpop.f32.mrf.mxu1 }
0x2137   :  { %v2621_v4 = vadd.f32 %v2614_v35, %v2573_v36 }
0x2138   :  { %v4012_v38 = vpop.f32.mrf.mxu1 }
0x2139   :  { %v3723_v43 = vmul.f32 -1.442695, %v2621_v4 }
0x213a   :  { %v2617_v48 = vpop.f32.mrf.mxu1 }
0x213b   :  { %4228 = vpow2.f32 %v3723_v43  ;;  %v2622_v50 = vadd.f32 %v2617_v48, %v2574_v22  ;;  %v2684_v43 = vld [vmem:[#allocation2 + $0xa0] sm:$0x3f] }
0x213c   :  { %v4013_v51 = vpop.f32.mrf.mxu1 }
0x213d   :  { %v3724_v23 = vmul.f32 -1.442695, %v2622_v50 }
0x213f   :  { %4230 = vpow2.f32 %v3724_v23 }
0x2148   :  { %v4229_v52 = vpop.eup %4228 }
0x2149   :  { %v2629_v58 = vadd.f32 1.0, %v4229_v52 }
0x214b   :  { %4232 = vrcp.f32 %v2629_v58 }
0x214c   :  { %v4231_v59 = vpop.eup %4230 }
0x214d   :  { %v2630_v60 = vadd.f32 1.0, %v4231_v59 }
0x214f   :  { %4234 = vrcp.f32 %v2630_v60 }
0x2158   :  { %v4233_v2 = vpop.eup %4232 }
0x2159   :  { %v2635_v42 = vmul.f32 2.0, %v4233_v2  ;;  %v2639_v11 = vmul.f32 %v4233_v2, %v2545_v53 }
0x215b   :  { %v3725_v45 = vadd.f32 -1.0, %v2635_v42 }
0x215c   :  { %v4235_v5 = vpop.eup %4234 }
0x215d   :  { %2643 = vrot.lane.b32.xlu1 %v3725_v45, %s4293_s4  ;;  %v2636_v6 = vmul.f32 2.0, %v4235_v5  ;;  %v2640_v19 = vmul.f32 %v4235_v5, %v2546_v24 }
0x215f   :  { %v3726_v46 = vadd.f32 -1.0, %v2636_v6 }
0x2161   :  { %2645 = vrot.lane.b32.xlu0 %v3726_v46, %s4293_s4 }
0x21cf   :  { %v2644_v47 = vpop.permute.xlu1 %2643 }
0x21d0   :  { %v2649_v26 = vmul.f32 %v4233_v2, %v2644_v47 }
0x21d2   :  { %2653 = vrot.lane.b32.xlu1 %v2649_v26, %s4294_s18 }
0x21d3   :  { %v2646_v7 = vpop.permute.xlu0 %2645 }
0x21d4   :  { %v2650_v10 = vmul.f32 %v4235_v5, %v2646_v7 }
0x21d6   :  { %2655 = vrot.lane.b32.xlu0 %v2650_v10, %s4294_s18 }
0x2244   :  { %v2654_v17 = vpop.permute.xlu1 %2653 }
0x2245   :  { %v2659_v18 = vadd.f32 %v2654_v17, %v2639_v11 }
0x2247   :  { %4236 = vtanh.f32 %v2659_v18 }
0x2248   :  { %v2656_v49 = vpop.permute.xlu0 %2655 }
0x2249   :  { %v2660_v21 = vadd.f32 %v2656_v49, %v2640_v19 }
0x224b   :  { %4238 = vtanh.f32 %v2660_v21 }
0x2254   :  { %v4237_v20 = vpop.eup %4236 }
0x2255   :  { %2665 = vrot.lane.b32.xlu1 %v4237_v20, %s4293_s4 }
0x2258   :  { %v4239_v41 = vpop.eup %4238 }
0x2259   :  { %2667 = vrot.lane.b32.xlu0 %v4239_v41, %s4293_s4 }
0x22c7   :  { %v2666_v55 = vpop.permute.xlu1 %2665 }
0x22c8   :  { %v5099_v32 = vmul.f32 %v4233_v2, %v2666_v55 }
0x22cb   :  { %v2668_v29 = vpop.permute.xlu0 %2667 }
0x22cc   :  { %v5101_v28 = vmul.f32 %v4235_v5, %v2668_v29 }
0x22ce   :  { %v2673_v53 = vpack.c.bf16 %v5101_v28, %v5099_v32 }
0x22d0   :  { %2685 = vrot.lane.b32.xlu1 %v2673_v53, %s4294_s18 }
0x2342   :  { %v2686_v24 = vpop.permute.xlu1 %2685 }
0x2343   :  { %4019 = vmatmul.mubr.msk.bf16.vlgmr.msra.gmra.mxu0 %vm1322_vm2, %v2686_v24 }
0x2344   :  { %4031 = vmatpush3.bf16.msra.mxu0 %v4998_v12  ;;  %4034 = vmatprep.mubr.msk.bf16.mxu0 %vm4292_vm1, %v4291_v16 }
0x2345   :  { %4032 = vmatprep.subr.bf16.mxu0 %v4291_v16 }
0x2348   :  { %4033 = vmatpush3.bf16.msra.mxu0 %v5007_v14 }
0x2403   :  { %v2724_v36 = vpop.f32.mrf.mxu0 }
0x2404   :  { %v2731_v35 = vadd.f32 %v2724_v36, %v2683_v30  ;;  %v2797_v36 = vld [vmem:[#allocation2 + $0xf0] sm:$0xff] }
0x2405   :  { %v4020_v4 = vpop.f32.mrf.mxu0 }
0x2406   :  { %v3730_v38 = vmul.f32 -1.442695, %v2731_v35 }
0x2407   :  { %v2727_v22 = vpop.f32.mrf.mxu0 }
0x2408   :  { %4240 = vpow2.f32 %v3730_v38  ;;  %v2732_v48 = vadd.f32 %v2727_v22, %v2684_v43  ;;  %v2798_v22 = vld [vmem:[#allocation2 + $0xf8] sm:$0x3f] }
0x2409   :  { %v4021_v50 = vpop.f32.mrf.mxu0 }
0x240a   :  { %v3731_v51 = vmul.f32 -1.442695, %v2732_v48 }
0x240c   :  { %4242 = vpow2.f32 %v3731_v51 }
0x2415   :  { %v4241_v23 = vpop.eup %4240 }
0x2416   :  { %v2739_v52 = vadd.f32 1.0, %v4241_v23 }
0x2418   :  { %4244 = vrcp.f32 %v2739_v52 }
0x2419   :  { %v4243_v58 = vpop.eup %4242 }
0x241a   :  { %v2740_v59 = vadd.f32 1.0, %v4243_v58 }
0x241c   :  { %4246 = vrcp.f32 %v2740_v59 }
0x2425   :  { %v4245_v60 = vpop.eup %4244 }
0x2426   :  { %v2745_v2 = vmul.f32 2.0, %v4245_v60  ;;  %v2749_v10 = vmul.f32 %v4245_v60, %v2659_v18 }
0x2428   :  { %v3732_v42 = vadd.f32 -1.0, %v2745_v2 }
0x2429   :  { %v4247_v45 = vpop.eup %4246 }
0x242a   :  { %2753 = vrot.lane.b32.xlu0 %v3732_v42, %s4293_s4  ;;  %v2746_v5 = vmul.f32 2.0, %v4247_v45  ;;  %v2750_v19 = vmul.f32 %v4247_v45, %v2660_v21 }
0x242c   :  { %v3733_v6 = vadd.f32 -1.0, %v2746_v5 }
0x242e   :  { %2755 = vrot.lane.b32.xlu1 %v3733_v6, %s4293_s4 }
0x249c   :  { %v2754_v46 = vpop.permute.xlu0 %2753 }
0x249d   :  { %v2759_v47 = vmul.f32 %v4245_v60, %v2754_v46 }
0x249f   :  { %2763 = vrot.lane.b32.xlu0 %v2759_v47, %s4294_s18 }
0x24a0   :  { %v2756_v26 = vpop.permute.xlu1 %2755 }
0x24a1   :  { %v2760_v7 = vmul.f32 %v4247_v45, %v2756_v26 }
0x24a3   :  { %2765 = vrot.lane.b32.xlu1 %v2760_v7, %s4294_s18 }
0x2511   :  { %v2764_v11 = vpop.permute.xlu0 %2763 }
0x2512   :  { %v2769_v17 = vadd.f32 %v2764_v11, %v2749_v10 }
0x2514   :  { %4248 = vtanh.f32 %v2769_v17 }
0x2515   :  { %v2766_v49 = vpop.permute.xlu1 %2765 }
0x2516   :  { %v2770_v20 = vadd.f32 %v2766_v49, %v2750_v19 }
0x2518   :  { %4250 = vtanh.f32 %v2770_v20 }
0x2521   :  { %v4249_v41 = vpop.eup %4248 }
0x2522   :  { %2775 = vrot.lane.b32.xlu0 %v4249_v41, %s4293_s4 }
0x2525   :  { %v4251_v55 = vpop.eup %4250 }
0x2526   :  { %2777 = vrot.lane.b32.xlu1 %v4251_v55, %s4293_s4 }
0x2594   :  { %v2776_v29 = vpop.permute.xlu0 %2775 }
0x2595   :  { %v5118_v24 = vmul.f32 %v4245_v60, %v2776_v29 }
0x2598   :  { %v2778_v53 = vpop.permute.xlu1 %2777 }
0x2599   :  { %v5120_v30 = vmul.f32 %v4247_v45, %v2778_v53 }
0x259b   :  { %v2783_v18 = vpack.c.bf16 %v5120_v30, %v5118_v24 }
0x259d   :  { %2799 = vrot.lane.b32.xlu0 %v2783_v18, %s4294_s18 }
0x260f   :  { %v2800_v21 = vpop.permute.xlu0 %2799 }
0x2610   :  { %4027 = vmatmul.mubr.msk.bf16.vlgmr.msra.gmra.mxu1 %vm1322_vm2, %v2800_v21 }
0x2611   :  { %4039 = vmatpush3.bf16.msra.mxu1 %v4998_v12  ;;  %4042 = vmatprep.mubr.msk.bf16.mxu1 %vm4292_vm1, %v4291_v16 }
0x2612   :  { %4040 = vmatprep.subr.bf16.mxu1 %v4291_v16 }
0x2615   :  { %4041 = vmatpush3.bf16.msra.mxu1 %v5007_v14 }
0x26d0   :  { %v2838_v35 = vpop.f32.mrf.mxu1 }
0x26d1   :  { %v2845_v4 = vadd.f32 %v2838_v35, %v2797_v36  ;;  %v2911_v36 = vld [vmem:[#allocation2 + $0x8] sm:$0xff] }
0x26d2   :  { %v4028_v38 = vpop.f32.mrf.mxu1 }
0x26d3   :  { %v3737_v43 = vmul.f32 -1.442695, %v2845_v4 }
0x26d4   :  { %v2841_v48 = vpop.f32.mrf.mxu1 }
0x26d5   :  { %4252 = vpow2.f32 %v3737_v43  ;;  %v2846_v50 = vadd.f32 %v2841_v48, %v2798_v22  ;;  %v2912_v22 = vld [vmem:[#allocation2 + $0x20] sm:$0x3f] }
0x26d6   :  { %v4029_v51 = vpop.f32.mrf.mxu1 }
0x26d7   :  { %v3738_v23 = vmul.f32 -1.442695, %v2846_v50 }
0x26d9   :  { %4254 = vpow2.f32 %v3738_v23 }
0x26e2   :  { %v4253_v12 = vpop.eup %4252 }
0x26e3   :  { %v2853_v52 = vadd.f32 1.0, %v4253_v12 }
0x26e5   :  { %4256 = vrcp.f32 %v2853_v52 }
0x26e6   :  { %v4255_v58 = vpop.eup %4254 }
0x26e7   :  { %v2854_v59 = vadd.f32 1.0, %v4255_v58 }
0x26e9   :  { %4258 = vrcp.f32 %v2854_v59 }
0x26f2   :  { %v4257_v16 = vpop.eup %4256 }
0x26f3   :  { %v2859_v14 = vmul.f32 2.0, %v4257_v16  ;;  %v2863_v26 = vmul.f32 %v4257_v16, %v2769_v17 }
0x26f5   :  { %v3739_v60 = vadd.f32 -1.0, %v2859_v14 }
0x26f6   :  { %v4259_v2 = vpop.eup %4258 }
0x26f7   :  { %2867 = vrot.lane.b32.xlu1 %v3739_v60, %s4293_s4  ;;  %v2860_v42 = vmul.f32 2.0, %v4259_v2  ;;  %v2864_v11 = vmul.f32 %v4259_v2, %v2770_v20 }
0x26f9   :  { %v3740_v45 = vadd.f32 -1.0, %v2860_v42 }
0x26fb   :  { %2869 = vrot.lane.b32.xlu0 %v3740_v45, %s4293_s4 }
0x2769   :  { %v2868_v5 = vpop.permute.xlu1 %2867 }
0x276a   :  { %v2873_v6 = vmul.f32 %v4257_v16, %v2868_v5 }
0x276c   :  { %2877 = vrot.lane.b32.xlu1 %v2873_v6, %s4294_s18 }
0x276d   :  { %v2870_v46 = vpop.permute.xlu0 %2869 }
0x276e   :  { %v2874_v47 = vmul.f32 %v4259_v2, %v2870_v46 }
0x2770   :  { %2879 = vrot.lane.b32.xlu0 %v2874_v47, %s4294_s18 }
0x27de   :  { %v2878_v7 = vpop.permute.xlu1 %2877 }
0x27df   :  { %v2883_v10 = vadd.f32 %v2878_v7, %v2863_v26 }
0x27e1   :  { %4260 = vtanh.f32 %v2883_v10 }
0x27e2   :  { %v2880_v19 = vpop.permute.xlu0 %2879 }
0x27e3   :  { %v2884_v49 = vadd.f32 %v2880_v19, %v2864_v11 }
0x27e5   :  { %4262 = vtanh.f32 %v2884_v49 }
0x27ee   :  { %v4261_v41 = vpop.eup %4260 }
0x27ef   :  { %2889 = vrot.lane.b32.xlu1 %v4261_v41, %s4293_s4 }
0x27f2   :  { %v4263_v55 = vpop.eup %4262 }
0x27f3   :  { %2891 = vrot.lane.b32.xlu0 %v4263_v55, %s4293_s4 }
0x2861   :  { %v2890_v29 = vpop.permute.xlu1 %2889 }
0x2862   :  { %v5137_v18 = vmul.f32 %v4257_v16, %v2890_v29 }
0x2865   :  { %v2892_v53 = vpop.permute.xlu0 %2891 }
0x2866   :  { %v5139_v21 = vmul.f32 %v4259_v2, %v2892_v53 }
0x2868   :  { %v2897_v17 = vpack.c.bf16 %v5139_v21, %v5137_v18 }
0x286a   :  { %2913 = vrot.lane.b32.xlu1 %v2897_v17, %s4294_s18 }
0x28dc   :  { %v2914_v20 = vpop.permute.xlu1 %2913 }
0x28dd   :  { %4035 = vmatmul.mubr.msk.bf16.vlgmr.msra.gmra.mxu0 %vm1322_vm2, %v2914_v20 }
0x299d   :  { %v2952_v35 = vpop.f32.mrf.mxu0 }
0x299e   :  { %v2959_v4 = vadd.f32 %v2952_v35, %v2911_v36 }
0x299f   :  { %v4036_v38 = vpop.f32.mrf.mxu0 }
0x29a0   :  { %v3744_v43 = vmul.f32 -1.442695, %v2959_v4  ;;  %v3025_v4 = vld [vmem:[#allocation2 + $0x78] sm:$0xff] }
0x29a1   :  { %v2955_v48 = vpop.f32.mrf.mxu0 }
0x29a2   :  { %4264 = vpow2.f32 %v3744_v43  ;;  %v2960_v50 = vadd.f32 %v2955_v48, %v2912_v22 }
0x29a3   :  { %v4037_v51 = vpop.f32.mrf.mxu0 }
0x29a4   :  { %v3745_v23 = vmul.f32 -1.442695, %v2960_v50  ;;  %v3026_v50 = vld [vmem:[#allocation2 + $0x98] sm:$0x3f] }
0x29a6   :  { %4266 = vpow2.f32 %v3745_v23 }
0x29af   :  { %v4265_v12 = vpop.eup %4264 }
0x29b0   :  { %v2967_v52 = vadd.f32 1.0, %v4265_v12 }
0x29b2   :  { %4268 = vrcp.f32 %v2967_v52 }
0x29b3   :  { %v4267_v58 = vpop.eup %4266 }
0x29b4   :  { %v2968_v59 = vadd.f32 1.0, %v4267_v58 }
0x29b6   :  { %4270 = vrcp.f32 %v2968_v59 }
0x29bf   :  { %v4269_v16 = vpop.eup %4268 }
0x29c0   :  { %v2973_v14 = vmul.f32 2.0, %v4269_v16  ;;  %v2977_v26 = vmul.f32 %v4269_v16, %v2883_v10 }
0x29c2   :  { %v3746_v60 = vadd.f32 -1.0, %v2973_v14 }
0x29c3   :  { %v4271_v2 = vpop.eup %4270 }
0x29c4   :  { %2981 = vrot.lane.b32.xlu0 %v3746_v60, %s4293_s4  ;;  %v2974_v42 = vmul.f32 2.0, %v4271_v2  ;;  %v2978_v19 = vmul.f32 %v4271_v2, %v2884_v49 }
0x29c6   :  { %v3747_v45 = vadd.f32 -1.0, %v2974_v42 }
0x29c8   :  { %2983 = vrot.lane.b32.xlu1 %v3747_v45, %s4293_s4 }
0x2a36   :  { %v2982_v5 = vpop.permute.xlu0 %2981 }
0x2a37   :  { %v2987_v6 = vmul.f32 %v4269_v16, %v2982_v5 }
0x2a39   :  { %2991 = vrot.lane.b32.xlu0 %v2987_v6, %s4294_s18 }
0x2a3a   :  { %v2984_v46 = vpop.permute.xlu1 %2983 }
0x2a3b   :  { %v2988_v47 = vmul.f32 %v4271_v2, %v2984_v46  ;;  %v4054_v46 = vld [vmem:[%s5418_s6 + $0x78] sm:$0xff]  }
0x2a3c   :  { %3874 = vmatprep.subr.bf16.mxu0 %v4054_v46  ;;  %v4079_v46 = vld [vmem:[%s5418_s6 + $0xe0] sm:$0xff]  }
0x2a3d   :  { %2993 = vrot.lane.b32.xlu1 %v2988_v47, %s4294_s18  ;;  %v4055_v47 = vld [vmem:[%s5418_s6 + $0x38] sm:$0xff]  }
0x2a3e   :  { %3875 = vmatpush3.bf16.msra.mxu0 %v4055_v47 }
0x2aab   :  { %v2992_v7 = vpop.permute.xlu0 %2991 }
0x2aac   :  { %v5149_v11 = vadd.f32 %v2992_v7, %v2977_v26  ;;  %v4056_v26 = vld [vmem:[%s5418_s6 + $0x70] sm:$0xff]  }
0x2aad   :  { %3876 = vmatprep.subr.bf16.mxu0 %v4056_v26 }
0x2aae   :  { %4272 = vtanh.f32 %v5149_v11 }
0x2aaf   :  { %v2994_v41 = vpop.permute.xlu1 %2993 }
0x2ab0   :  { %v5152_v55 = vadd.f32 %v2994_v41, %v2978_v19  ;;  %v4057_v19 = vld [vmem:[%s5418_s6 + $0x30] sm:$0xff]  }
0x2ab1   :  { %3877 = vmatpush3.bf16.msra.mxu0 %v4057_v19  ;;  %v4081_v19 = vld [vmem:[%s5418_s6 + $0xd8] sm:$0xff]  }
0x2ab2   :  { %4274 = vtanh.f32 %v5152_v55 }
0x2abb   :  { %v4273_v29 = vpop.eup %4272 }
0x2abc   :  { %3003 = vrot.lane.b32.xlu0 %v4273_v29, %s4293_s4  ;;  %v4058_v29 = vld [vmem:[%s5418_s6 + $0x68] sm:$0xff]  }
0x2abd   :  { %3878 = vmatprep.subr.bf16.mxu0 %v4058_v29 }
0x2abf   :  { %v4275_v53 = vpop.eup %4274 }
0x2ac0   :  { %3005 = vrot.lane.b32.xlu1 %v4275_v53, %s4293_s4 }
0x2b2e   :  { %v3004_v17 = vpop.permute.xlu0 %3003 }
0x2b2f   :  { %v5157_v10 = vmul.f32 %v4269_v16, %v3004_v17  ;;  %v4059_v17 = vld [vmem:[%s5418_s6 + $0x28] sm:$0xff]  }
0x2b30   :  { %3879 = vmatpush3.bf16.msra.mxu0 %v4059_v17  ;;  %v4084_v17 = vld [vmem:[%s5418_s6 + $0x90] sm:$0xff]  }
0x2b32   :  { %v3006_v20 = vpop.permute.xlu1 %3005 }
0x2b33   :  { %v5159_v36 = vmul.f32 %v4271_v2, %v3006_v20  ;;  %v3794_v20 = vpack.c.bf16 %v4861_v56, %v4861_v56  ;;  %v3802_v56 = vpack.c.bf16 %v4945_v39, %v4945_v39  ;;  %v3803_v39 = vpack.c.bf16 %v4947_v40, %v4947_v40 }
0x2b34   :  { %v3804_v40 = vpack.c.bf16 %v4966_v25, %v4966_v25  ;;  %v3805_v25 = vpack.c.bf16 %v4968_v54, %v4968_v54  ;;  %v3806_v54 = vpack.c.bf16 %v4987_v8, %v4987_v8  ;;  %v3818_v8 = vpack.c.bf16 %v5118_v24, %v5118_v24  ;;  %v4074_v24 = vld [vmem:[%s5418_s6 + $0xb8] sm:$0xff]  }
0x2b35   :  { %v3011_v49 = vpack.c.bf16 %v5159_v36, %v5157_v10 }
0x2b37   :  { %3027 = vrot.lane.b32.xlu0 %v3011_v49, %s4294_s18 }
0x2ba9   :  { %v3028_v35 = vpop.permute.xlu0 %3027 }
0x2baa   :  { %4043 = vmatmul.mubr.msk.bf16.vlgmr.msra.gmra.mxu1 %vm1322_vm2, %v3028_v35  ;;  %v4060_v35 = vld [vmem:[%s5418_s6 + $0x60] sm:$0xff]  }
0x2bab   :  { %3880 = vmatprep.subr.bf16.mxu0 %v4060_v35  ;;  %v4085_v35 = vld [vmem:[%s5418_s6 + $0xc8] sm:$0xff]  }
0x2c6a   :  { %v3066_v38 = vpop.f32.mrf.mxu1 }
0x2c6b   :  { %v3073_v43 = vadd.f32 %v3066_v38, %v3025_v4  ;;  %v4061_v4 = vld [vmem:[%s5418_s6 + $0x20] sm:$0xff]   ;;  %v3795_v38 = vpack.c.bf16 %v4863_v57, %v4863_v57  ;;  %v3796_v57 = vpack.c.bf16 %v4882_v31, %v4882_v31  ;;  %v3797_v31 = vpack.c.bf16 %v4884_v63, %v4884_v63 }
0x2c6c   :  { %v4044_v22 = vpop.f32.mrf.mxu1  ;;  %3881 = vmatpush3.bf16.msra.mxu0 %v4061_v4  ;;  %v3798_v63 = vpack.c.bf16 %v4903_v3, %v4903_v3  ;;  %v3799_v3 = vpack.c.bf16 %v4905_v13, %v4905_v13  ;;  %v3811_v13 = vpack.c.bf16 %v5041_v15, %v5041_v15  ;;  %v4073_v15 = vld [vmem:[%s5418_s6 + $0xf8] sm:$0xff]   ;;  %v4086_v4 = vld [vmem:[%s5418_s6 + $0x88] sm:$0xff]  }
0x2c6d   :  { %v3751_v48 = vmul.f32 -1.442695, %v3073_v43  ;;  %v4062_v43 = vld [vmem:[%s5418_s6 + $0x58] sm:$0xff]   ;;  %3896 = vmatprep.subr.bf16.mxu1 %v4073_v15 }
0x2c6e   :  { %v3069_v51 = vpop.f32.mrf.mxu1  ;;  %v4063_v22 = vld [vmem:[%s5418_s6 + $0x18] sm:$0xff]   ;;  %3882 = vmatprep.subr.bf16.mxu0 %v4062_v43  ;;  %3897 = vmatpush3.bf16.msra.mxu1 %v4074_v24 }
0x2c6f   :  { %4276 = vpow2.f32 %v3751_v48  ;;  %v3074_v23 = vadd.f32 %v3069_v51, %v3026_v50  ;;  %v4064_v48 = vld [vmem:[%s5418_s6 + $0x50] sm:$0xff]   ;;  %v4066_v51 = vld [vmem:[%s5418_s6 + $0x48] sm:$0xff]  }
0x2c70   :  { %v4045_v12 = vpop.f32.mrf.mxu1  ;;  %3883 = vmatpush3.bf16.msra.mxu0 %v4063_v22  ;;  %v4065_v50 = vld [vmem:[%s5418_s6 + $0x10] sm:$0xff]  }
0x2c71   :  { %v3752_v52 = vmul.f32 -1.442695, %v3074_v23  ;;  %3884 = vmatprep.subr.bf16.mxu0 %v4064_v48  ;;  %v4067_v23 = vld [vmem:[%s5418_s6 + $0x8] sm:$0xff]   ;;  %v4068_v12 = vld [vmem:[%s5418_s6 + $0x40] sm:$0xff]  }
0x2c73   :  { %4278 = vpow2.f32 %v3752_v52  ;;  %v4069_v52 = vld [vmem:[%s5418_s6] sm:$0xff]  }
0x2c74   :  { %3885 = vmatpush3.bf16.msra.mxu0 %v4065_v50  ;;  %v3800_v50 = vpack.c.bf16 %v4924_v62, %v4924_v62  ;;  %v3801_v62 = vpack.c.bf16 %v4926_v1, %v4926_v1 }
0x2c75   :  { %3886 = vmatprep.subr.bf16.mxu0 %v4066_v51  ;;  %v3808_v51 = vpack.c.bf16 %v5018_v61, %v5018_v61 }
0x2c78   :  { %3887 = vmatpush3.bf16.msra.mxu0 %v4067_v23 }
0x2c79   :  { %3888 = vmatprep.subr.bf16.mxu0 %v4068_v12 }
0x2c7c   :  { %v4277_v58 = vpop.eup %4276  ;;  %3889 = vmatpush3.bf16.msra.mxu0 %v4069_v52 }
0x2c7d   :  { %v3081_v59 = vadd.f32 1.0, %v4277_v58  ;;  %v3807_v58 = vpack.c.bf16 %v4989_v9, %v4989_v9  ;;  %v3812_v9 = vpack.c.bf16 %v5059_v27, %v5059_v27  ;;  %v3813_v27 = vpack.c.bf16 %v5061_v37, %v5061_v37 }
0x2c7e   :  { %v3814_v37 = vpack.c.bf16 %v5079_v33, %v5079_v33 }
0x2c7f   :  { %4280 = vrcp.f32 %v3081_v59  ;;  %v3810_v59 = vpack.c.bf16 %v5039_v44, %v5039_v44  ;;  %v3819_v44 = vpack.c.bf16 %v5120_v30, %v5120_v30  ;;  %v3820_v30 = vpack.c.bf16 %v5137_v18, %v5137_v18 }
0x2c80   :  { %v4279_v16 = vpop.eup %4278  ;;  %v3821_v18 = vpack.c.bf16 %v5139_v21, %v5139_v21 }
0x2c81   :  { %v3082_v14 = vadd.f32 1.0, %v4279_v16  ;;  %v4075_v16 = vld [vmem:[%s5418_s6 + $0xf0] sm:$0xff]  }
0x2c82   :  { %3898 = vmatprep.subr.bf16.mxu1 %v4075_v16 }
0x2c83   :  { %4282 = vrcp.f32 %v3082_v14  ;;  %v4076_v14 = vld [vmem:[%s5418_s6 + $0xb0] sm:$0xff]  }
0x2c84   :  { %3899 = vmatpush3.bf16.msra.mxu1 %v4076_v14 }
0x2c8c   :  { %v5165_v60 = vpop.eup %4280 }
0x2c8d   :  { %v3087_v2 = vmul.f32 2.0, %v5165_v60  ;;  %v3091_v33 = vmul.f32 %v5165_v60, %v5149_v11 }
0x2c8f   :  { %v3753_v42 = vadd.f32 -1.0, %v3087_v2  ;;  %v4077_v2 = vld [vmem:[%s5418_s6 + $0xe8] sm:$0xff]  }
0x2c90   :  { %v5168_v45 = vpop.eup %4282  ;;  %3900 = vmatprep.subr.bf16.mxu1 %v4077_v2 }
0x2c91   :  { %3095 = vrot.lane.b32.xlu1 %v3753_v42, %s4293_s4  ;;  %v3088_v5 = vmul.f32 2.0, %v5168_v45  ;;  %v4078_v42 = vld [vmem:[%s5418_s6 + $0xa8] sm:$0xff]   ;;  %v3092_v47 = vmul.f32 %v5168_v45, %v5152_v55  ;;  %v4082_v55 = vld [vmem:[%s5418_s6 + $0x98] sm:$0xff]  }
0x2c92   :  { %3901 = vmatpush3.bf16.msra.mxu1 %v4078_v42 }
0x2c93   :  { %v3754_v6 = vadd.f32 -1.0, %v3088_v5  ;;  %v3815_v5 = vpack.c.bf16 %v5081_v34, %v5081_v34  ;;  %v4080_v34 = vld [vmem:[%s5418_s6 + $0xa0] sm:$0xff]   ;;  %3902 = vmatprep.subr.bf16.mxu1 %v4079_v46 }
0x2c95   :  { %3097 = vrot.lane.b32.xlu0 %v3754_v6, %s4293_s4 }
0x2c96   :  { %3903 = vmatpush3.bf16.msra.mxu1 %v4080_v34 }
0x2c97   :  { %3904 = vmatprep.subr.bf16.mxu1 %v4081_v19 }
0x2c9a   :  { %3905 = vmatpush3.bf16.msra.mxu1 %v4082_v55 }
0x2d03   :  { %v3096_v7 = vpop.permute.xlu1 %3095 }
0x2d04   :  { %v3101_v41 = vmul.f32 %v5165_v60, %v3096_v7 }
0x2d06   :  { %3105 = vrot.lane.b32.xlu1 %v3101_v41, %s4294_s18 }
0x2d07   :  { %v3098_v53 = vpop.permute.xlu0 %3097 }
0x2d08   :  { %v3102_v49 = vmul.f32 %v5168_v45, %v3098_v53  ;;  %v4083_v53 = vld [vmem:[%s5418_s6 + $0xd0] sm:$0xff]  }
0x2d09   :  { %3906 = vmatprep.subr.bf16.mxu1 %v4083_v53 }
0x2d0a   :  { %1425 = vrot.lane.b32.xlu1 %v3794_v20, %s4294_s18  ;;  %3107 = vrot.lane.b32.xlu0 %v3102_v49, %s4294_s18 }
0x2d0b   :  { %3907 = vmatpush3.bf16.msra.mxu1 %v4084_v17  ;;  %v3505_v17 = vld [vmem:[%s5412_s0 + $0x8] sm:$0x3f] }
0x2d0c   :  { %3908 = vmatprep.subr.bf16.mxu1 %v4085_v35 }
0x2d0e   :  { %1885 = vrot.lane.b32.xlu1 %v3802_v56, %s4294_s18  ;;  %1427 = vrot.lane.b32.xlu0 %v3795_v38, %s4294_s18  ;;  %v4087_v38 = vld [vmem:[%s5418_s6 + $0xc0] sm:$0xff]  }
0x2d0f   :  { %3909 = vmatpush3.bf16.msra.mxu1 %v4086_v4 }
0x2d10   :  { %3910 = vmatprep.subr.bf16.mxu1 %v4087_v38 }
0x2d12   :  { %1541 = vrot.lane.b32.xlu1 %v3796_v57, %s4293_s4  ;;  %1887 = vrot.lane.b32.xlu0 %v3803_v39, %s4294_s18  ;;  %v4088_v57 = vld [vmem:[%s5418_s6 + $0x80] sm:$0xff]   ;;  %v3822_v39 = vpack.c.bf16 %v5157_v10, %v5157_v10  ;;  %v3823_v10 = vpack.c.bf16 %v5159_v36, %v5159_v36  ;;  %v3809_v36 = vpack.c.bf16 %v5020_v0, %v5020_v0 }
0x2d13   :  { %3911 = vmatpush3.bf16.msra.mxu1 %v4088_v57 }
0x2d16   :  { %1999 = vrot.lane.b32.xlu1 %v3804_v40, %s4293_s4  ;;  %1543 = vrot.lane.b32.xlu0 %v3797_v31, %s4293_s4 }
0x2d1a   :  { %1657 = vrot.lane.b32.xlu1 %v3798_v63, %s4295_s1  ;;  %2001 = vrot.lane.b32.xlu0 %v3805_v25, %s4293_s4 }
0x2d1e   :  { %2113 = vrot.lane.b32.xlu1 %v3806_v54, %s4295_s1  ;;  %1659 = vrot.lane.b32.xlu0 %v3799_v3, %s4295_s1 }
0x2d22   :  { %2337 = vrot.lane.b32.xlu1 %v3810_v59, %s4294_s18  ;;  %2115 = vrot.lane.b32.xlu0 %v3807_v58, %s4295_s1 }
0x2d26   :  { %2789 = vrot.lane.b32.xlu1 %v3818_v8, %s4294_s18  ;;  %2339 = vrot.lane.b32.xlu0 %v3811_v13, %s4294_s18  ;;  %v3816_v13 = vpack.c.bf16 %v5099_v32, %v5099_v32 }
0x2d2a   :  { %2451 = vrot.lane.b32.xlu1 %v3812_v9, %s4293_s4  ;;  %2791 = vrot.lane.b32.xlu0 %v3819_v44, %s4294_s18  ;;  %v3817_v44 = vpack.c.bf16 %v5101_v28, %v5101_v28 }
0x2d2e   :  { %2903 = vrot.lane.b32.xlu1 %v3820_v30, %s4293_s4  ;;  %2453 = vrot.lane.b32.xlu0 %v3813_v27, %s4293_s4 }
0x2d32   :  { %2565 = vrot.lane.b32.xlu1 %v3814_v37, %s4295_s1  ;;  %2905 = vrot.lane.b32.xlu0 %v3821_v18, %s4293_s4 }
0x2d36   :  { %2567 = vrot.lane.b32.xlu0 %v3815_v5, %s4295_s1 }
0x2d78   :  { %v3106_v21 = vpop.permute.xlu1 %3105 }
0x2d79   :  { %v3111_v6 = vadd.f32 %v3106_v21, %v3091_v33 }
0x2d7b   :  { %4284 = vtanh.f32 %v3111_v6 }
0x2d7c   :  { %v1426_v26 = vpop.permute.xlu1 %1425  ;;  %v3108_v7 = vpop.permute.xlu0 %3107 }
0x2d7d   :  { %1432 = vst.msk [vmem:[#allocation3] sm:$0xf] %vm1431_vm3, %v1426_v26  ;;  %v3112_v11 = vadd.f32 %v3108_v7, %v3092_v47  ;;  %v3504_v7 = vld [vmem:[%s5412_s0] sm:$0xff] }
0x2d7f   :  { %4286 = vtanh.f32 %v3112_v11 }
0x2d80   :  { %v1886_v41 = vpop.permute.xlu1 %1885  ;;  %v1428_v29 = vpop.permute.xlu0 %1427 }
0x2d81   :  { %1891 = vst.msk [vmem:[#allocation3 + $0x4] sm:$0xf] %vm1431_vm3, %v1886_v41 }
0x2d82   :  { %1434 = vst.msk [vmem:[#allocation3 + $0x10] sm:$0x7] %vm1433_vm4, %v1428_v29 }
0x2d84   :  { %v1542_v20 = vpop.permute.xlu1 %1541  ;;  %v1888_v49 = vpop.permute.xlu0 %1887 }
0x2d85   :  { %1548 = vst.msk [vmem:[#allocation3] sm:$0xf] %vm1547_vm5, %v1542_v20 }
0x2d86   :  { %1892 = vst.msk [vmem:[#allocation3 + $0x14] sm:$0x7] %vm1433_vm4, %v1888_v49 }
0x2d88   :  { %v4285_v56 = vpop.eup %4284  ;;  %v2000_v43 = vpop.permute.xlu1 %1999 }
0x2d89   :  { %v1544_v22 = vpop.permute.xlu0 %1543  ;;  %2005 = vst.msk [vmem:[#allocation3 + $0x4] sm:$0xf] %vm1547_vm5, %v2000_v43  ;;  %3117 = vrot.lane.b32.xlu1 %v4285_v56, %s4293_s4 }
0x2d8a   :  { %1550 = vst.msk [vmem:[#allocation3 + $0x10] sm:$0x7] %vm1549_vm6, %v1544_v22 }
0x2d8c   :  { %v4287_v48 = vpop.eup %4286  ;;  %v1658_v31 = vpop.permute.xlu1 %1657 }
0x2d8d   :  { %v2002_v40 = vpop.permute.xlu0 %2001  ;;  %1664 = vst.msk [vmem:[#allocation3] sm:$0xf] %vm1663_vm7, %v1658_v31  ;;  %3017 = vrot.lane.b32.xlu1 %v3822_v39, %s4295_s1  ;;  %3119 = vrot.lane.b32.xlu0 %v4287_v48, %s4293_s4 }
0x2d8e   :  { %2006 = vst.msk [vmem:[#allocation3 + $0x14] sm:$0x7] %vm1549_vm6, %v2002_v40 }
0x2d8f   :  { %1776 = vst.msk [vmem:[#allocation3] sm:$0xf] %vm1775_vm8, %v3800_v50 }
0x2d90   :  { %v2114_v23 = vpop.permute.xlu1 %2113 }
0x2d91   :  { %v1660_v63 = vpop.permute.xlu0 %1659  ;;  %2119 = vst.msk [vmem:[#allocation3 + $0x4] sm:$0xf] %vm1663_vm7, %v2114_v23  ;;  %3019 = vrot.lane.b32.xlu0 %v3823_v10, %s4295_s1 }
0x2d92   :  { %1666 = vst.msk [vmem:[#allocation3 + $0x10] sm:$0x7] %vm1665_vm9, %v1660_v63 }
0x2d93   :  { %2229 = vst.msk [vmem:[#allocation3 + $0x4] sm:$0xf] %vm1775_vm8, %v3808_v51 }
0x2d94   :  { %1778 = vst.msk [vmem:[#allocation3 + $0x10] sm:$0x7] %vm1777_vm10, %v3801_v62  ;;  %v2338_v25 = vpop.permute.xlu1 %2337 }
0x2d95   :  { %v2116_v1 = vpop.permute.xlu0 %2115  ;;  %2343 = vst.msk [vmem:[#allocation3 + $0x8] sm:$0xf] %vm1431_vm3, %v2338_v25 }
0x2d96   :  { %2120 = vst.msk [vmem:[#allocation3 + $0x14] sm:$0x7] %vm1665_vm9, %v2116_v1 }
0x2d97   :  { %2230 = vst.msk [vmem:[#allocation3 + $0x14] sm:$0x7] %vm1777_vm10, %v3809_v36 }
0x2d98   :  { %v2790_v61 = vpop.permute.xlu1 %2789 }
0x2d99   :  { %v2340_v12 = vpop.permute.xlu0 %2339  ;;  %2795 = vst.msk [vmem:[#allocation3 + $0xc] sm:$0xf] %vm1431_vm3, %v2790_v61 }
0x2d9a   :  { %2344 = vst.msk [vmem:[#allocation3 + $0x18] sm:$0x7] %vm1433_vm4, %v2340_v12 }
0x2d9b   :  { %v4070_v0 = vld [vmem:[#allocation3] ss:$16 sps:$4 sm:$0x7f]  }
0x2d9c   :  { %v2452_v52 = vpop.permute.xlu1 %2451 }
0x2d9d   :  { %v2792_v3 = vpop.permute.xlu0 %2791  ;;  %2457 = vst.msk [vmem:[#allocation3 + $0x8] sm:$0xf] %vm1547_vm5, %v2452_v52 }
0x2d9e   :  { %2796 = vst.msk [vmem:[#allocation3 + $0x1c] sm:$0x7] %vm1433_vm4, %v2792_v3  ;;  %v4072_v54 = vld [vmem:[#allocation3 + $0x4] ss:$16 sps:$4 sm:$0x7f]  }
0x2d9f   :  { %3454 = vmatprep.mubr.bf16.mxu0 %v4072_v54 }
0x2da0   :  { %v2904_v58 = vpop.permute.xlu1 %2903  ;;  %3455 = vmatmul.mubr.bf16.vlgmr.msra.gmra.mxu0 %v4070_v0 }
0x2da1   :  { %v2454_v59 = vpop.permute.xlu0 %2453  ;;  %2909 = vst.msk [vmem:[#allocation3 + $0xc] sm:$0xf] %vm1547_vm5, %v2904_v58 }
0x2da2   :  { %2458 = vst.msk [vmem:[#allocation3 + $0x18] sm:$0x7] %vm1549_vm6, %v2454_v59 }
0x2da4   :  { %v2566_v8 = vpop.permute.xlu1 %2565 }
0x2da5   :  { %v2906_v9 = vpop.permute.xlu0 %2905  ;;  %2571 = vst.msk [vmem:[#allocation3 + $0x8] sm:$0xf] %vm1663_vm7, %v2566_v8 }
0x2da6   :  { %2910 = vst.msk [vmem:[#allocation3 + $0x1c] sm:$0x7] %vm1549_vm6, %v2906_v9 }
0x2da7   :  { %2681 = vst.msk [vmem:[#allocation3 + $0x8] sm:$0xf] %vm1775_vm8, %v3816_v13 }
0x2da9   :  { %v2568_v15 = vpop.permute.xlu0 %2567 }
0x2daa   :  { %2572 = vst.msk [vmem:[#allocation3 + $0x18] sm:$0x7] %vm1665_vm9, %v2568_v15 }
0x2dab   :  { %2682 = vst.msk [vmem:[#allocation3 + $0x18] sm:$0x7] %vm1777_vm10, %v3817_v44 }
0x2db2   :  { %v4089_v28 = vld [vmem:[#allocation3 + $0x8] ss:$16 sps:$4 sm:$0x7f]  }
0x2dfb   :  { %v3118_v24 = vpop.permute.xlu1 %3117 }
0x2dfc   :  { %v3123_v16 = vmul.f32 %v5165_v60, %v3118_v24 }
0x2dfe   :  { %v3824_v32 = vpack.c.bf16 %v3123_v16, %v3123_v16 }
0x2dff   :  { %v3018_v27 = vpop.permute.xlu1 %3017  ;;  %v3120_v30 = vpop.permute.xlu0 %3119 }
0x2e00   :  { %3023 = vst.msk [vmem:[#allocation3 + $0xc] sm:$0xf] %vm1663_vm7, %v3018_v27  ;;  %v3124_v14 = vmul.f32 %v5168_v45, %v3120_v30  ;;  %v3757_v45 = vld [vmem:[%s5419_s7] ss:$0 sm:$0xff] }
0x2e01   :  { %3133 = vst.msk [vmem:[#allocation3 + $0xc] sm:$0xf] %vm1775_vm8, %v3824_v32 }
0x2e02   :  { %v3825_v2 = vpack.c.bf16 %v3124_v14, %v3124_v14 }
0x2e03   :  { %v3020_v37 = vpop.permute.xlu0 %3019 }
0x2e04   :  { %3024 = vst.msk [vmem:[#allocation3 + $0x1c] sm:$0x7] %vm1665_vm9, %v3020_v37 }
0x2e05   :  { %3134 = vst.msk [vmem:[#allocation3 + $0x1c] sm:$0x7] %vm1777_vm10, %v3825_v2 }
0x2e0c   :  { %v4091_v18 = vld [vmem:[#allocation3 + $0xc] ss:$16 sps:$4 sm:$0x7f]  }
0x2e0d   :  { %3495 = vmatprep.mubr.bf16.mxu1 %v4091_v18 }
0x2e0e   :  { %3496 = vmatmul.mubr.bf16.vlgmr.msra.gmra.mxu1 %v4089_v28 }
0x2e60   :  { %v3890_v60 = vpop.f32.mrf.mxu0 }
0x2e62   :  { %v3891_v42 = vpop.f32.mrf.mxu0 }
0x2e63   :  { %v3892_v33 = vadd.f32 %v3891_v42, %v3890_v60 }
0x2e64   :  { %v3893_v5 = vpop.f32.mrf.mxu0 }
0x2e65   :  { %v3457_v47 = vadd.f32 %v3892_v33, %v3757_v45 }
0x2e66   :  { %v3894_v21 = vpop.f32.mrf.mxu0 }
0x2e67   :  { %v3895_v34 = vadd.f32 %v3894_v21, %v3893_v5 }
0x2e69   :  { %v3460_v41 = vadd.f32 %v3895_v34, %v3757_v45 }
0x2ece   :  { %v3912_v6 = vpop.f32.mrf.mxu1 }
0x2ed0   :  { %v3913_v46 = vpop.f32.mrf.mxu1 }
0x2ed1   :  { %v3914_v26 = vadd.f32 %v3913_v46, %v3912_v6 }
0x2ed2   :  { %v3915_v11 = vpop.f32.mrf.mxu1 }
0x2ed3   :  { %v3498_v19 = vadd.f32 %v3914_v26, %v3457_v47 }
0x2ed4   :  { %v3916_v55 = vpop.f32.mrf.mxu1 }
0x2ed5   :  { %v3506_v29 = vadd.f32 %v3504_v7, %v3498_v19  ;;  %v3917_v53 = vadd.f32 %v3916_v55, %v3915_v11 }
0x2ed7   :  { %3508 = vst [vmem:[%s5420_s8] sm:$0xff] %v3506_v29  ;;  %v3501_v20 = vadd.f32 %v3917_v53, %v3460_v41 }
0x2ed9   :  { %v3507_v49 = vadd.f32 %v3505_v17, %v3501_v20 }
0x2edb   :  { %3509 = vst [vmem:[%s5420_s8 + $0x8] sm:$0x3f] %v3507_v49 }

</bundles_post_ra>
